<compile_context>
chip_gen: v5e
topology: v5e:2x2
jax: 0.10.0
libtpu: 0.0.40
codegen_flags: <defaults>
</compile_context>

<pallas_src>
import jax
import jax.numpy as jnp
from jax.experimental import pallas as pl
from jax.experimental.pallas import tpu as pltpu


def _make_sinenet_kernel(h, chunk, chunks_per_block, bf16_tanh):
    hp = jax.lax.Precision.HIGHEST

    def act(z):
        # Steady-state the kernel is EUP(tanh)-bound (2*H transcendentals per
        # sample).  bf16 tanh (~2x EUP rate on v6e/v7x) is opt-in only: it
        # degrades accuracy to ~1e-2 and v5e has no bf16 EUP path.
        if bf16_tanh:
            return jnp.tanh(z.astype(jnp.bfloat16)).astype(jnp.float32)
        return jnp.tanh(z)
        # TODO(synk): on v5e, if the bundle shows jnp.tanh expanding into a
        # VALU polynomial, switch to 1 - 2*pl.reciprocal(1+jnp.exp(2*z), approx=True).

    def kernel(x_ref, w2_ref, p_ref, o_ref, bc_ref):
        # ---- loop-invariant parameter prep (hoisted out of the chunk loop) ---
        w2 = w2_ref[...]                                   # [H, H]
        p = p_ref[...]                                     # [H, 8] packed params
        b3 = p[0:1, 4:5]                                   # [1, 1]
        # Materialize the [H,1]->[H,chunk] lane-broadcasts once per grid step
        # into VMEM scratch; the inner loop then has no cross-lane broadcast
        # work left, only x-dependent VPU/MXU/EUP compute.
        bc_ref[0] = jnp.broadcast_to(p[:, 0:1], (h, chunk))   # w1
        bc_ref[1] = jnp.broadcast_to(p[:, 1:2], (h, chunk))   # b1
        bc_ref[2] = jnp.broadcast_to(p[:, 2:3], (h, chunk))   # b2
        bc_ref[3] = jnp.broadcast_to(p[:, 3:4], (h, chunk))   # w3

        # ---- inner loop over 512-lane chunks of this grid step's block ------
        def body(c, carry):
            start = pl.multiple_of(c * chunk, chunk)
            xs = x_ref[:, pl.ds(start, chunk)]             # [1, chunk], batch on lanes
            # fc1 + tanh: K=1 layer as a VPU outer product (no degenerate MXU op).
            h1 = act(bc_ref[0] * xs + bc_ref[1])           # [H, chunk]
            # fc2 + tanh: the one real MXU matmul, [H,H] @ [H,chunk].
            h2 = act(jnp.dot(w2, h1,
                             preferred_element_type=jnp.float32,
                             precision=hp) + bc_ref[2])    # [H, chunk]
            # fc3: N_out=1 -> VPU multiply + sublane (XLU) reduce; lane-dense store.
            out = jnp.sum(h2 * bc_ref[3], axis=0, keepdims=True) + b3
            o_ref[:, pl.ds(start, chunk)] = out.astype(o_ref.dtype)
            return carry

        jax.lax.fori_loop(0, chunks_per_block, body, 0, unroll=True)

    return kernel


def sinenet_forward(x, params, *, chunk=512, max_block=4096, bf16_tanh=False):
    """x: [N, 1] float32. Returns [N, 1] float32 (torch SineNet.forward)."""
    n = x.shape[0]
    h = params["w2"].shape[0]
    assert chunk % 128 == 0 and max_block % chunk == 0

    # ---- block / grid sizing ------------------------------------------------
    # Large per-step blocks amortize the ~0.35us grid-step overhead; the kernel
    # iterates over `chunk`-lane pieces internally so live vreg state stays
    # ~40 regs.  Keep the grid even and >=2 when possible so v7x's two
    # TensorCores both get work.
    n_chunks = max(1, pl.cdiv(n, chunk))
    if n_chunks >= 2:
        num_blocks = max(2, pl.cdiv(n_chunks, max_block // chunk))
        if num_blocks % 2:
            num_blocks += 1
        chunks_per_block = pl.cdiv(n_chunks, num_blocks)
    else:
        num_blocks, chunks_per_block = 1, 1
    block = chunks_per_block * chunk
    n_pad = num_blocks * block

    # ---- operand prep ---------------------------------------------------------
    x_flat = x.reshape(n)
    if n_pad != n:
        x_flat = jnp.pad(x_flat, (0, n_pad - n))   # padded lanes computed & dropped
    x_t = x_flat.reshape(1, n_pad)                 # batch on the lane axis

    # Pack the five tiny [H,1]/[1,1] params into one [H, 8] tensor: a single
    # constant-index BlockSpec instead of five separate DMA streams.
    packed = jnp.zeros((h, 8), jnp.float32)
    packed = packed.at[:, 0].set(params["w1"][:, 0])
    packed = packed.at[:, 1].set(params["b1"][:, 0])
    packed = packed.at[:, 2].set(params["b2"][:, 0])
    packed = packed.at[:, 3].set(params["w3"][:, 0])
    packed = packed.at[0, 4].set(params["b3"][0, 0])

    kernel = _make_sinenet_kernel(h, chunk, chunks_per_block, bf16_tanh)

    def const(shape):
        # Constant block index across the batch grid: block is DMA'd once and
        # stays VMEM-resident for all grid steps.
        return pl.BlockSpec(shape, lambda i: (0, 0))

    out_t = pl.pallas_call(
        kernel,
        out_shape=jax.ShapeDtypeStruct((1, n_pad), jnp.float32),
        grid_spec=pltpu.PrefetchScalarGridSpec(
            num_scalar_prefetch=0,
            grid=(num_blocks,),
            in_specs=[
                pl.BlockSpec((1, block), lambda i: (0, i)),   # x      [1, block]
                const((h, h)),                                # w2     [H, H]
                const((h, 8)),                                # packed [H, 8]
            ],
            out_specs=pl.BlockSpec((1, block), lambda i: (0, i)),
            scratch_shapes=[pltpu.VMEM((4, h, chunk), jnp.float32)],  # hoisted bcasts
        ),
        compiler_params=pltpu.CompilerParams(
            # Batch axis is embarrassingly parallel -> v7x shards grid steps
            # across its two TensorCores (no-op on single-core v5e/v6e).
            dimension_semantics=("parallel",),
        ),
        cost_estimate=pl.CostEstimate(
            flops=2 * h * (h + 2) * n_pad,
            transcendentals=2 * h * n_pad,
            bytes_accessed=8 * n_pad + 4 * (h * h + h * 8),
        ),
    )(x_t, params["w2"], packed)

    return out_t.reshape(n_pad, 1)[:n]


def init_params(key, n_hidden):
    """torch.nn.Linear-style U(-1/sqrt(fan_in), +1/sqrt(fan_in)) init, stored
    in the kernel's column-sample orientation (w1=fc1.weight, w2=fc2.weight,
    w3=fc3.weight.T, biases as columns)."""
    ks = jax.random.split(key, 6)

    def lin(kw, kb, fan_in, w_shape, b_shape):
        bound = 1.0 / jnp.sqrt(jnp.float32(fan_in))
        w = jax.random.uniform(kw, w_shape, jnp.float32, -bound, bound)
        b = jax.random.uniform(kb, b_shape, jnp.float32, -bound, bound)
        return w, b

    w1, b1 = lin(ks[0], ks[1], 1,        (n_hidden, 1),        (n_hidden, 1))
    w2, b2 = lin(ks[2], ks[3], n_hidden, (n_hidden, n_hidden), (n_hidden, 1))
    w3, b3 = lin(ks[4], ks[5], n_hidden, (n_hidden, 1),        (1, 1))
    return {"w1": w1, "b1": b1, "w2": w2, "b2": b2, "w3": w3, "b3": b3}


def sinenet_ref(x, p):
    """Pure-JAX reference in the batch-major torch formulation (MXU precision
    pinned to HIGHEST so the f32 comparison against the kernel is meaningful)."""
    hp = jax.lax.Precision.HIGHEST
    h1 = jnp.tanh(jnp.dot(x, p["w1"].T, precision=hp) + p["b1"].T)   # [N,H]
    h2 = jnp.tanh(jnp.dot(h1, p["w2"].T, precision=hp) + p["b2"].T)  # [N,H]
    return jnp.dot(h2, p["w3"], precision=hp) + p["b3"]              # [N,1]


if __name__ == "__main__":
    key = jax.random.PRNGKey(0)
    k_x, k_p = jax.random.split(key)

    n_hidden = 32
    # Ragged batch on purpose: exercises padding, the inner multi-chunk loop
    # (3 chunks per block) and an even 2-step grid for v7x.
    n = 2500

    x = jax.random.uniform(k_x, (n, 1), jnp.float32, -3.0, 3.0)
    params = init_params(k_p, n_hidden)

    out = sinenet_forward(x, params)          # exact-f32 path (bf16_tanh=False)
    out = jax.block_until_ready(out)

    ref = sinenet_ref(x, params)
    assert out.shape == (n, 1)
    assert jnp.allclose(out, ref, atol=1e-5, rtol=1e-5)

    print("KERNEL_OK")
</pallas_src>

<mosaic_0001>
module attributes {stable_mosaic.version = 11 : i64} {
  func.func @kernel(%arg0: i32, %arg1: memref<1x1536xf32, #tpu.memory_space<vmem>>, %arg2: memref<32x32xf32, #tpu.memory_space<vmem>>, %arg3: memref<32x8xf32, #tpu.memory_space<vmem>>, %arg4: memref<1x1536xf32, #tpu.memory_space<vmem>>, %arg5: memref<4x32x512xf32, #tpu.memory_space<vmem>>) attributes {dimension_semantics = [#tpu.dimension_semantics<parallel>], iteration_bounds = array<i64: 2>, scalar_prefetch = 0 : i64, scratch_operands = 1 : i64, tpu.core_type = #tpu.core_type<tc>, window_params = [{transform_indices = @transform_0, window_bounds = array<i64: 1, 1536>}, {pipeline_mode = #tpu.pipeline_mode<synchronous>, transform_indices = @transform_1, window_bounds = array<i64: 32, 32>}, {pipeline_mode = #tpu.pipeline_mode<synchronous>, transform_indices = @transform_2, window_bounds = array<i64: 32, 8>}, {transform_indices = @transform_3, window_bounds = array<i64: 1, 1536>}]} {
    %c0 = arith.constant 0 : index
    %c0_0 = arith.constant 0 : index
    %0 = vector.load %arg2[%c0, %c0_0] : memref<32x32xf32, #tpu.memory_space<vmem>>, vector<32x32xf32>
    %c0_1 = arith.constant 0 : index
    %c0_2 = arith.constant 0 : index
    %1 = vector.load %arg3[%c0_1, %c0_2] : memref<32x8xf32, #tpu.memory_space<vmem>>, vector<32x8xf32>
    %2 = vector.extract_strided_slice %1 {offsets = [0, 4], sizes = [1, 1], strides = [1, 1]} : vector<32x8xf32> to vector<1x1xf32>
    %3 = vector.extract_strided_slice %1 {offsets = [0, 0], sizes = [32, 1], strides = [1, 1]} : vector<32x8xf32> to vector<32x1xf32>
    %4 = vector.shape_cast %3 : vector<32x1xf32> to vector<32x1xf32>
    %5 = vector.broadcast %4 : vector<32x1xf32> to vector<32x512xf32>
    %c0_3 = arith.constant 0 : index
    %c0_4 = arith.constant 0 : index
    %c0_5 = arith.constant 0 : index
    %6 = vector.load %arg5[%c0_3, %c0_4, %c0_5] : memref<4x32x512xf32, #tpu.memory_space<vmem>>, vector<1x32x512xf32>
    %7 = vector.shape_cast %6 : vector<1x32x512xf32> to vector<32x512xf32>
    %8 = vector.shape_cast %5 : vector<32x512xf32> to vector<1x32x512xf32>
    tpu.vector_store %arg5[%c0_3, %c0_4, %c0_5], %8 {strides = array<i32>} : memref<4x32x512xf32, #tpu.memory_space<vmem>>, vector<1x32x512xf32>,
    %9 = vector.extract_strided_slice %1 {offsets = [0, 1], sizes = [32, 1], strides = [1, 1]} : vector<32x8xf32> to vector<32x1xf32>
    %10 = vector.shape_cast %9 : vector<32x1xf32> to vector<32x1xf32>
    %11 = vector.broadcast %10 : vector<32x1xf32> to vector<32x512xf32>
    %c1 = arith.constant 1 : index
    %c0_6 = arith.constant 0 : index
    %c0_7 = arith.constant 0 : index
    %12 = vector.load %arg5[%c1, %c0_6, %c0_7] : memref<4x32x512xf32, #tpu.memory_space<vmem>>, vector<1x32x512xf32>
    %13 = vector.shape_cast %12 : vector<1x32x512xf32> to vector<32x512xf32>
    %14 = vector.shape_cast %11 : vector<32x512xf32> to vector<1x32x512xf32>
    tpu.vector_store %arg5[%c1, %c0_6, %c0_7], %14 {strides = array<i32>} : memref<4x32x512xf32, #tpu.memory_space<vmem>>, vector<1x32x512xf32>,
    %15 = vector.extract_strided_slice %1 {offsets = [0, 2], sizes = [32, 1], strides = [1, 1]} : vector<32x8xf32> to vector<32x1xf32>
    %16 = vector.shape_cast %15 : vector<32x1xf32> to vector<32x1xf32>
    %17 = vector.broadcast %16 : vector<32x1xf32> to vector<32x512xf32>
    %c2 = arith.constant 2 : index
    %c0_8 = arith.constant 0 : index
    %c0_9 = arith.constant 0 : index
    %18 = vector.load %arg5[%c2, %c0_8, %c0_9] : memref<4x32x512xf32, #tpu.memory_space<vmem>>, vector<1x32x512xf32>
    %19 = vector.shape_cast %18 : vector<1x32x512xf32> to vector<32x512xf32>
    %20 = vector.shape_cast %17 : vector<32x512xf32> to vector<1x32x512xf32>
    tpu.vector_store %arg5[%c2, %c0_8, %c0_9], %20 {strides = array<i32>} : memref<4x32x512xf32, #tpu.memory_space<vmem>>, vector<1x32x512xf32>,
    %21 = vector.extract_strided_slice %1 {offsets = [0, 3], sizes = [32, 1], strides = [1, 1]} : vector<32x8xf32> to vector<32x1xf32>
    %22 = vector.shape_cast %21 : vector<32x1xf32> to vector<32x1xf32>
    %23 = vector.broadcast %22 : vector<32x1xf32> to vector<32x512xf32>
    %c3 = arith.constant 3 : index
    %c0_10 = arith.constant 0 : index
    %c0_11 = arith.constant 0 : index
    %24 = vector.load %arg5[%c3, %c0_10, %c0_11] : memref<4x32x512xf32, #tpu.memory_space<vmem>>, vector<1x32x512xf32>
    %25 = vector.shape_cast %24 : vector<1x32x512xf32> to vector<32x512xf32>
    %26 = vector.shape_cast %23 : vector<32x512xf32> to vector<1x32x512xf32>
    tpu.vector_store %arg5[%c3, %c0_10, %c0_11], %26 {strides = array<i32>} : memref<4x32x512xf32, #tpu.memory_space<vmem>>, vector<1x32x512xf32>,
    %c0_i32 = arith.constant 0 : i32
    %c512_i32 = arith.constant 512 : i32
    %27 = arith.muli %c0_i32, %c512_i32 : i32
    %28 = tpu.assume_multiple %27, 512 : i32
    %c0_12 = arith.constant 0 : index
    %29 = arith.index_cast %28 : i32 to index
    %30 = vector.load %arg1[%c0_12, %29] : memref<1x1536xf32, #tpu.memory_space<vmem>>, vector<1x512xf32>
    %c0_13 = arith.constant 0 : index
    %c0_14 = arith.constant 0 : index
    %c0_15 = arith.constant 0 : index
    %31 = vector.load %arg5[%c0_13, %c0_14, %c0_15] : memref<4x32x512xf32, #tpu.memory_space<vmem>>, vector<1x32x512xf32>
    %32 = vector.shape_cast %31 : vector<1x32x512xf32> to vector<32x512xf32>
    %33 = vector.broadcast %30 : vector<1x512xf32> to vector<32x512xf32>
    %34 = arith.mulf %32, %33 : vector<32x512xf32>
    %c1_16 = arith.constant 1 : index
    %c0_17 = arith.constant 0 : index
    %c0_18 = arith.constant 0 : index
    %35 = vector.load %arg5[%c1_16, %c0_17, %c0_18] : memref<4x32x512xf32, #tpu.memory_space<vmem>>, vector<1x32x512xf32>
    %36 = vector.shape_cast %35 : vector<1x32x512xf32> to vector<32x512xf32>
    %37 = arith.addf %34, %36 : vector<32x512xf32>
    %38 = math.tanh %37 : vector<32x512xf32>
    %cst = arith.constant dense<0.000000e+00> : vector<32x512xf32>
    %39 = tpu.matmul %0, %38, %cst {dimension_numbers = #tpu.dot_dimension_numbers<[1], [0], [0], [1], [0, 0, 1, 1], [], []>, precision = #tpu.contract_precision<fp32>} : vector<32x32xf32>, vector<32x512xf32>, vector<32x512xf32> -> vector<32x512xf32>
    %c2_19 = arith.constant 2 : index
    %c0_20 = arith.constant 0 : index
    %c0_21 = arith.constant 0 : index
    %40 = vector.load %arg5[%c2_19, %c0_20, %c0_21] : memref<4x32x512xf32, #tpu.memory_space<vmem>>, vector<1x32x512xf32>
    %41 = vector.shape_cast %40 : vector<1x32x512xf32> to vector<32x512xf32>
    %42 = arith.addf %39, %41 : vector<32x512xf32>
    %43 = math.tanh %42 : vector<32x512xf32>
    %c3_22 = arith.constant 3 : index
    %c0_23 = arith.constant 0 : index
    %c0_24 = arith.constant 0 : index
    %44 = vector.load %arg5[%c3_22, %c0_23, %c0_24] : memref<4x32x512xf32, #tpu.memory_space<vmem>>, vector<1x32x512xf32>
    %45 = vector.shape_cast %44 : vector<1x32x512xf32> to vector<32x512xf32>
    %46 = arith.mulf %43, %45 : vector<32x512xf32>
    %cst_25 = arith.constant dense<0.000000e+00> : vector<512xf32>
    %47 = vector.multi_reduction <add>, %46, %cst_25 [0] : vector<32x512xf32> to vector<512xf32>
    %48 = vector.shape_cast %47 : vector<512xf32> to vector<1x512xf32>
    %49 = vector.broadcast %2 : vector<1x1xf32> to vector<1x512xf32>
    %50 = arith.addf %48, %49 : vector<1x512xf32>
    %c0_26 = arith.constant 0 : index
    %51 = arith.index_cast %28 : i32 to index
    %52 = vector.load %arg4[%c0_26, %51] : memref<1x1536xf32, #tpu.memory_space<vmem>>, vector<1x512xf32>
    tpu.vector_store %arg4[%c0_26, %51], %50 {strides = array<i32>} : memref<1x1536xf32, #tpu.memory_space<vmem>>, vector<1x512xf32>,
    %c1_i32 = arith.constant 1 : i32
    %c512_i32_27 = arith.constant 512 : i32
    %53 = arith.muli %c1_i32, %c512_i32_27 : i32
    %54 = tpu.assume_multiple %53, 512 : i32
    %c0_28 = arith.constant 0 : index
    %55 = arith.index_cast %54 : i32 to index
    %56 = vector.load %arg1[%c0_28, %55] : memref<1x1536xf32, #tpu.memory_space<vmem>>, vector<1x512xf32>
    %c0_29 = arith.constant 0 : index
    %c0_30 = arith.constant 0 : index
    %c0_31 = arith.constant 0 : index
    %57 = vector.load %arg5[%c0_29, %c0_30, %c0_31] : memref<4x32x512xf32, #tpu.memory_space<vmem>>, vector<1x32x512xf32>
    %58 = vector.shape_cast %57 : vector<1x32x512xf32> to vector<32x512xf32>
    %59 = vector.broadcast %56 : vector<1x512xf32> to vector<32x512xf32>
    %60 = arith.mulf %58, %59 : vector<32x512xf32>
    %c1_32 = arith.constant 1 : index
    %c0_33 = arith.constant 0 : index
    %c0_34 = arith.constant 0 : index
    %61 = vector.load %arg5[%c1_32, %c0_33, %c0_34] : memref<4x32x512xf32, #tpu.memory_space<vmem>>, vector<1x32x512xf32>
    %62 = vector.shape_cast %61 : vector<1x32x512xf32> to vector<32x512xf32>
    %63 = arith.addf %60, %62 : vector<32x512xf32>
    %64 = math.tanh %63 : vector<32x512xf32>
    %cst_35 = arith.constant dense<0.000000e+00> : vector<32x512xf32>
    %65 = tpu.matmul %0, %64, %cst_35 {dimension_numbers = #tpu.dot_dimension_numbers<[1], [0], [0], [1], [0, 0, 1, 1], [], []>, precision = #tpu.contract_precision<fp32>} : vector<32x32xf32>, vector<32x512xf32>, vector<32x512xf32> -> vector<32x512xf32>
    %c2_36 = arith.constant 2 : index
    %c0_37 = arith.constant 0 : index
    %c0_38 = arith.constant 0 : index
    %66 = vector.load %arg5[%c2_36, %c0_37, %c0_38] : memref<4x32x512xf32, #tpu.memory_space<vmem>>, vector<1x32x512xf32>
    %67 = vector.shape_cast %66 : vector<1x32x512xf32> to vector<32x512xf32>
    %68 = arith.addf %65, %67 : vector<32x512xf32>
    %69 = math.tanh %68 : vector<32x512xf32>
    %c3_39 = arith.constant 3 : index
    %c0_40 = arith.constant 0 : index
    %c0_41 = arith.constant 0 : index
    %70 = vector.load %arg5[%c3_39, %c0_40, %c0_41] : memref<4x32x512xf32, #tpu.memory_space<vmem>>, vector<1x32x512xf32>
    %71 = vector.shape_cast %70 : vector<1x32x512xf32> to vector<32x512xf32>
    %72 = arith.mulf %69, %71 : vector<32x512xf32>
    %cst_42 = arith.constant dense<0.000000e+00> : vector<512xf32>
    %73 = vector.multi_reduction <add>, %72, %cst_42 [0] : vector<32x512xf32> to vector<512xf32>
    %74 = vector.shape_cast %73 : vector<512xf32> to vector<1x512xf32>
    %75 = vector.broadcast %2 : vector<1x1xf32> to vector<1x512xf32>
    %76 = arith.addf %74, %75 : vector<1x512xf32>
    %c0_43 = arith.constant 0 : index
    %77 = arith.index_cast %54 : i32 to index
    %78 = vector.load %arg4[%c0_43, %77] : memref<1x1536xf32, #tpu.memory_space<vmem>>, vector<1x512xf32>
    tpu.vector_store %arg4[%c0_43, %77], %76 {strides = array<i32>} : memref<1x1536xf32, #tpu.memory_space<vmem>>, vector<1x512xf32>,
    %c2_i32 = arith.constant 2 : i32
    %c512_i32_44 = arith.constant 512 : i32
    %79 = arith.muli %c2_i32, %c512_i32_44 : i32
    %80 = tpu.assume_multiple %79, 512 : i32
    %c0_45 = arith.constant 0 : index
    %81 = arith.index_cast %80 : i32 to index
    %82 = vector.load %arg1[%c0_45, %81] : memref<1x1536xf32, #tpu.memory_space<vmem>>, vector<1x512xf32>
    %c0_46 = arith.constant 0 : index
    %c0_47 = arith.constant 0 : index
    %c0_48 = arith.constant 0 : index
    %83 = vector.load %arg5[%c0_46, %c0_47, %c0_48] : memref<4x32x512xf32, #tpu.memory_space<vmem>>, vector<1x32x512xf32>
    %84 = vector.shape_cast %83 : vector<1x32x512xf32> to vector<32x512xf32>
    %85 = vector.broadcast %82 : vector<1x512xf32> to vector<32x512xf32>
    %86 = arith.mulf %84, %85 : vector<32x512xf32>
    %c1_49 = arith.constant 1 : index
    %c0_50 = arith.constant 0 : index
    %c0_51 = arith.constant 0 : index
    %87 = vector.load %arg5[%c1_49, %c0_50, %c0_51] : memref<4x32x512xf32, #tpu.memory_space<vmem>>, vector<1x32x512xf32>
    %88 = vector.shape_cast %87 : vector<1x32x512xf32> to vector<32x512xf32>
    %89 = arith.addf %86, %88 : vector<32x512xf32>
    %90 = math.tanh %89 : vector<32x512xf32>
    %cst_52 = arith.constant dense<0.000000e+00> : vector<32x512xf32>
    %91 = tpu.matmul %0, %90, %cst_52 {dimension_numbers = #tpu.dot_dimension_numbers<[1], [0], [0], [1], [0, 0, 1, 1], [], []>, precision = #tpu.contract_precision<fp32>} : vector<32x32xf32>, vector<32x512xf32>, vector<32x512xf32> -> vector<32x512xf32>
    %c2_53 = arith.constant 2 : index
    %c0_54 = arith.constant 0 : index
    %c0_55 = arith.constant 0 : index
    %92 = vector.load %arg5[%c2_53, %c0_54, %c0_55] : memref<4x32x512xf32, #tpu.memory_space<vmem>>, vector<1x32x512xf32>
    %93 = vector.shape_cast %92 : vector<1x32x512xf32> to vector<32x512xf32>
    %94 = arith.addf %91, %93 : vector<32x512xf32>
    %95 = math.tanh %94 : vector<32x512xf32>
    %c3_56 = arith.constant 3 : index
    %c0_57 = arith.constant 0 : index
    %c0_58 = arith.constant 0 : index
    %96 = vector.load %arg5[%c3_56, %c0_57, %c0_58] : memref<4x32x512xf32, #tpu.memory_space<vmem>>, vector<1x32x512xf32>
    %97 = vector.shape_cast %96 : vector<1x32x512xf32> to vector<32x512xf32>
    %98 = arith.mulf %95, %97 : vector<32x512xf32>
    %cst_59 = arith.constant dense<0.000000e+00> : vector<512xf32>
    %99 = vector.multi_reduction <add>, %98, %cst_59 [0] : vector<32x512xf32> to vector<512xf32>
    %100 = vector.shape_cast %99 : vector<512xf32> to vector<1x512xf32>
    %101 = vector.broadcast %2 : vector<1x1xf32> to vector<1x512xf32>
    %102 = arith.addf %100, %101 : vector<1x512xf32>
    %c0_60 = arith.constant 0 : index
    %103 = arith.index_cast %80 : i32 to index
    %104 = vector.load %arg4[%c0_60, %103] : memref<1x1536xf32, #tpu.memory_space<vmem>>, vector<1x512xf32>
    tpu.vector_store %arg4[%c0_60, %103], %102 {strides = array<i32>} : memref<1x1536xf32, #tpu.memory_space<vmem>>, vector<1x512xf32>,
    %c3_i32 = arith.constant 3 : i32
    return
  }
  func.func @transform_0(%arg0: i32) -> (i32, i32) {
    %c0_i32 = arith.constant 0 : i32
    %c0_i32_0 = arith.constant 0 : i32
    return %c0_i32, %arg0 : i32, i32
  }
  func.func @transform_1(%arg0: i32) -> (i32, i32) {
    %c0_i32 = arith.constant 0 : i32
    %c0_i32_0 = arith.constant 0 : i32
    %c0_i32_1 = arith.constant 0 : i32
    return %c0_i32, %c0_i32_0 : i32, i32
  }
  func.func @transform_2(%arg0: i32) -> (i32, i32) {
    %c0_i32 = arith.constant 0 : i32
    %c0_i32_0 = arith.constant 0 : i32
    %c0_i32_1 = arith.constant 0 : i32
    return %c0_i32, %c0_i32_0 : i32, i32
  }
  func.func @transform_3(%arg0: i32) -> (i32, i32) {
    %c0_i32 = arith.constant 0 : i32
    %c0_i32_0 = arith.constant 0 : i32
    return %c0_i32, %arg0 : i32, i32
  }
}

</mosaic_0001>

<bundles_post_ra>
// kernel: tpu_custom_call.1
= control target key start
LH: loop header
LB: loop body
LE: loop exit
PB: predicated region body
PF: predicated region fallthrough
CT: control target
= control target key end

     0   :  { %8 = vsyncpa [#allocation4], 0  ;;  %s6466_s0 = inlined_call_operand.hbm [shape: f32[1,3072], index: 0, kind: input, shape index: {}]   ;;  %s6467_s1 = inlined_call_operand.vmem [shape: f32[32,32], index: 1, kind: input, shape index: {}]   ;;  %s6468_s2 = inlined_call_operand.vmem [shape: f32[32,8], index: 2, kind: input, shape index: {}]   ;;  %s6469_s3 = inlined_call_operand.hbm [shape: f32[1,3072], index: 3, kind: output, shape index: {}]  }
   0x1   :  { %10 = vsyncpa [#allocation4 + $0x1], 0 }
   0x2   :  { %11 = vsyncpa [#allocation5], 0 }
   0x3   :  { %13 = vsyncpa [#allocation5 + $0x1], 0  ;;  %s4792_s12 = smov 0   ;;  %s4794_s13 = smov 0  }
   0x4   :  { %s4796_s14 = smov 0   ;;  %s4798_s15 = smov 0  }
   0x5 LB: > { %s4813_s16 = sadd.s32 4294967295, %s4765_s15   ;;  %s4401_s17 = sadd.s32 4294967294, %s4765_s15   ;;  %s4765_s15 = sphi %s4798_s15, %s6595_s15   ;;  %s4761_s14 = sphi %s4796_s14, %s6594_s14   ;;  %s4757_s13 = sphi %s4794_s13, %s6593_s13   ;;  %s4753_s12 = sphi %s4792_s12, %s6592_s12  }
   0x6   : > { %s4817_s18 = sadd.s32 1, %s4765_s15   ;;  %s26_s19 = sadd.s32 1, %s4761_s14 }
   0x7   : > { %s23_s20 = ssub.s32 %s4765_s15, %s4817_s18  ;;  %p33_p0 = scmp.ne.s32.totalorder %s4761_s14, %s4757_s13 }
   0x8   : > { %p24_p1 = scmp.eq.s32.totalorder %s23_s20, 0  ;;  %p34_p2 = scmp.eq.s32.totalorder %s4765_s15, 0 }
   0x9   : > { %p39_p3 = scmp.ne.s32.totalorder %s4757_s13, %s4753_s12  ;;  %p40_p4 = scmp.eq.s32.totalorder %s4813_s16, 0 }
   0xa   : > { %s4829_s21 = scalar_select %p24_p1, %s4761_s14, %s26_s19  }
   0xb   : > { %p35_p5 = por %p34_p2, %p33_p0  ;;  %p4831_p6 = por %p40_p4, %p39_p3 }
   0xc   : > { %p105_p7 = scmp.eq.s32.totalorder %s4813_s16, 1  ;;  %p111_p8 = scmp.eq.s32.totalorder %s4401_s17, 1 }
   0xd   : > { %p4403_p9 = scmp.ge.s32.totalorder %s4765_s15, 2  ;;  %p4425_p10 = scmp.lt.s32.totalorder %s4765_s15, 2 }
   0xe   : > { %p4838_p11 = por %p105_p7, %p33_p0  ;;  %p4842_p12 = por %p111_p8, %p39_p3 }
   0xf   : > { %s137_s25 = sand.u32 1, %s4761_s14   ;;  %s142_s26 = smul.u32 12, %s4765_s15 }
  0x10   : > { %s4411_s27 = smul.u32 12, %s137_s25  ;;  %p4851_p13 = pnand %p4425_p10, %p35_p5 }
  0x11   : > { %s145_s30 = scalar_lea.hbm %s6466_s0, %s142_s26  ;;  %s138_s8 = scalar_lea.sflag [#allocation4], %s137_s25 }
  0x12   : > { %s147_s5 = sshll.u32 %s145_s30, 4  ;;  %s141_s6 = scalar_lea.vmem [#allocation3], %s4411_s27  ;;  %s148_s5 = int_to_ptr.hbm [resolvable:$true] %s147_s5 }
  0x13   : > { %s149_s7 = sshll.u32 %s141_s6, 4  ;;  %s4669_s9 = sshra.s32 %s148_s5, 4  ;;  %s150_s7 = int_to_ptr.vmem [resolvable:$true] %s149_s7  ;;  %s4670_s9 = int_to_ptr.hbm [resolvable:$true] %s4669_s9 }
  0x14   : > { %s4671_s10 = scalar_lea.hbm %s4670_s9, 12  ;;  %p4673_p1 = pneg %p4851_p13 }
  0x15   : > { %p4672_p0 = scmp.ne.s32.totalorder %s4670_s9, %s4671_s10  ;;  %s4676_s19 = scalar_lea.hbm %s6466_s0, 24 }
  0x16   : > { %p4677_p4 = scmp.lt.s32.totalorder %s4670_s9, %s6466_s0  ;;  %p4678_p5 = scmp.lt.s32.totalorder %s4676_s19, %s4671_s10 }
  0x17   : > { %p4674_p2 = pnand %p4673_p1, %p4672_p0 }
  0x18   : > { %p4679_p7 = por %p4678_p5, %p4677_p4 }
  0x19   : > { %p4675_p3 = pneg %p4674_p2 }
  0x1b   : > { %p4680_p8 = pnand %p4679_p7, %p4675_p3 }
  0x1d   : > { %4683 = shalt.err (!%p4680_p8)
}
  0x1e   : > { %4420 = dma.hbm_to_vmem [thread:$0]  (!%p4851_p13), %s148_s5, 192, %s150_s7, %s138_s8  }
  0x1f   : > { %p4404_p10 = scmp.ge.s32.totalorder %s4765_s15, 1  ;;  %p154_p0 = scmp.lt.s32.totalorder %s4765_s15, 3 }
  0x21   : > { %p155_p1 = pnand %p4404_p10, %p154_p0 }
  0x23   : > { %158 = sbr.rel (%p155_p1) target bundleno = 953 (0x3b9), region = 32 }
  0x28   : > { %s4868_s25 = sand.u32 1, %s4757_s13  }
  0x29   : > { %s4412_s27 = smul.u32 12, %s4868_s25  ;;  %s161_s28 = scalar_lea.sflag [#allocation4], %s4868_s25 }
  0x2b   : > { %s4874_s29 = scalar_lea.vmem [#allocation3], %s4412_s27 }
  0x2c   : > { %4744 = dma.done.wait (%p4831_p6), %s161_s28, 192  }
  0x2d   : > { %4746 = vsyncadd (%p4831_p6), %s161_s28, 4294967104  ;;  %v4767_v0 = vmov 1   ;;  %v4768_v1 = vmov 0   ;;  %v4883_v2 = vld [vmem:[%s6468_s2 + $0x18] sm:$0xff]  ;;  %v4890_v3 = vld [vmem:[%s6468_s2 + $0x10] sm:$0xff]  ;;  %vm439_vm0 = vcmask 261120  }
  0x2e   : > { %4465 = vset.pattern.permute.xlu1 %v4767_v0  ;;  %4464 = vset.pattern.permute.xlu0 %v4768_v1  ;;  %v4896_v4 = vld [vmem:[%s6468_s2 + $0x8] sm:$0xff]  ;;  %v4903_v5 = vld [vmem:[%s6468_s2] sm:$0xff]  ;;  %v192_v63 = vld [vmem:[%s6467_s1 + $0x10] sm:$0xff]  ;;  %vm1663_vm1 = vcmask 1040384   ;;  %vm1665_vm2 = vcmask 1042434   ;;  %vm1667_vm3 = vcmask 1041408  }
  0x2f   : > { %4467 = vset.pattern.permute.xlu2 %v4767_v0  ;;  %247 = vperm.xlu1 %4465, %v4883_v2   ;;  %v4909_v6 = vld [vmem:[%s4874_s29] sm:$0xf]  ;;  %s4719_s17 = scalar_lea.hbm %s6469_s3, 24 }
  0x30   : > { %215 = vperm.xlu0 %4464, %v4883_v2   ;;  %243 = vperm.xlu2 %4467, %v4890_v3   ;;  %v351_v7 = vperm.slane %v4909_v6, 0  ;;  %v352_v8 = vperm.slane %v4909_v6, 1  ;;  %v190_v16 = vld [vmem:[%s6467_s1] sm:$0xff]  ;;  %v191_v37 = vld [vmem:[%s6467_s1 + $0x8] sm:$0xff] }
  0x31   : > { %v441_v18 = vsel %vm439_vm0, %v190_v16, 0  ;;  %v444_v47 = vsel %vm439_vm0, %v191_v37, 0 }
  0x32   : > { %v4934_v24 = vand.u32 4294901760, %v441_v18  ;;  %v4984_v54 = vand.u32 4294901760, %v444_v47 }
  0x34   : > { %v4948_v31 = vsub.f32 %v441_v18, %v4934_v24  ;;  %v4995_v62 = vsub.f32 %v444_v47, %v4984_v54 }
  0x36   : > { %6529 = vst [vmem:[#allocation13_spill] sm:$0xff] %v4948_v31  ;;  %v4971_v45 = vand.u32 4294901760, %v4948_v31 }
  0x37   : > { %4466 = vset.pattern.permute.xlu1 %v4768_v1 }
  0x38   : > { %210 = vperm.xlu0 %4464, %v4890_v3   ;;  %205 = vperm.xlu1 %4466, %v4896_v4   ;;  %6532 = vst [vmem:[#allocation16_spill] sm:$0xff] %v4971_v45  ;;  %v475_v57 = vsub.f32 %v4948_v31, %v4971_v45 }
  0x39   : > { %4468 = vset.pattern.permute.xlu2 %v4768_v1 }
  0x3a   : > { %200 = vperm.xlu2 %4468, %v4903_v5  }
  0x40   : > { %4469 = vset.pattern.permute.xlu0 %v4767_v0  ;;  %4470 = vset.pattern.permute.xlu1 %v4767_v0 }
  0x41   : > { %239 = vperm.xlu0 %4469, %v4896_v4   ;;  %235 = vperm.xlu1 %4470, %v4903_v5  }
  0x8a   : > { %v4919_v13 = vpop.permute.xlu2 %243 }
  0x94   : > { %v4939_v27 = vpop.permute.xlu2 %200 }
  0x95   : > { %6528 = vst [vmem:[#allocation12_spill] sm:$0xff] %v4939_v27  ;;  %v359_v30 = vmul.f32 %v351_v7, %v4939_v27  ;;  %v360_v32 = vmul.f32 %v352_v8, %v4939_v27 }
  0xa1   : > { %v4915_v10 = vpop.permute.xlu1 %247 }
  0xa2   : > { %v4913_v9 = vpop.permute.xlu0 %215  ;;  %6526 = vst [vmem:[#allocation10_spill] sm:$0xff] %v4915_v10 }
  0xa3   : > { %6525 = vst [vmem:[#allocation9_spill] sm:$0xff] %v4913_v9  ;;  %v371_v11 = vmul.f32 %v351_v7, %v4913_v9  ;;  %v372_v12 = vmul.f32 %v352_v8, %v4913_v9 }
  0xa5   : > { %v403_v14 = vadd.f32 %v371_v11, %v4915_v10  ;;  %v404_v15 = vadd.f32 %v372_v12, %v4915_v10 }
  0xa7   : > { %4477 = vtanh.f32 %v403_v14  ;;  %v5004_v14 = vand.u32 4294901760, %v475_v57 }
  0xa8   : > { %4479 = vtanh.f32 %v404_v15 }
  0xa9   : > { %6533 = vst [vmem:[#allocation17_spill] sm:$0xff] %v5004_v14 }
  0xaa   : > { %v4926_v17 = vpop.permute.xlu0 %210  ;;  %v4929_v19 = vpop.permute.xlu1 %205 }
  0xab   : > { %6527 = vst [vmem:[#allocation11_spill] sm:$0xff] %v4926_v17  ;;  %v367_v20 = vmul.f32 %v351_v7, %v4926_v17  ;;  %v368_v21 = vmul.f32 %v352_v8, %v4926_v17  ;;  %v363_v34 = vmul.f32 %v351_v7, %v4929_v19  ;;  %v364_v36 = vmul.f32 %v352_v8, %v4929_v19 }
  0xac   : > { %v4769_v7 = vmov 2  }
  0xad   : > { %v4478_v22 = vpop.eup %4477  ;;  %v399_v23 = vadd.f32 %v367_v20, %v4919_v13  ;;  %v400_v25 = vadd.f32 %v368_v21, %v4919_v13  ;;  %4472 = vset.pattern.permute.xlu1 %v4769_v7  ;;  %4473 = vset.pattern.permute.xlu0 %v4769_v7  ;;  %v447_v21 = vsel %vm439_vm0, %v192_v63, 0 }
  0xae   : > { %v4937_v26 = vand.u32 4294901760, %v4478_v22  ;;  %v4480_v28 = vpop.eup %4479  ;;  %272 = vperm.xlu1 %4472, %v4896_v4   ;;  %4471 = vset.pattern.permute.xlu2 %v4769_v7 }
  0xaf   : > { %4481 = vtanh.f32 %v399_v23  ;;  %v4954_v35 = vand.u32 4294901760, %v4480_v28  ;;  %280 = vperm.xlu0 %4473, %v4883_v2   ;;  %268 = vperm.xlu2 %4471, %v4903_v5  }
  0xb0   : > { %465 = vmatpush.msra.mxu0 %v4937_v26  ;;  %616 = vmatpush.msra.mxu3 %v4937_v26  ;;  %v4944_v29 = vsub.f32 %v4478_v22, %v4937_v26  ;;  %4483 = vtanh.f32 %v400_v25 }
  0xb1   : > { %v4978_v51 = vsub.f32 %v4480_v28, %v4954_v35  ;;  %v5023_v28 = vand.u32 4294901760, %v4995_v62 }
  0xb2   : > { %572 = vmatpush.msra.mxu2 %v4944_v29  ;;  %v519_v33 = vand.u32 4294901760, %v4944_v29 }
  0xb3   : > { %v4960_v38 = vpop.permute.xlu0 %239  ;;  %v4962_v39 = vpop.permute.xlu1 %235  ;;  %v797_v58 = vand.u32 4294901760, %v4978_v51  ;;  %v483_v47 = vsub.f32 %v4995_v62, %v5023_v28 }
  0xb4   : > { %6530 = vst [vmem:[#allocation14_spill] sm:$0xff] %v4960_v38  ;;  %v520_v40 = vsub.f32 %v4944_v29, %v519_v33  ;;  %v395_v41 = vadd.f32 %v363_v34, %v4960_v38  ;;  %v396_v42 = vadd.f32 %v364_v36, %v4960_v38  ;;  %v391_v44 = vadd.f32 %v359_v30, %v4962_v39 }
  0xb5   : > { %6531 = vst [vmem:[#allocation15_spill] sm:$0xff] %v4962_v39  ;;  %v4482_v43 = vpop.eup %4481  ;;  %v392_v46 = vadd.f32 %v360_v32, %v4962_v39  ;;  %v798_v15 = vsub.f32 %v4978_v51, %v797_v58  ;;  %v5056_v63 = vand.u32 4294901760, %v483_v47 }
  0xb6   : > { %v4484_v48 = vpop.eup %4483  ;;  %v4975_v49 = vand.u32 4294901760, %v4482_v43  ;;  %v521_v50 = vand.u32 4294901760, %v520_v40  ;;  %4485 = vtanh.f32 %v395_v41  ;;  %v5035_v40 = vand.u32 4294901760, %v447_v21 }
  0xb7   : > { %4487 = vtanh.f32 %v391_v44  ;;  %v4980_v52 = vand.u32 4294901760, %v4484_v48  ;;  %v799_v34 = vand.u32 4294901760, %v798_v15  ;;  %276 = vperm.xlu2 %4471, %v4890_v3  }
  0xb8   : > { %467 = vmatpush.msra.mxu0 %v4975_v49  ;;  %522 = vmatpush.msra.mxu1 %v521_v50  ;;  %v524_v53 = vsub.f32 %v4482_v43, %v4975_v49  ;;  %4489 = vtanh.f32 %v396_v42  ;;  %v5052_v57 = vsub.f32 %v447_v21, %v5035_v40 }
  0xb9   : > { %618 = vmatpush.msra.mxu3 %v4975_v49  ;;  %v4988_v55 = vsub.f32 %v4484_v48, %v4980_v52  ;;  %4491 = vtanh.f32 %v392_v46  ;;  %v193_v48 = vld [vmem:[%s6467_s1 + $0x18] sm:$0xff] }
  0xba   : > { %575 = vmatpush.msra.mxu2 %v524_v53  ;;  %v525_v56 = vand.u32 4294901760, %v524_v53 }
  0xbb   : > { %v803_v61 = vand.u32 4294901760, %v4988_v55 }
  0xbc   : > { %v4486_v59 = vpop.eup %4485  ;;  %v526_v60 = vsub.f32 %v524_v53, %v525_v56 }
  0xbd   : > { %v4488_v0 = vpop.eup %4487  ;;  %v5000_v1 = vand.u32 4294901760, %v4486_v59  ;;  %v804_v23 = vsub.f32 %v4988_v55, %v803_v61 }
  0xbe   : > { %v4490_v8 = vpop.eup %4489  ;;  %v527_v11 = vand.u32 4294901760, %v526_v60  ;;  %v5002_v12 = vand.u32 4294901760, %v4488_v0  ;;  %v450_v60 = vsel %vm439_vm0, %v193_v48, 0 }
  0xbf   : > { %v4492_v16 = vpop.eup %4491  ;;  %469 = vmatpush.msra.mxu0 %v5000_v1  ;;  %620 = vmatpush.msra.mxu3 %v5000_v1  ;;  %v530_v18 = vsub.f32 %v4486_v59, %v5000_v1  ;;  %v5013_v20 = vand.u32 4294901760, %v4490_v8  ;;  %v805_v43 = vand.u32 4294901760, %v804_v23  ;;  %v5063_v7 = vand.u32 4294901760, %v450_v60 }
  0xc0   : > { %528 = vmatpush.msra.mxu1 %v527_v11  ;;  %v536_v22 = vsub.f32 %v4488_v0, %v5002_v12  ;;  %v5020_v25 = vand.u32 4294901760, %v4492_v16  ;;  %v5061_v0 = vand.u32 4294901760, %v5052_v57 }
  0xc1   : > { %471 = vmatpush.msra.mxu0 %v5002_v12  ;;  %578 = vmatpush.msra.mxu2 %v530_v18  ;;  %v531_v30 = vand.u32 4294901760, %v530_v18  ;;  %v5028_v32 = vsub.f32 %v4490_v8, %v5013_v20  ;;  %v353_v8 = vperm.slane %v4909_v6, 2  ;;  %v5076_v15 = vsub.f32 %v450_v60, %v5063_v7 }
  0xc2   : > { %622 = vmatpush.msra.mxu3 %v5002_v12  ;;  %477 = vmatmul.f32.vlgmr.msra.gmra.mxu0 %v5004_v14  ;;  %v537_v36 = vand.u32 4294901760, %v536_v22  ;;  %v5033_v37 = vsub.f32 %v4492_v16, %v5020_v25  ;;  %v491_v11 = vsub.f32 %v5052_v57, %v5061_v0 }
  0xc3   : > { %626 = vmatmul.f32.vlgmr.msra.gmra.mxu3 %v4971_v45  ;;  %663 = vmatpush.msrb.mxu0 %v519_v33  ;;  %v532_v41 = vsub.f32 %v530_v18, %v531_v30  ;;  %v809_v42 = vand.u32 4294901760, %v5028_v32  ;;  %v373_v16 = vmul.f32 %v353_v8, %v4913_v9 }
  0xc4   : > { %800 = vmatpush.msrb.mxu3 %v799_v34  ;;  %581 = vmatpush.msra.mxu2 %v536_v22  ;;  %v538_v44 = vsub.f32 %v536_v22, %v537_v36  ;;  %v815_v46 = vand.u32 4294901760, %v5033_v37  ;;  %v5090_v18 = vand.u32 4294901760, %v491_v11  ;;  %v354_v34 = vperm.slane %v4909_v6, 3 }
  0xc5   : > { %584 = vmatmul.f32.vlgmr.msra.gmra.mxu2 %v4948_v31  ;;  %667 = vmatpush.msrb.mxu0 %v525_v56  ;;  %v533_v29 = vand.u32 4294901760, %v532_v41  ;;  %v810_v33 = vsub.f32 %v5028_v32, %v809_v42 }
  0xc6   : > { %743 = vmatpush.msrb.mxu2 %v4954_v35  ;;  %806 = vmatpush.msrb.mxu3 %v805_v43  ;;  %v539_v50 = vand.u32 4294901760, %v538_v44  ;;  %v816_v53 = vsub.f32 %v5033_v37, %v815_v46  ;;  %v374_v6 = vmul.f32 %v354_v34, %v4913_v9  ;;  %v370_v47 = vmul.f32 %v354_v34, %v4926_v17 }
  0xc7   : > { %671 = vmatpush.msrb.mxu0 %v531_v30  ;;  %534 = vmatpush.msra.mxu1 %v533_v29  ;;  %v811_v59 = vand.u32 4294901760, %v810_v33 }
  0xc8   : > { %745 = vmatpush.msrb.mxu2 %v4980_v52  ;;  %v817_v56 = vand.u32 4294901760, %v816_v53  ;;  %v406_v48 = vadd.f32 %v374_v6, %v4915_v10  ;;  %v402_v60 = vadd.f32 %v370_v47, %v4919_v13 }
  0xc9   : > { %812 = vmatpush.msrb.mxu3 %v811_v59  ;;  %675 = vmatpush.msrb.mxu0 %v537_v36 }
  0xca   : > { %747 = vmatpush.msrb.mxu2 %v5013_v20  ;;  %540 = vmatpush.msra.mxu1 %v539_v50  ;;  %v362_v50 = vmul.f32 %v354_v34, %v4939_v27 }
  0xcb   : > { %818 = vmatpush.msrb.mxu3 %v817_v56  ;;  %850 = vmatpush.msra.mxu0 %v4978_v51  ;;  %v5093_v51 = vand.u32 4294901760, %v5076_v15  ;;  %v366_v56 = vmul.f32 %v354_v34, %v4929_v19 }
  0xcc   : > { %485 = vmatmul.f32.gmra.mxu0 %v5056_v63  ;;  %542 = vmatmul.f32.vlgmr.msra.gmra.mxu1 %v4934_v24 }
  0xcd   : > { %632 = vmatmul.f32.gmra.mxu3 %v5023_v28  ;;  %706 = vmatpush.msrb.mxu1 %v4937_v26  ;;  %v369_v26 = vmul.f32 %v353_v8, %v4926_v17 }
  0xce   : > { %749 = vmatpush.msrb.mxu2 %v5020_v25  ;;  %984 = vmatpush.msra.mxu3 %v4954_v35 }
  0xcf   : > { %853 = vmatpush.msra.mxu0 %v4988_v55  ;;  %589 = vmatmul.f32.gmra.mxu2 %v4995_v62  ;;  %v365_v55 = vmul.f32 %v353_v8, %v4929_v19 }
  0xd0   : > { %941 = vmatpush.msra.mxu2 %v797_v58  ;;  %708 = vmatpush.msrb.mxu1 %v4975_v49  ;;  %v405_v58 = vadd.f32 %v373_v16, %v4915_v10  ;;  %v401_v49 = vadd.f32 %v369_v26, %v4919_v13  ;;  %v398_v16 = vadd.f32 %v366_v56, %v4960_v38 }
  0xd1   : > { %986 = vmatpush.msra.mxu3 %v4980_v52  ;;  %856 = vmatpush.msra.mxu0 %v5028_v32  ;;  %v397_v21 = vadd.f32 %v365_v55, %v4960_v38 }
  0xd2   : > { %945 = vmatpush.msra.mxu2 %v803_v61  ;;  %710 = vmatpush.msrb.mxu1 %v5000_v1  ;;  %v361_v61 = vmul.f32 %v353_v8, %v4939_v27  ;;  %v499_v1 = vsub.f32 %v5076_v15, %v5093_v51  ;;  %4493 = vtanh.f32 %v405_v58  ;;  %v394_v58 = vadd.f32 %v362_v50, %v4962_v39 }
  0xd3   : > { %988 = vmatpush.msra.mxu3 %v5013_v20  ;;  %859 = vmatpush.msra.mxu0 %v5033_v37  ;;  %4495 = vtanh.f32 %v401_v49  ;;  %v4770_v37 = vmov 3  }
  0xd4   : > { %949 = vmatpush.msra.mxu2 %v809_v42  ;;  %712 = vmatpush.msrb.mxu1 %v5002_v12  ;;  %v5115_v12 = vand.u32 4294901760, %v499_v1  ;;  %4497 = vtanh.f32 %v397_v21 }
  0xd5   : > { %990 = vmatpush.msra.mxu3 %v5020_v25  ;;  %493 = vmatmul.f32.gmra.mxu0 %v5090_v18 }
  0xd6   : > { %894 = vmatpush.msra.mxu1 %v4954_v35  ;;  %953 = vmatpush.msra.mxu2 %v815_v46  ;;  %v393_v35 = vadd.f32 %v361_v61, %v4962_v39  ;;  %6534 = vst [vmem:[#allocation18_spill] sm:$0xff] %v5115_v12 }
  0xd7   : > { %546 = vmatmul.f32.gmra.mxu1 %v4984_v54  ;;  %638 = vmatmul.f32.gmra.mxu3 %v5061_v0 }
  0xd8   : > { %896 = vmatpush.msra.mxu1 %v4980_v52  ;;  %594 = vmatmul.f32.gmra.mxu2 %v5052_v57  ;;  %v4494_v22 = vpop.eup %4493  ;;  %4499 = vtanh.f32 %v393_v35 }
  0xd9   : > { %v4496_v23 = vpop.eup %4495  ;;  %v5121_v52 = vand.u32 4294901760, %v4494_v22  ;;  %4474 = vset.pattern.permute.xlu1 %v4770_v37  ;;  %4475 = vset.pattern.permute.xlu2 %v4770_v37  ;;  %4501 = vtanh.f32 %v406_v48 }
  0xda   : > { %898 = vmatpush.msra.mxu1 %v5013_v20  ;;  %v4498_v30 = vpop.eup %4497  ;;  %v5124_v20 = vand.u32 4294901760, %v4496_v23  ;;  %301 = vperm.xlu1 %4474, %v4903_v5   ;;  %4503 = vtanh.f32 %v402_v60 }
  0xdb   : > { %v5130_v36 = vand.u32 4294901760, %v4498_v30  ;;  %305 = vperm.xlu2 %4475, %v4896_v4   ;;  %4505 = vtanh.f32 %v398_v16 }
  0xdc   : > { %900 = vmatpush.msra.mxu1 %v5020_v25  ;;  %v5128_v25 = vsub.f32 %v4494_v22, %v5121_v52  ;;  %v5135_v41 = vsub.f32 %v4496_v23, %v5124_v20  ;;  %4507 = vtanh.f32 %v394_v58 }
  0xdd   : > { %501 = vmatmul.f32.gmra.mxu0 %v5115_v12  ;;  %v5144_v43 = vsub.f32 %v4498_v30, %v5130_v36 }
  0xde   : > { %v4500_v32 = vpop.eup %4499  ;;  %v1075_v44 = vand.u32 4294901760, %v5128_v25  ;;  %v1081_v46 = vand.u32 4294901760, %v5135_v41 }
  0xdf   : > { %550 = vmatmul.f32.gmra.mxu1 %v5035_v40  ;;  %644 = vmatmul.f32.gmra.mxu3 %v5093_v51  ;;  %v5137_v42 = vand.u32 4294901760, %v4500_v32  ;;  %v1087_v33 = vand.u32 4294901760, %v5144_v43  ;;  %v4502_v55 = vpop.eup %4501 }
  0xe0   : > { %599 = vmatmul.f32.gmra.mxu2 %v5076_v15  ;;  %v1076_v29 = vsub.f32 %v5128_v25, %v1075_v44  ;;  %v1082_v53 = vsub.f32 %v5135_v41, %v1081_v46  ;;  %v4504_v1 = vpop.eup %4503  ;;  %v5192_v21 = vand.u32 4294901760, %v4502_v55 }
  0xe1   : > { %v5151_v4 = vsub.f32 %v4500_v32, %v5137_v42  ;;  %v1088_v11 = vsub.f32 %v5144_v43, %v1087_v33  ;;  %v4506_v35 = vpop.eup %4505 }
  0xe2   : > { %309 = vperm.xlu1 %4474, %v4890_v3   ;;  %v1077_v8 = vand.u32 4294901760, %v1076_v29  ;;  %v1083_v3 = vand.u32 4294901760, %v1082_v53  ;;  %v4508_v22 = vpop.eup %4507  ;;  %v5200_v23 = vsub.f32 %v4502_v55, %v5192_v21  ;;  %v5202_v30 = vand.u32 4294901760, %v4506_v35 }
  0xe3   : > { %v1093_v59 = vand.u32 4294901760, %v5151_v4  ;;  %313 = vperm.xlu2 %4475, %v4883_v2   ;;  %v1089_v49 = vand.u32 4294901760, %v1088_v11  ;;  %v5197_v2 = vand.u32 4294901760, %v4504_v1  ;;  %v5207_v34 = vand.u32 4294901760, %v4508_v22 }
  0xe4   : > { %v1353_v37 = vand.u32 4294901760, %v5200_v23  ;;  %v5214_v6 = vsub.f32 %v4506_v35, %v5202_v30 }
  0xe5   : > { %677 = vmatmul.f32.vlgmr.msrb.gmra.mxu0 %v4934_v24  ;;  %v1094_v26 = vsub.f32 %v5151_v4, %v1093_v59  ;;  %v5205_v32 = vsub.f32 %v4504_v1, %v5197_v2  ;;  %v5219_v48 = vsub.f32 %v4508_v22, %v5207_v34 }
  0xe6   : > { %1021 = vmatpush.msrb.mxu0 %v5121_v52  ;;  %v1354_v29 = vsub.f32 %v5200_v23, %v1353_v37  ;;  %v1365_v50 = vand.u32 4294901760, %v5214_v6 }
  0xe7   : > { %554 = vmatmul.f32.gmra.mxu1 %v5063_v7  ;;  %820 = vmatmul.f32.vlgmr.msrb.gmra.mxu3 %v4934_v24  ;;  %v1095_v61 = vand.u32 4294901760, %v1094_v26  ;;  %v1359_v47 = vand.u32 4294901760, %v5205_v32  ;;  %v1371_v60 = vand.u32 4294901760, %v5219_v48 }
  0xe8   : > { %1172 = vmatpush.msrb.mxu3 %v5121_v52  ;;  %755 = vmatmul.f32.vlgmr.msrb.gmra.mxu2 %v5004_v14  ;;  %v1355_v56 = vand.u32 4294901760, %v1354_v29 }
  0xe9   : > { %1023 = vmatpush.msrb.mxu0 %v5124_v20  ;;  %1128 = vmatpush.msrb.mxu2 %v5128_v25  ;;  %v1360_v53 = vsub.f32 %v5205_v32, %v1359_v47  ;;  %v1372_v16 = vsub.f32 %v5219_v48, %v1371_v60 }
  0xea   : > { %1174 = vmatpush.msrb.mxu3 %v5124_v20 }
  0xeb   : > { %1025 = vmatpush.msrb.mxu0 %v5130_v36  ;;  %1131 = vmatpush.msrb.mxu2 %v5135_v41  ;;  %v1361_v11 = vand.u32 4294901760, %v1360_v53  ;;  %v1373_v25 = vand.u32 4294901760, %v1372_v16 }
  0xec   : > { %1176 = vmatpush.msrb.mxu3 %v5130_v36 }
  0xed   : > { %1027 = vmatpush.msrb.mxu0 %v5137_v42  ;;  %1134 = vmatpush.msrb.mxu2 %v5144_v43 }
  0xee   : > { %1178 = vmatpush.msrb.mxu3 %v5137_v42  ;;  %681 = vmatmul.f32.gmra.mxu0 %v4984_v54 }
  0xef   : > { %714 = vmatmul.f32.vlgmr.msrb.gmra.mxu1 %v4934_v24  ;;  %824 = vmatmul.f32.gmra.mxu3 %v4984_v54 }
  0xf0   : > { %1078 = vmatpush.msrb.mxu1 %v1077_v8  ;;  %1137 = vmatpush.msrb.mxu2 %v5151_v4  ;;  %v1366_v8 = vsub.f32 %v5214_v6, %v1365_v50 }
  0xf1   : > { %763 = vmatmul.f32.gmra.mxu2 %v5056_v63 }
  0xf2   : > { %1084 = vmatpush.msrb.mxu1 %v1083_v3  ;;  %v1367_v3 = vand.u32 4294901760, %v1366_v8 }
  0xf4   : > { %1090 = vmatpush.msrb.mxu1 %v1089_v49 }
  0xf6   : > { %1096 = vmatpush.msrb.mxu1 %v1095_v61  ;;  %685 = vmatmul.f32.gmra.mxu0 %v5035_v40 }
  0xf7   : > { %718 = vmatmul.f32.gmra.mxu1 %v4984_v54  ;;  %828 = vmatmul.f32.gmra.mxu3 %v5035_v40 }
  0xf9   : > { %771 = vmatmul.f32.gmra.mxu2 %v5090_v18 }
  0xfe   : > { %689 = vmatmul.f32.gmra.mxu0 %v5063_v7 }
  0xff   : > { %722 = vmatmul.f32.gmra.mxu1 %v5035_v40  ;;  %832 = vmatmul.f32.gmra.mxu3 %v5063_v7 }
 0x101   : > { %779 = vmatmul.f32.gmra.mxu2 %v5115_v12 }
 0x106   : > { %862 = vmatmul.f32.vlgmr.msra.gmra.mxu0 %v4948_v31 }
 0x107   : > { %726 = vmatmul.f32.gmra.mxu1 %v5063_v7  ;;  %992 = vmatmul.f32.vlgmr.msra.gmra.mxu3 %v4934_v24 }
 0x108   : > { %1219 = vmatpush.msra.mxu0 %v1075_v44  ;;  %1356 = vmatpush.msra.mxu3 %v1355_v56  ;;  %v4771_v44 = vmov 4  }
 0x109   : > { %955 = vmatmul.f32.vlgmr.msra.gmra.mxu2 %v4934_v24  ;;  %4476 = vset.pattern.permute.xlu0 %v4771_v44  ;;  %v5347_v56 = vpop.permute.xlu2 %268 }
 0x10a   : > { %1223 = vmatpush.msra.mxu0 %v1081_v46  ;;  %1299 = vmatpush.msra.mxu2 %v5192_v21 }
 0x10b   : > { %1362 = vmatpush.msra.mxu3 %v1361_v11  ;;  %1649 = vperm.xlu0 %4476, %v4903_v5   ;;  %v5268_v5 = vld [vmem:[%s4874_s29 + $0x4] sm:$0xf] }
 0x10c   : > { %1227 = vmatpush.msra.mxu0 %v1087_v33  ;;  %1301 = vmatpush.msra.mxu2 %v5197_v2 }
 0x10d   : > { %1368 = vmatpush.msra.mxu3 %v1367_v3 }
 0x10e   : > { %1231 = vmatpush.msra.mxu0 %v1093_v59  ;;  %1303 = vmatpush.msra.mxu2 %v5202_v30 }
 0x10f   : > { %1374 = vmatpush.msra.mxu3 %v1373_v25  ;;  %867 = vmatmul.f32.gmra.mxu0 %v4995_v62 }
 0x110   : > { %904 = vmatmul.f32.vlgmr.msra.gmra.mxu1 %v4971_v45  ;;  %996 = vmatmul.f32.gmra.mxu3 %v4984_v54 }
 0x111   : > { %1262 = vmatpush.msra.mxu1 %v5121_v52  ;;  %1305 = vmatpush.msra.mxu2 %v5207_v34  ;;  %v1694_v52 = vperm.slane %v5268_v5, 0 }
 0x112   : > { %959 = vmatmul.f32.gmra.mxu2 %v4984_v54 }
 0x113   : > { %1264 = vmatpush.msra.mxu1 %v5124_v20  ;;  %v1714_v20 = vmul.f32 %v1694_v52, %v4913_v9  ;;  %v1706_v43 = vmul.f32 %v1694_v52, %v4929_v19  ;;  %v1702_v4 = vmul.f32 %v1694_v52, %v4939_v27 }
 0x115   : > { %1266 = vmatpush.msra.mxu1 %v5130_v36  ;;  %v1710_v36 = vmul.f32 %v1694_v52, %v4926_v17  ;;  %v1746_v41 = vadd.f32 %v1714_v20, %v4915_v10  ;;  %v1738_v46 = vadd.f32 %v1706_v43, %v4960_v38  ;;  %v1734_v33 = vadd.f32 %v1702_v4, %v4962_v39 }
 0x117   : > { %1268 = vmatpush.msra.mxu1 %v5137_v42  ;;  %872 = vmatmul.f32.gmra.mxu0 %v5052_v57  ;;  %v1742_v42 = vadd.f32 %v1710_v36, %v4919_v13  ;;  %4509 = vtanh.f32 %v1746_v41 }
 0x118   : > { %910 = vmatmul.f32.gmra.mxu1 %v5023_v28  ;;  %1000 = vmatmul.f32.gmra.mxu3 %v5035_v40 }
 0x119   : > { %4511 = vtanh.f32 %v1742_v42 }
 0x11a   : > { %963 = vmatmul.f32.gmra.mxu2 %v5035_v40  ;;  %4513 = vtanh.f32 %v1738_v46 }
 0x11b   : > { %4515 = vtanh.f32 %v1734_v33 }
 0x11d   : > { %v4510_v59 = vpop.eup %4509 }
 0x11e   : > { %v5305_v49 = vand.u32 4294901760, %v4510_v59 }
 0x11f   : > { %877 = vmatmul.f32.gmra.mxu0 %v5076_v15  ;;  %v4512_v58 = vpop.eup %4511 }
 0x120   : > { %916 = vmatmul.f32.gmra.mxu1 %v5061_v0  ;;  %1004 = vmatmul.f32.gmra.mxu3 %v5063_v7  ;;  %v4514_v55 = vpop.eup %4513  ;;  %v5308_v61 = vand.u32 4294901760, %v4512_v58  ;;  %v5312_v35 = vsub.f32 %v4510_v59, %v5305_v49  ;;  %v5352_v11 = vpop.permute.xlu1 %272 }
 0x121   : > { %v4516_v1 = vpop.eup %4515 }
 0x122   : > { %967 = vmatmul.f32.gmra.mxu2 %v5063_v7 }
 0x127   : > { %1033 = vmatmul.f32.vlgmr.msrb.gmra.mxu0 %v5004_v14 }
 0x128   : > { %922 = vmatmul.f32.gmra.mxu1 %v5093_v51  ;;  %1182 = vmatmul.f32.vlgmr.msrb.gmra.mxu3 %v4971_v45 }
 0x129   : > { %1406 = vmatpush.msrb.mxu0 %v5200_v23  ;;  %1540 = vmatpush.msrb.mxu3 %v5192_v21  ;;  %v5319_v23 = vsub.f32 %v4512_v58, %v5308_v61 }
 0x12a   : > { %1140 = vmatmul.f32.vlgmr.msrb.gmra.mxu2 %v4948_v31 }
 0x12b   : > { %1409 = vmatpush.msrb.mxu0 %v5205_v32  ;;  %1497 = vmatpush.msrb.mxu2 %v1353_v37 }
 0x12c   : > { %1542 = vmatpush.msrb.mxu3 %v5197_v2 }
 0x12d   : > { %1412 = vmatpush.msrb.mxu0 %v5214_v6  ;;  %1501 = vmatpush.msrb.mxu2 %v1359_v47 }
 0x12e   : > { %1544 = vmatpush.msrb.mxu3 %v5202_v30 }
 0x12f   : > { %1415 = vmatpush.msrb.mxu0 %v5219_v48  ;;  %1505 = vmatpush.msrb.mxu2 %v1365_v50  ;;  %v6473_v48 = vand.u32 4294901760, %v5312_v35  ;;  %v6472_v50 = vand.u32 4294901760, %v5319_v23 }
 0x130   : > { %1546 = vmatpush.msrb.mxu3 %v5207_v34  ;;  %1041 = vmatmul.f32.gmra.mxu0 %v5056_v63 }
 0x131   : > { %1098 = vmatmul.f32.vlgmr.msrb.gmra.mxu1 %v4934_v24  ;;  %1188 = vmatmul.f32.gmra.mxu3 %v5023_v28  ;;  %v1850_v8 = vsub.f32 %v5312_v35, %v6473_v48  ;;  %v1856_v25 = vsub.f32 %v5319_v23, %v6472_v50 }
 0x132   : > { %1450 = vmatpush.msrb.mxu1 %v5192_v21  ;;  %1509 = vmatpush.msrb.mxu2 %v1371_v60  ;;  %v1695_v21 = vperm.slane %v5268_v5, 1 }
 0x133   : > { %1145 = vmatmul.f32.gmra.mxu2 %v4995_v62  ;;  %v1851_v42 = vand.u32 4294901760, %v1850_v8  ;;  %v1857_v59 = vand.u32 4294901760, %v1856_v25 }
 0x134   : > { %1452 = vmatpush.msrb.mxu1 %v5197_v2  ;;  %v5314_v2 = vand.u32 4294901760, %v4514_v55  ;;  %v1715_v37 = vmul.f32 %v1695_v21, %v4913_v9  ;;  %v1711_v53 = vmul.f32 %v1695_v21, %v4926_v17  ;;  %v1707_v3 = vmul.f32 %v1695_v21, %v4929_v19 }
 0x135   : > { %v1703_v36 = vmul.f32 %v1695_v21, %v4939_v27 }
 0x136   : > { %1454 = vmatpush.msrb.mxu1 %v5202_v30  ;;  %v5321_v30 = vand.u32 4294901760, %v4516_v1  ;;  %v5332_v47 = vsub.f32 %v4514_v55, %v5314_v2  ;;  %v1747_v60 = vadd.f32 %v1715_v37, %v4915_v10  ;;  %v1743_v20 = vadd.f32 %v1711_v53, %v4919_v13  ;;  %v5382_v37 = vpop.permute.xlu2 %276 }
 0x137   : > { %v1739_v4 = vadd.f32 %v1707_v3, %v4960_v38 }
 0x138   : > { %1456 = vmatpush.msrb.mxu1 %v5207_v34  ;;  %1049 = vmatmul.f32.gmra.mxu0 %v5090_v18  ;;  %v5339_v29 = vsub.f32 %v4516_v1, %v5321_v30  ;;  %v6471_v16 = vand.u32 4294901760, %v5332_v47  ;;  %4517 = vtanh.f32 %v1747_v60  ;;  %v1735_v1 = vadd.f32 %v1703_v36, %v4962_v39 }
 0x139   : > { %1102 = vmatmul.f32.gmra.mxu1 %v4984_v54  ;;  %1194 = vmatmul.f32.gmra.mxu3 %v5061_v0  ;;  %4519 = vtanh.f32 %v1743_v20 }
 0x13a   : > { %v6470_v44 = vand.u32 4294901760, %v5339_v29  ;;  %v1862_v43 = vsub.f32 %v5332_v47, %v6471_v16  ;;  %4521 = vtanh.f32 %v1739_v4 }
 0x13b   : > { %1150 = vmatmul.f32.gmra.mxu2 %v5052_v57  ;;  %4523 = vtanh.f32 %v1735_v1 }
 0x13c   : > { %v1868_v55 = vsub.f32 %v5339_v29, %v6470_v44 }
 0x13e   : > { %v4518_v53 = vpop.eup %4517  ;;  %v1869_v8 = vand.u32 4294901760, %v1868_v55 }
 0x13f   : > { %v5300_v26 = vpop.f32.mrf.mxu0  ;;  %v4520_v20 = vpop.eup %4519 }
 0x140   : > { %1057 = vmatmul.f32.gmra.mxu0 %v5115_v12  ;;  %v4522_v4 = vpop.eup %4521 }
 0x141   : > { %1106 = vmatmul.f32.gmra.mxu1 %v5035_v40  ;;  %1200 = vmatmul.f32.gmra.mxu3 %v5093_v51 }
 0x143   : > { %1155 = vmatmul.f32.gmra.mxu2 %v5076_v15 }
 0x146   : > { %v5316_v22 = vpop.f32.mrf.mxu3 }
 0x148   : > { %1233 = vmatmul.f32.vlgmr.msra.gmra.mxu0 %v4934_v24  ;;  %v5324_v34 = vpop.f32.mrf.mxu2 }
 0x149   : > { %v486_v32 = vpop.f32.mrf.mxu0  ;;  %1110 = vmatmul.f32.gmra.mxu1 %v5063_v7  ;;  %1376 = vmatmul.f32.vlgmr.msra.gmra.mxu3 %v4934_v24  ;;  %v5329_v6 = vpop.f32.mrf.mxu1 }
 0x14a   : > { %1795 = vmatpush.msra.mxu0 %v5305_v49  ;;  %1946 = vmatpush.msra.mxu3 %v5305_v49  ;;  %v487_v41 = vadd.f32 %v486_v32, %v5352_v11  ;;  %v1863_v32 = vand.u32 4294901760, %v1862_v43 }
 0x14b   : > { %1311 = vmatmul.f32.vlgmr.msra.gmra.mxu2 %v5004_v14 }
 0x14c   : > { %1797 = vmatpush.msra.mxu0 %v5308_v61  ;;  %1902 = vmatpush.msra.mxu2 %v5312_v35 }
 0x14d   : > { %1948 = vmatpush.msra.mxu3 %v5308_v61 }
 0x14e   : > { %1799 = vmatpush.msra.mxu0 %v5314_v2  ;;  %1905 = vmatpush.msra.mxu2 %v5319_v23 }
 0x14f   : > { %1950 = vmatpush.msra.mxu3 %v5314_v2 }
 0x150   : > { %v633_v52 = vpop.f32.mrf.mxu3  ;;  %1801 = vmatpush.msra.mxu0 %v5321_v30  ;;  %1908 = vmatpush.msra.mxu2 %v5332_v47 }
 0x151   : > { %1952 = vmatpush.msra.mxu3 %v5321_v30  ;;  %1237 = vmatmul.f32.gmra.mxu0 %v4984_v54 }
 0x152   : > { %1270 = vmatmul.f32.vlgmr.msra.gmra.mxu1 %v4934_v24  ;;  %1380 = vmatmul.f32.gmra.mxu3 %v4984_v54  ;;  %v494_v46 = vpop.f32.mrf.mxu0  ;;  %v590_v33 = vpop.f32.mrf.mxu2 }
 0x153   : > { %1852 = vmatpush.msra.mxu1 %v1851_v42  ;;  %1911 = vmatpush.msra.mxu2 %v5339_v29  ;;  %v495_v25 = vadd.f32 %v494_v46, %v5382_v37  ;;  %v4524_v46 = vpop.eup %4523 }
 0x154   : > { %v547_v58 = vpop.f32.mrf.mxu1  ;;  %1319 = vmatmul.f32.gmra.mxu2 %v5056_v63  ;;  %v5408_v44 = vand.u32 4294901760, %v4524_v46 }
 0x155   : > { %v548_v21 = vadd.f32 %v547_v58, %v487_v41  ;;  %1858 = vmatpush.msra.mxu1 %v1857_v59  ;;  %v5388_v41 = vand.u32 4294901760, %v4518_v53  ;;  %v5393_v59 = vand.u32 4294901760, %v4520_v20  ;;  %v5395_v58 = vpop.permute.xlu0 %280 }
 0x156   : > { %6535 = vst [vmem:[#allocation19_spill] sm:$0xff] %v5395_v58 }
 0x157   : > { %v591_v60 = vadd.f32 %v590_v33, %v548_v21  ;;  %1864 = vmatpush.msra.mxu1 %v1863_v32  ;;  %v5398_v55 = vsub.f32 %v4518_v53, %v5388_v41  ;;  %v5400_v21 = vand.u32 4294901760, %v4522_v4 }
 0x159   : > { %v5384_v3 = vadd.f32 %v633_v52, %v591_v60  ;;  %1870 = vmatpush.msra.mxu1 %v1869_v8  ;;  %1241 = vmatmul.f32.gmra.mxu0 %v5035_v40  ;;  %v5406_v8 = vsub.f32 %v4520_v20, %v5393_v59 }
 0x15a   : > { %v639_v36 = vpop.f32.mrf.mxu3  ;;  %1274 = vmatmul.f32.gmra.mxu1 %v4984_v54  ;;  %1384 = vmatmul.f32.gmra.mxu3 %v5035_v40  ;;  %v502_v42 = vpop.f32.mrf.mxu0 }
 0x15b   : > { %v595_v43 = vpop.f32.mrf.mxu2  ;;  %v503_v60 = vadd.f32 %v502_v42, %v5395_v58 }
 0x15c   : > { %v551_v33 = vpop.f32.mrf.mxu1  ;;  %1327 = vmatmul.f32.gmra.mxu2 %v5090_v18 }
 0x15d   : > { %v552_v52 = vadd.f32 %v551_v33, %v495_v25  ;;  %v6475_v25 = vand.u32 4294901760, %v5398_v55 }
 0x15f   : > { %v596_v1 = vadd.f32 %v595_v43, %v552_v52  ;;  %v5417_v43 = vsub.f32 %v4522_v4, %v5400_v21  ;;  %v6474_v52 = vand.u32 4294901760, %v5406_v8  ;;  %v2128_v16 = vsub.f32 %v5398_v55, %v6475_v25 }
 0x161   : > { %v5402_v32 = vadd.f32 %v639_v36, %v596_v1  ;;  %1245 = vmatmul.f32.gmra.mxu0 %v5063_v7  ;;  %v5422_v1 = vsub.f32 %v4524_v46, %v5408_v44  ;;  %v6477_v48 = vand.u32 4294901760, %v5417_v43  ;;  %v2134_v4 = vsub.f32 %v5406_v8, %v6474_v52 }
 0x162   : > { %v645_v33 = vpop.f32.mrf.mxu3  ;;  %1278 = vmatmul.f32.gmra.mxu1 %v5035_v40  ;;  %1388 = vmatmul.f32.gmra.mxu3 %v5063_v7  ;;  %v5414_v53 = vpop.f32.mrf.mxu0 }
 0x163   : > { %6536 = vst [vmem:[#allocation20_spill] sm:$0xff] %v5402_v32  ;;  %v600_v36 = vpop.f32.mrf.mxu2  ;;  %v2135_v52 = vand.u32 4294901760, %v2134_v4 }
 0x164   : > { %v555_v42 = vpop.f32.mrf.mxu1  ;;  %1335 = vmatmul.f32.gmra.mxu2 %v5115_v12 }
 0x165   : > { %v556_v20 = vadd.f32 %v555_v42, %v503_v60  ;;  %v6476_v60 = vand.u32 4294901760, %v5422_v1  ;;  %v2129_v42 = vand.u32 4294901760, %v2128_v16 }
 0x167   : > { %v601_v50 = vadd.f32 %v600_v36, %v556_v20  ;;  %v2140_v36 = vsub.f32 %v5417_v43, %v6477_v48  ;;  %v2146_v25 = vsub.f32 %v5422_v1, %v6476_v60 }
 0x169   : > { %v5428_v32 = vadd.f32 %v645_v33, %v601_v50  ;;  %1418 = vmatmul.f32.vlgmr.msrb.gmra.mxu0 %v4948_v31  ;;  %v6538_v50 = vand.u32 4294901760, %v5312_v35  ;;  %v2141_v35 = vand.u32 4294901760, %v2140_v36  ;;  %v2147_v4 = vand.u32 4294901760, %v2146_v25 }
 0x16a   : > { %v821_v46 = vpop.f32.mrf.mxu3  ;;  %1282 = vmatmul.f32.gmra.mxu1 %v5063_v7  ;;  %1548 = vmatmul.f32.vlgmr.msrb.gmra.mxu3 %v4934_v24 }
 0x16b   : > { %6537 = vst [vmem:[#allocation21_spill] sm:$0xff] %v5428_v32  ;;  %1993 = vmatpush.msrb.mxu0 %v6538_v50  ;;  %2130 = vmatpush.msrb.mxu3 %v2129_v42  ;;  %v5442_v33 = vpop.f32.mrf.mxu0  ;;  %v756_v20 = vpop.f32.mrf.mxu2  ;;  %v6539_v32 = vand.u32 4294901760, %v5319_v23  ;;  %v6540_v42 = vand.u32 4294901760, %v5332_v47  ;;  %v6541_v50 = vand.u32 4294901760, %v5339_v29 }
 0x16c   : > { %1511 = vmatmul.f32.vlgmr.msrb.gmra.mxu2 %v4934_v24  ;;  %v5445_v16 = vpop.f32.mrf.mxu1 }
 0x16d   : > { %1997 = vmatpush.msrb.mxu0 %v6539_v32  ;;  %2073 = vmatpush.msrb.mxu2 %v5388_v41 }
 0x16e   : > { %2136 = vmatpush.msrb.mxu3 %v2135_v52 }
 0x16f   : > { %2001 = vmatpush.msrb.mxu0 %v6540_v42  ;;  %2075 = vmatpush.msrb.mxu2 %v5393_v59  ;;  %v757_v42 = vadd.f32 %v756_v20, %v5347_v56  ;;  %v1696_v20 = vperm.slane %v5268_v5, 2 }
 0x170   : > { %2142 = vmatpush.msrb.mxu3 %v2141_v35 }
 0x171   : > { %2005 = vmatpush.msrb.mxu0 %v6541_v50  ;;  %2077 = vmatpush.msrb.mxu2 %v5400_v21 }
 0x172   : > { %2148 = vmatpush.msrb.mxu3 %v2147_v4  ;;  %1423 = vmatmul.f32.gmra.mxu0 %v4995_v62  ;;  %v825_v23 = vpop.f32.mrf.mxu3  ;;  %v822_v4 = vadd.f32 %v821_v46, %v757_v42  ;;  %v6544_v42 = vand.u32 4294901760, %v5398_v55 }
 0x173   : > { %1460 = vmatmul.f32.vlgmr.msrb.gmra.mxu1 %v4971_v45  ;;  %1552 = vmatmul.f32.gmra.mxu3 %v4984_v54  ;;  %v5462_v32 = vpop.f32.mrf.mxu0 }
 0x174   : > { %2036 = vmatpush.msrb.mxu1 %v5305_v49  ;;  %2079 = vmatpush.msrb.mxu2 %v5408_v44  ;;  %v5466_v47 = vpop.f32.mrf.mxu1  ;;  %v764_v29 = vpop.f32.mrf.mxu2 }
 0x175   : > { %1515 = vmatmul.f32.gmra.mxu2 %v4984_v54  ;;  %v765_v46 = vadd.f32 %v764_v29, %v5352_v11  ;;  %v6546_v29 = vand.u32 4294901760, %v5417_v43 }
 0x176   : > { %2038 = vmatpush.msrb.mxu1 %v5308_v61 }
 0x178   : > { %2040 = vmatpush.msrb.mxu1 %v5314_v2 }
 0x17a   : > { %2042 = vmatpush.msrb.mxu1 %v5321_v30  ;;  %1428 = vmatmul.f32.gmra.mxu0 %v5052_v57  ;;  %v5473_v25 = vpop.f32.mrf.mxu3 }
 0x17b   : > { %1466 = vmatmul.f32.gmra.mxu1 %v5023_v28  ;;  %1556 = vmatmul.f32.gmra.mxu3 %v5035_v40  ;;  %v5477_v49 = vpop.f32.mrf.mxu0 }
 0x17c   : > { %6542 = vst [vmem:[#allocation22_spill] sm:$0xff] %v5477_v49  ;;  %v5479_v52 = vpop.f32.mrf.mxu1  ;;  %v772_v36 = vpop.f32.mrf.mxu2 }
 0x17d   : > { %1519 = vmatmul.f32.gmra.mxu2 %v5035_v40 }
 0x182   : > { %1433 = vmatmul.f32.gmra.mxu0 %v5076_v15  ;;  %v5483_v61 = vpop.f32.mrf.mxu3 }
 0x183   : > { %1472 = vmatmul.f32.gmra.mxu1 %v5061_v0  ;;  %1560 = vmatmul.f32.gmra.mxu3 %v5063_v7  ;;  %v863_v2 = vpop.f32.mrf.mxu0 }
 0x184   : > { %v5487_v30 = vpop.f32.mrf.mxu1  ;;  %v5489_v35 = vpop.f32.mrf.mxu2  ;;  %v864_v60 = vadd.f32 %v863_v2, %v822_v4  ;;  %v6545_v2 = vand.u32 4294901760, %v5406_v8 }
 0x185   : > { %6543 = vst [vmem:[#allocation23_spill] sm:$0xff] %v5487_v30  ;;  %1523 = vmatmul.f32.gmra.mxu2 %v5063_v7 }
 0x18a   : > { %1807 = vmatmul.f32.vlgmr.msra.gmra.mxu0 %v5004_v14  ;;  %v993_v50 = vpop.f32.mrf.mxu3  ;;  %v826_v14 = vadd.f32 %v825_v23, %v765_v46 }
 0x18b   : > { %1478 = vmatmul.f32.gmra.mxu1 %v5093_v51  ;;  %1956 = vmatmul.f32.vlgmr.msra.gmra.mxu3 %v4971_v45 }
 0x18c   : > { %2180 = vmatpush.msra.mxu0 %v5398_v55  ;;  %2314 = vmatpush.msra.mxu3 %v5388_v41  ;;  %v868_v48 = vpop.f32.mrf.mxu0  ;;  %v956_v30 = vpop.f32.mrf.mxu2 }
 0x18d   : > { %1914 = vmatmul.f32.vlgmr.msra.gmra.mxu2 %v4948_v31  ;;  %v905_v49 = vpop.f32.mrf.mxu1  ;;  %v1716_v31 = vmul.f32 %v1696_v20, %v4913_v9 }
 0x18e   : > { %2183 = vmatpush.msra.mxu0 %v5406_v8  ;;  %2271 = vmatpush.msra.mxu2 %v6544_v42  ;;  %v906_v45 = vadd.f32 %v905_v49, %v864_v60  ;;  %v1712_v8 = vmul.f32 %v1696_v20, %v4926_v17  ;;  %v869_v49 = vadd.f32 %v868_v48, %v826_v14 }
 0x18f   : > { %2316 = vmatpush.msra.mxu3 %v5393_v59  ;;  %v1748_v46 = vadd.f32 %v1716_v31, %v4915_v10  ;;  %v773_v42 = vadd.f32 %v772_v36, %v5382_v37  ;;  %v1704_v48 = vmul.f32 %v1696_v20, %v4939_v27 }
 0x190   : > { %2186 = vmatpush.msra.mxu0 %v5417_v43  ;;  %2275 = vmatpush.msra.mxu2 %v6545_v2  ;;  %v957_v4 = vadd.f32 %v956_v30, %v906_v45  ;;  %v479_v45 = vadd.f32 %v5300_v26, %v5347_v56  ;;  %v6547_v43 = vand.u32 4294901760, %v5422_v1  ;;  %v1744_v14 = vadd.f32 %v1712_v8, %v4919_v13 }
 0x191   : > { %2318 = vmatpush.msra.mxu3 %v5400_v21  ;;  %4525 = vtanh.f32 %v1748_v46  ;;  %v830_v31 = vadd.f32 %v5473_v25, %v773_v42  ;;  %v5547_v46 = vpop.permute.xlu2 %305 }
 0x192   : > { %2189 = vmatpush.msra.mxu0 %v5422_v1  ;;  %2279 = vmatpush.msra.mxu2 %v6546_v29  ;;  %v994_v55 = vadd.f32 %v993_v50, %v957_v4  ;;  %v1708_v1 = vmul.f32 %v1696_v20, %v4929_v19 }
 0x193   : > { %2320 = vmatpush.msra.mxu3 %v5408_v44  ;;  %1815 = vmatmul.f32.gmra.mxu0 %v5056_v63  ;;  %v997_v60 = vpop.f32.mrf.mxu3 }
 0x194   : > { %1872 = vmatmul.f32.vlgmr.msra.gmra.mxu1 %v4934_v24  ;;  %1962 = vmatmul.f32.gmra.mxu3 %v5023_v28  ;;  %v873_v23 = vpop.f32.mrf.mxu0  ;;  %4527 = vtanh.f32 %v994_v55  ;;  %v1740_v4 = vadd.f32 %v1708_v1, %v4960_v38 }
 0x195   : > { %2224 = vmatpush.msra.mxu1 %v5388_v41  ;;  %2283 = vmatpush.msra.mxu2 %v6547_v43  ;;  %v911_v30 = vpop.f32.mrf.mxu1  ;;  %v960_v50 = vpop.f32.mrf.mxu2  ;;  %v544_v41 = vadd.f32 %v5329_v6, %v479_v45  ;;  %4529 = vtanh.f32 %v1744_v14  ;;  %v1736_v6 = vadd.f32 %v1704_v48, %v4962_v39  ;;  %v874_v20 = vadd.f32 %v873_v23, %v830_v31 }
 0x196   : > { %1919 = vmatmul.f32.gmra.mxu2 %v4995_v62  ;;  %v912_v26 = vadd.f32 %v911_v30, %v869_v49  ;;  %v683_v14 = vadd.f32 %v5442_v33, %v5384_v3 }
 0x197   : > { %2226 = vmatpush.msra.mxu1 %v5393_v59  ;;  %v586_v29 = vadd.f32 %v5324_v34, %v544_v41  ;;  %v4526_v8 = vpop.eup %4525 }
 0x198   : > { %v961_v2 = vadd.f32 %v960_v50, %v912_v26  ;;  %v5545_v50 = vpop.permute.xlu1 %301  ;;  %v5550_v26 = vand.u32 4294901760, %v4526_v8  ;;  %v720_v33 = vadd.f32 %v5466_v47, %v683_v14 }
 0x199   : > { %2228 = vmatpush.msra.mxu1 %v5400_v21  ;;  %v628_v34 = vadd.f32 %v5316_v22, %v586_v29 }
 0x19a   : > { %v998_v36 = vadd.f32 %v997_v60, %v961_v2  ;;  %v4528_v45 = vpop.eup %4527 }
 0x19b   : > { %2230 = vmatpush.msra.mxu1 %v5408_v44  ;;  %1823 = vmatmul.f32.gmra.mxu0 %v5090_v18  ;;  %v1001_v59 = vpop.f32.mrf.mxu3  ;;  %v781_v44 = vadd.f32 %v5489_v35, %v5395_v58  ;;  %v4530_v23 = vpop.eup %4529  ;;  %v679_v30 = vadd.f32 %v5414_v53, %v628_v34  ;;  %v1597_v48 = vmul.f32 %v4528_v45, %v5545_v50 }
 0x19c   : > { %1876 = vmatmul.f32.gmra.mxu1 %v4984_v54  ;;  %1968 = vmatmul.f32.gmra.mxu3 %v5061_v0  ;;  %4531 = vtanh.f32 %v998_v36  ;;  %v878_v21 = vpop.f32.mrf.mxu0  ;;  %v5560_v31 = vand.u32 4294901760, %v4530_v23 }
 0x19d   : > { %v917_v25 = vpop.f32.mrf.mxu1  ;;  %v964_v55 = vpop.f32.mrf.mxu2  ;;  %4533 = vtanh.f32 %v1740_v4  ;;  %v834_v35 = vadd.f32 %v5483_v61, %v781_v44  ;;  %v716_v2 = vadd.f32 %v5445_v16, %v679_v30  ;;  %v5565_v16 = vsub.f32 %v4526_v8, %v5550_v26  ;;  %v6548_v8 = vld [vmem:[#allocation20_spill] sm:$0xff] }
 0x19e   : > { %1924 = vmatmul.f32.gmra.mxu2 %v5052_v57  ;;  %v918_v60 = vadd.f32 %v917_v25, %v874_v20  ;;  %4535 = vtanh.f32 %v1736_v6  ;;  %v1697_v20 = vperm.slane %v5268_v5, 3  ;;  %v5571_v25 = vsub.f32 %v4530_v23, %v5560_v31 }
 0x19f   : > { %v879_v1 = vadd.f32 %v878_v21, %v834_v35  ;;  %v6487_v45 = vand.u32 4294901760, %v5565_v16  ;;  %v687_v34 = vadd.f32 %v5462_v32, %v6548_v8  ;;  %v6550_v8 = vld [vmem:[#allocation21_spill] sm:$0xff] }
 0x1a0   : > { %v965_v49 = vadd.f32 %v964_v55, %v918_v60  ;;  %v5575_v44 = vpop.permute.xlu1 %309  ;;  %v6484_v32 = vand.u32 4294901760, %v5571_v25 }
 0x1a2   : > { %v4532_v43 = vpop.eup %4531  ;;  %v1002_v42 = vadd.f32 %v1001_v59, %v965_v49 }
 0x1a3   : > { %v1601_v22 = vmul.f32 %v4532_v43, %v5547_v46  ;;  %1831 = vmatmul.f32.gmra.mxu0 %v5115_v12  ;;  %v1005_v41 = vpop.f32.mrf.mxu3  ;;  %v4534_v53 = vpop.eup %4533  ;;  %v1717_v43 = vmul.f32 %v1697_v20, %v4913_v9 }
 0x1a4   : > { %1880 = vmatmul.f32.gmra.mxu1 %v5035_v40  ;;  %1974 = vmatmul.f32.gmra.mxu3 %v5093_v51  ;;  %4537 = vtanh.f32 %v1002_v42  ;;  %v1034_v61 = vpop.f32.mrf.mxu0  ;;  %v4536_v3 = vpop.eup %4535  ;;  %v5567_v29 = vand.u32 4294901760, %v4534_v53  ;;  %v724_v42 = vadd.f32 %v5479_v52, %v687_v34  ;;  %v6551_v34 = vld [vmem:[#allocation22_spill] sm:$0xff] }
 0x1a5   : > { %v1621_v36 = vadd.f32 %v1601_v22, %v1597_v48  ;;  %v923_v4 = vpop.f32.mrf.mxu1  ;;  %v968_v59 = vpop.f32.mrf.mxu2  ;;  %4539 = vtanh.f32 %v716_v2  ;;  %v5573_v55 = vand.u32 4294901760, %v4536_v3  ;;  %v1035_v5 = vadd.f32 %v1034_v61, %v5347_v56  ;;  %v6549_v2 = vld [vmem:[#allocation17_spill] sm:$0xff] }
 0x1a6   : > { %1929 = vmatmul.f32.gmra.mxu2 %v5076_v15  ;;  %v924_v6 = vadd.f32 %v923_v4, %v879_v1  ;;  %4541 = vtanh.f32 %v720_v33  ;;  %v5587_v30 = vsub.f32 %v4534_v53, %v5567_v29  ;;  %v1713_v53 = vmul.f32 %v1697_v20, %v4926_v17 }
 0x1a7   : > { %v5590_v35 = vsub.f32 %v4536_v3, %v5573_v55  ;;  %v1749_v52 = vadd.f32 %v1717_v43, %v4915_v10  ;;  %v2406_v33 = vsub.f32 %v5565_v16, %v6487_v45 }
 0x1a8   : > { %v969_v21 = vadd.f32 %v968_v59, %v924_v6  ;;  %v6486_v4 = vand.u32 4294901760, %v5587_v30  ;;  %v1745_v43 = vadd.f32 %v1713_v53, %v4919_v13 }
 0x1a9   : > { %v6485_v59 = vand.u32 4294901760, %v5590_v35  ;;  %v2407_v53 = vand.u32 4294901760, %v2406_v33 }
 0x1aa   : > { %v4538_v47 = vpop.eup %4537  ;;  %v1006_v60 = vadd.f32 %v1005_v41, %v969_v21  ;;  %v1709_v21 = vmul.f32 %v1697_v20, %v4929_v19 }
 0x1ab   : > { %v1605_v49 = vmul.f32 %v4538_v47, %v5575_v44  ;;  %2007 = vmatmul.f32.vlgmr.msrb.gmra.mxu0 %v4934_v24  ;;  %v1183_v23 = vpop.f32.mrf.mxu3  ;;  %v4540_v41 = vpop.eup %4539  ;;  %v1705_v47 = vmul.f32 %v1697_v20, %v4939_v27 }
 0x1ac   : > { %1884 = vmatmul.f32.gmra.mxu1 %v5063_v7  ;;  %2150 = vmatmul.f32.vlgmr.msrb.gmra.mxu3 %v4934_v24  ;;  %4543 = vtanh.f32 %v1006_v60  ;;  %v4542_v61 = vpop.eup %4541 }
 0x1ad   : > { %v1622_v14 = vadd.f32 %v1621_v36, %v1605_v49  ;;  %2351 = vmatpush.msrb.mxu0 %v5550_v26  ;;  %2502 = vmatpush.msrb.mxu3 %v5550_v26  ;;  %v1042_v48 = vpop.f32.mrf.mxu0  ;;  %v1141_v22 = vpop.f32.mrf.mxu2  ;;  %v2412_v36 = vsub.f32 %v5571_v25, %v6484_v32  ;;  %4545 = vtanh.f32 %v724_v42  ;;  %v691_v49 = vadd.f32 %v6551_v34, %v6550_v8  ;;  %v6552_v8 = vld [vmem:[#allocation23_spill] sm:$0xff] }
 0x1ae   : > { %2085 = vmatmul.f32.vlgmr.msrb.gmra.mxu2 %v6549_v2  ;;  %v1099_v1 = vpop.f32.mrf.mxu1  ;;  %v1596_v42 = vmul.f32 %v4540_v41, %v5545_v50  ;;  %4547 = vtanh.f32 %v1749_v52  ;;  %v2418_v41 = vsub.f32 %v5587_v30, %v6486_v4 }
 0x1af   : > { %2353 = vmatpush.msrb.mxu0 %v5560_v31  ;;  %2458 = vmatpush.msrb.mxu2 %v5565_v16  ;;  %v1100_v3 = vadd.f32 %v1099_v1, %v1035_v5  ;;  %v5616_v5 = vpop.permute.xlu2 %313  ;;  %v1600_v1 = vmul.f32 %v4542_v61, %v5547_v46  ;;  %v728_v34 = vadd.f32 %v6552_v8, %v691_v49  ;;  %v2413_v52 = vand.u32 4294901760, %v2412_v36 }
 0x1b0   : > { %2504 = vmatpush.msrb.mxu3 %v5560_v31  ;;  %4549 = vtanh.f32 %v1745_v43  ;;  %v1737_v49 = vadd.f32 %v1705_v47, %v4962_v39  ;;  %v6555_v39 = vand.u32 4294901760, %v5571_v25 }
 0x1b1   : > { %2355 = vmatpush.msrb.mxu0 %v5567_v29  ;;  %2461 = vmatpush.msrb.mxu2 %v5571_v25  ;;  %v1142_v6 = vadd.f32 %v1141_v22, %v1100_v3  ;;  %v1043_v3 = vadd.f32 %v1042_v48, %v5352_v11  ;;  %v1612_v48 = vadd.f32 %v1600_v1, %v1596_v42  ;;  %v2419_v1 = vand.u32 4294901760, %v2418_v41 }
 0x1b2   : > { %v4544_v60 = vpop.eup %4543  ;;  %2506 = vmatpush.msrb.mxu3 %v5567_v29 }
 0x1b3   : > { %v1609_v22 = vmul.f32 %v4544_v60, %v5616_v5  ;;  %2357 = vmatpush.msrb.mxu0 %v5573_v55  ;;  %2464 = vmatpush.msrb.mxu2 %v5587_v30  ;;  %v5626_v20 = vadd.f32 %v1183_v23, %v1142_v6  ;;  %v1741_v60 = vadd.f32 %v1709_v21, %v4960_v38  ;;  %v6557_v38 = vand.u32 4294901760, %v5590_v35 }
 0x1b4   : > { %2508 = vmatpush.msrb.mxu3 %v5573_v55  ;;  %2011 = vmatmul.f32.gmra.mxu0 %v4984_v54  ;;  %v1189_v61 = vpop.f32.mrf.mxu3  ;;  %v2424_v6 = vsub.f32 %v5590_v35, %v6485_v59 }
 0x1b5   : > { %v5635_v32 = vadd.f32 %v1622_v14, %v1609_v22  ;;  %2044 = vmatmul.f32.vlgmr.msrb.gmra.mxu1 %v4934_v24  ;;  %2154 = vmatmul.f32.gmra.mxu3 %v4984_v54  ;;  %v1050_v23 = vpop.f32.mrf.mxu0  ;;  %v4546_v14 = vpop.eup %4545  ;;  %4551 = vtanh.f32 %v1741_v60 }
 0x1b6   : > { %2408 = vmatpush.msrb.mxu1 %v2407_v53  ;;  %2467 = vmatpush.msrb.mxu2 %v5590_v35  ;;  %v1103_v33 = vpop.f32.mrf.mxu1  ;;  %v1146_v21 = vpop.f32.mrf.mxu2  ;;  %4553 = vtanh.f32 %v728_v34  ;;  %v2425_v36 = vand.u32 4294901760, %v2424_v6  ;;  %v1604_v8 = vmul.f32 %v4546_v14, %v5575_v44  ;;  %v1051_v59 = vadd.f32 %v1050_v23, %v5382_v37 }
 0x1b7   : > { %2093 = vmatmul.f32.gmra.mxu2 %v5056_v63  ;;  %v1104_v42 = vadd.f32 %v1103_v33, %v1043_v3  ;;  %v4548_v22 = vpop.eup %4547  ;;  %4555 = vtanh.f32 %v1737_v49 }
 0x1b8   : > { %2414 = vmatpush.msrb.mxu1 %v2413_v52  ;;  %v4550_v47 = vpop.eup %4549  ;;  %v5650_v52 = vand.u32 4294901760, %v4548_v22  ;;  %v1613_v41 = vadd.f32 %v1612_v48, %v1604_v8 }
 0x1b9   : > { %v1147_v53 = vadd.f32 %v1146_v21, %v1104_v42  ;;  %v5655_v23 = vand.u32 4294901760, %v4550_v47 }
 0x1ba   : > { %2420 = vmatpush.msrb.mxu1 %v2419_v1  ;;  %v5658_v14 = vsub.f32 %v4548_v22, %v5650_v52 }
 0x1bb   : > { %v5647_v43 = vadd.f32 %v1189_v61, %v1147_v53  ;;  %v4552_v34 = vpop.eup %4551  ;;  %v5667_v8 = vsub.f32 %v4550_v47, %v5655_v23 }
 0x1bc   : > { %2426 = vmatpush.msrb.mxu1 %v2425_v36  ;;  %2015 = vmatmul.f32.gmra.mxu0 %v5035_v40  ;;  %v1195_v3 = vpop.f32.mrf.mxu3  ;;  %v4554_v21 = vpop.eup %4553  ;;  %v5660_v48 = vand.u32 4294901760, %v4552_v34 }
 0x1bd   : > { %2048 = vmatmul.f32.gmra.mxu1 %v4984_v54  ;;  %2158 = vmatmul.f32.gmra.mxu3 %v5035_v40  ;;  %v1058_v60 = vpop.f32.mrf.mxu0  ;;  %v4556_v49 = vpop.eup %4555  ;;  %v1608_v1 = vmul.f32 %v4554_v21, %v5616_v5 }
 0x1be   : > { %v1107_v33 = vpop.f32.mrf.mxu1  ;;  %v1151_v6 = vpop.f32.mrf.mxu2  ;;  %v1059_v53 = vadd.f32 %v1058_v60, %v5395_v58  ;;  %v5669_v4 = vand.u32 4294901760, %v4556_v49 }
 0x1bf   : > { %2101 = vmatmul.f32.gmra.mxu2 %v5090_v18  ;;  %v1108_v61 = vadd.f32 %v1107_v33, %v1051_v59  ;;  %v6493_v59 = vand.u32 4294901760, %v5658_v14  ;;  %v5673_v33 = vadd.f32 %v1613_v41, %v1608_v1 }
 0x1c1   : > { %v1152_v42 = vadd.f32 %v1151_v6, %v1108_v61  ;;  %v6492_v61 = vand.u32 4294901760, %v5667_v8  ;;  %v2684_v41 = vsub.f32 %v5658_v14, %v6493_v59 }
 0x1c3   : > { %v5664_v36 = vadd.f32 %v1195_v3, %v1152_v42  ;;  %v5678_v3 = vsub.f32 %v4552_v34, %v5660_v48  ;;  %v5683_v42 = vsub.f32 %v4556_v49, %v5669_v4  ;;  %v2690_v34 = vsub.f32 %v5667_v8, %v6492_v61 }
 0x1c4   : > { %2019 = vmatmul.f32.gmra.mxu0 %v5063_v7  ;;  %v1201_v22 = vpop.f32.mrf.mxu3 }
 0x1c5   : > { %2052 = vmatmul.f32.gmra.mxu1 %v5035_v40  ;;  %2162 = vmatmul.f32.gmra.mxu3 %v5063_v7  ;;  %v1234_v6 = vpop.f32.mrf.mxu0  ;;  %v6496_v45 = vand.u32 4294901760, %v5678_v3 }
 0x1c6   : > { %v1111_v60 = vpop.f32.mrf.mxu1  ;;  %v1156_v47 = vpop.f32.mrf.mxu2 }
 0x1c7   : > { %2109 = vmatmul.f32.gmra.mxu2 %v5115_v12  ;;  %v1112_v21 = vadd.f32 %v1111_v60, %v1059_v53  ;;  %v2701_v53 = vand.u32 4294901760, %v5683_v42  ;;  %v6553_v60 = vld [vmem:[#allocation13_spill] sm:$0xff]  ;;  %v2685_v12 = vand.u32 4294901760, %v2684_v41  ;;  %v2691_v41 = vand.u32 4294901760, %v2690_v34 }
 0x1c9   : > { %v1157_v1 = vadd.f32 %v1156_v47, %v1112_v21  ;;  %v6554_v47 = vand.u32 4294901760, %v5565_v16  ;;  %v2702_v59 = vsub.f32 %v5683_v42, %v2701_v53 }
 0x1cb   : > { %v5689_v58 = vadd.f32 %v1201_v22, %v1157_v1  ;;  %v2696_v22 = vsub.f32 %v5678_v3, %v6496_v45  ;;  %v2703_v34 = vand.u32 4294901760, %v2702_v59 }
 0x1cc   : > { %2192 = vmatmul.f32.vlgmr.msra.gmra.mxu0 %v6553_v60  ;;  %v5696_v49 = vpop.f32.mrf.mxu3 }
 0x1cd   : > { %2056 = vmatmul.f32.gmra.mxu1 %v5063_v7  ;;  %2322 = vmatmul.f32.vlgmr.msra.gmra.mxu3 %v4934_v24  ;;  %v2697_v16 = vand.u32 4294901760, %v2696_v22 }
 0x1ce   : > { %2549 = vmatpush.msra.mxu0 %v6554_v47  ;;  %2686 = vmatpush.msra.mxu3 %v2685_v12  ;;  %v1238_v21 = vpop.f32.mrf.mxu0  ;;  %v5705_v1 = vpop.f32.mrf.mxu2  ;;  %v1235_v12 = vadd.f32 %v1234_v6, %v5626_v20  ;;  %v6556_v47 = vand.u32 4294901760, %v5587_v30  ;;  %v6558_v20 = vld [vmem:[#allocation16_spill] sm:$0xff] }
 0x1cf   : > { %2285 = vmatmul.f32.vlgmr.msra.gmra.mxu2 %v4934_v24  ;;  %v1271_v61 = vpop.f32.mrf.mxu1  ;;  %v1239_v25 = vadd.f32 %v1238_v21, %v5647_v43  ;;  %v1624_v43 = vrot.slane %v5635_v32, 4 }
 0x1d0   : > { %2553 = vmatpush.msra.mxu0 %v6555_v39  ;;  %2629 = vmatpush.msra.mxu2 %v5650_v52  ;;  %v1272_v45 = vadd.f32 %v1271_v61, %v1235_v12 }
 0x1d1   : > { %2692 = vmatpush.msra.mxu3 %v2691_v41  ;;  %v1625_v61 = vadd.f32 %v1624_v43, %v5635_v32 }
 0x1d2   : > { %2557 = vmatpush.msra.mxu0 %v6556_v47  ;;  %2631 = vmatpush.msra.mxu2 %v5655_v23  ;;  %4557 = vtanh.f32 %v1272_v45 }
 0x1d3   : > { %2698 = vmatpush.msra.mxu3 %v2697_v16  ;;  %v1615_v16 = vrot.slane %v5673_v33, 4 }
 0x1d4   : > { %2561 = vmatpush.msra.mxu0 %v6557_v38  ;;  %2633 = vmatpush.msra.mxu2 %v5660_v48 }
 0x1d5   : > { %2704 = vmatpush.msra.mxu3 %v2703_v34  ;;  %2197 = vmatmul.f32.gmra.mxu0 %v4995_v62  ;;  %v5722_v39 = vpop.f32.mrf.mxu3 }
 0x1d6   : > { %2234 = vmatmul.f32.vlgmr.msra.gmra.mxu1 %v6558_v20  ;;  %2326 = vmatmul.f32.gmra.mxu3 %v4984_v54  ;;  %v1242_v30 = vpop.f32.mrf.mxu0 }
 0x1d7   : > { %2592 = vmatpush.msra.mxu1 %v5550_v26  ;;  %2635 = vmatpush.msra.mxu2 %v5669_v4  ;;  %v1275_v35 = vpop.f32.mrf.mxu1  ;;  %v5729_v38 = vpop.f32.mrf.mxu2  ;;  %v1243_v45 = vadd.f32 %v1242_v30, %v5664_v36  ;;  %v1626_v36 = vrot.slane %v1625_v61, 2 }
 0x1d8   : > { %2289 = vmatmul.f32.gmra.mxu2 %v4984_v54  ;;  %v1276_v59 = vadd.f32 %v1275_v35, %v1239_v25  ;;  %v4558_v6 = vpop.eup %4557  ;;  %v1616_v25 = vadd.f32 %v1615_v16, %v5673_v33 }
 0x1d9   : > { %2594 = vmatpush.msra.mxu1 %v5560_v31  ;;  %v1598_v12 = vmul.f32 %v4558_v6, %v5545_v50  ;;  %v1627_v35 = vadd.f32 %v1626_v36, %v1625_v61  ;;  %v5768_v36 = vld [vmem:[%s4874_s29 + $0x8] sm:$0xf]  ;;  %s6074_s29 = scalar_lea.vmem [#allocation6], %s4412_s27  ;;  %s4323_s27 = smul.u32 12, %s4813_s16 }
 0x1da   : > { %4559 = vtanh.f32 %v1276_v59  ;;  %v1617_v33 = vrot.slane %v1616_v25, 2  ;;  %s4328_s22 = sshll.u32 %s6074_s29, 4  ;;  %s4316_s16 = scalar_lea.sflag [#allocation5], %s4868_s25  ;;  %s4329_s22 = int_to_ptr.vmem [resolvable:$true] %s4328_s22 }
 0x1db   : > { %2596 = vmatpush.msra.mxu1 %v5567_v29  ;;  %s4326_s6 = scalar_lea.hbm %s6469_s3, %s4323_s27 }
 0x1dc   : > { %s4330_s7 = sshll.u32 %s4326_s6, 4  ;;  %s4331_s7 = int_to_ptr.hbm [resolvable:$true] %s4330_s7 }
 0x1dd   : > { %2598 = vmatpush.msra.mxu1 %v5573_v55  ;;  %2202 = vmatmul.f32.gmra.mxu0 %v5052_v57  ;;  %v1385_v26 = vpop.f32.mrf.mxu3  ;;  %s4713_s8 = sshra.s32 %s4331_s7, 4  ;;  %s4714_s8 = int_to_ptr.hbm [resolvable:$true] %s4713_s8 }
 0x1de   : > { %2240 = vmatmul.f32.gmra.mxu1 %v5023_v28  ;;  %2330 = vmatmul.f32.gmra.mxu3 %v5035_v40  ;;  %v1246_v31 = vpop.f32.mrf.mxu0  ;;  %s4715_s9 = scalar_lea.hbm %s4714_s8, 12  ;;  %p4720_p3 = scmp.lt.s32.totalorder %s4714_s8, %s6469_s3 }
 0x1df   : > { %v1279_v22 = vpop.f32.mrf.mxu1  ;;  %v1328_v21 = vpop.f32.mrf.mxu2  ;;  %v1247_v59 = vadd.f32 %v1246_v31, %v5689_v58  ;;  %v1628_v58 = vrot.slane %v1627_v35, 1  ;;  %p4716_p6 = scmp.ne.s32.totalorder %s4714_s8, %s4715_s9  ;;  %p4721_p4 = scmp.lt.s32.totalorder %s4719_s17, %s4715_s9 }
 0x1e0   : > { %v4560_v41 = vpop.eup %4559  ;;  %2293 = vmatmul.f32.gmra.mxu2 %v5035_v40  ;;  %v1280_v29 = vadd.f32 %v1279_v22, %v1243_v45  ;;  %v1329_v55 = vadd.f32 %v1328_v21, %v5382_v37  ;;  %v1313_v21 = vadd.f32 %v5705_v1, %v5347_v56 }
 0x1e1   : > { %v1602_v32 = vmul.f32 %v4560_v41, %v5547_v46  ;;  %v1618_v41 = vadd.f32 %v1617_v33, %v1616_v25  ;;  %v1629_v16 = vadd.f32 %v1628_v58, %v1627_v35  ;;  %v1321_v35 = vadd.f32 %v5729_v38, %v5352_v11  ;;  %p4717_p13 = pnand %p4716_p6, %p4838_p11  ;;  %p4722_p5 = por %p4721_p4, %p4720_p3 }
 0x1e2   : > { %4561 = vtanh.f32 %v1280_v29  ;;  %v5746_v47 = vadd.f32 %v1385_v26, %v1329_v55  ;;  %v1378_v29 = vadd.f32 %v5696_v49, %v1313_v21  ;;  %v3014_v33 = vperm.slane %v5768_v36, 0 }
 0x1e3   : > { %v1630_v34 = vadd.f32 %v1602_v32, %v1598_v12  ;;  %v1619_v25 = vrot.slane %v1618_v41, 1  ;;  %v6560_v38 = vand.u32 4294901760, %v5667_v8  ;;  %v6561_v58 = vand.u32 4294901760, %v5678_v3  ;;  %p4718_p2 = pneg %p4717_p13 }
 0x1e5   : > { %2207 = vmatmul.f32.gmra.mxu0 %v5076_v15  ;;  %v5750_v30 = vpop.f32.mrf.mxu3  ;;  %p4723_p7 = pnand %p4722_p5, %p4718_p2 }
 0x1e6   : > { %2246 = vmatmul.f32.gmra.mxu1 %v5061_v0  ;;  %2334 = vmatmul.f32.gmra.mxu3 %v5063_v7  ;;  %v1419_v43 = vpop.f32.mrf.mxu0 }
 0x1e7   : > { %v1283_v6 = vpop.f32.mrf.mxu1  ;;  %v5755_v45 = vpop.f32.mrf.mxu2  ;;  %v1420_v12 = vadd.f32 %v1419_v43, %v1378_v29 }
 0x1e8   : > { %v4562_v26 = vpop.eup %4561  ;;  %2297 = vmatmul.f32.gmra.mxu2 %v5063_v7  ;;  %v1284_v22 = vadd.f32 %v1283_v6, %v1247_v59  ;;  %v5771_v59 = vpop.permute.xlu0 %1649  ;;  %v6559_v6 = vand.u32 4294901760, %v5658_v14 }
 0x1e9   : > { %v1606_v61 = vmul.f32 %v4562_v26, %v5575_v44 }
 0x1ea   : > { %4563 = vtanh.f32 %v1284_v22  ;;  %v1653_v22 = vadd.f32 %v5771_v59, %v1629_v16 }
 0x1eb   : > { %v1631_v31 = vadd.f32 %v1630_v34, %v1606_v61  ;;  %v1620_v61 = vadd.f32 %v1619_v25, %v1618_v41 }
 0x1ec   : > { %v1660_v16 = vrot.slane %v1653_v22, 7 }
 0x1ed   : > { %2363 = vmatmul.f32.vlgmr.msrb.gmra.mxu0 %v6549_v2  ;;  %v1549_v55 = vpop.f32.mrf.mxu3 }
 0x1ee   : > { %2252 = vmatmul.f32.gmra.mxu1 %v5093_v51  ;;  %2512 = vmatmul.f32.vlgmr.msrb.gmra.mxu3 %v6558_v20 }
 0x1ef   : > { %2736 = vmatpush.msrb.mxu0 %v5658_v14  ;;  %2870 = vmatpush.msrb.mxu3 %v5650_v52  ;;  %v1424_v1 = vpop.f32.mrf.mxu0  ;;  %v1512_v32 = vpop.f32.mrf.mxu2  ;;  %v1382_v14 = vadd.f32 %v5722_v39, %v1321_v35  ;;  %v3026_v35 = vmul.f32 %v3014_v33, %v4929_v19 }
 0x1f0   : > { %v4564_v34 = vpop.eup %4563  ;;  %2470 = vmatmul.f32.vlgmr.msrb.gmra.mxu2 %v6553_v60  ;;  %v1461_v49 = vpop.f32.mrf.mxu1 }
 0x1f1   : > { %v1610_v43 = vmul.f32 %v4564_v34, %v5616_v5  ;;  %2739 = vmatpush.msrb.mxu0 %v5667_v8  ;;  %2827 = vmatpush.msrb.mxu2 %v6559_v6  ;;  %v1462_v26 = vadd.f32 %v1461_v49, %v1420_v12  ;;  %v3034_v8 = vmul.f32 %v3014_v33, %v4913_v9  ;;  %v6563_v6 = vld [vmem:[#allocation14_spill] sm:$0xff] }
 0x1f2   : > { %2872 = vmatpush.msrb.mxu3 %v5655_v23  ;;  %v1425_v12 = vadd.f32 %v1424_v1, %v1382_v14  ;;  %v1652_v34 = vadd.f32 %v5771_v59, %v1620_v61  ;;  %v6564_v61 = vld [vmem:[#allocation15_spill] sm:$0xff] }
 0x1f3   : > { %v5782_v21 = vadd.f32 %v1631_v31, %v1610_v43  ;;  %2742 = vmatpush.msrb.mxu0 %v5678_v3  ;;  %2831 = vmatpush.msrb.mxu2 %v6560_v38  ;;  %v1513_v29 = vadd.f32 %v1512_v32, %v1462_v26  ;;  %v3030_v32 = vmul.f32 %v3014_v33, %v4926_v17 }
 0x1f4   : > { %2874 = vmatpush.msrb.mxu3 %v5660_v48  ;;  %v3066_v25 = vadd.f32 %v3034_v8, %v4915_v10  ;;  %v3058_v26 = vadd.f32 %v3026_v35, %v6563_v6 }
 0x1f5   : > { %2745 = vmatpush.msrb.mxu0 %v5683_v42  ;;  %2835 = vmatpush.msrb.mxu2 %v6561_v58  ;;  %v1550_v49 = vadd.f32 %v1549_v55, %v1513_v29  ;;  %v3022_v55 = vmul.f32 %v3014_v33, %v4939_v27 }
 0x1f6   : > { %2876 = vmatpush.msrb.mxu3 %v5669_v4  ;;  %2371 = vmatmul.f32.gmra.mxu0 %v5056_v63  ;;  %v1553_v31 = vpop.f32.mrf.mxu3 }
 0x1f7   : > { %2428 = vmatmul.f32.vlgmr.msrb.gmra.mxu1 %v4934_v24  ;;  %2518 = vmatmul.f32.gmra.mxu3 %v5023_v28  ;;  %v1429_v39 = vpop.f32.mrf.mxu0  ;;  %4565 = vtanh.f32 %v1550_v49 }
 0x1f8   : > { %2780 = vmatpush.msrb.mxu1 %v5650_v52  ;;  %2839 = vmatpush.msrb.mxu2 %v2701_v53  ;;  %v1467_v3 = vpop.f32.mrf.mxu1  ;;  %v1516_v41 = vpop.f32.mrf.mxu2  ;;  %v5806_v52 = vsel %vm1663_vm1, %v1652_v34, %v1660_v16  ;;  %v3062_v53 = vadd.f32 %v3030_v32, %v4919_v13  ;;  %4567 = vtanh.f32 %v3066_v25  ;;  %v1430_v22 = vadd.f32 %v1429_v39, %v5746_v47 }
 0x1f9   : > { %2475 = vmatmul.f32.gmra.mxu2 %v4995_v62  ;;  %v1468_v1 = vadd.f32 %v1467_v3, %v1425_v12  ;;  %6562 = vst [vmem:[#allocation20_spill] sm:$0xff] %v5806_v52  ;;  %v6565_v3 = vld [vmem:[#allocation18_spill] sm:$0xff] }
 0x1fa   : > { %2782 = vmatpush.msrb.mxu1 %v5655_v23 }
 0x1fb   : > { %v1517_v42 = vadd.f32 %v1516_v41, %v1468_v1 }
 0x1fc   : > { %2784 = vmatpush.msrb.mxu1 %v5660_v48 }
 0x1fd   : > { %v1554_v43 = vadd.f32 %v1553_v31, %v1517_v42  ;;  %v4566_v58 = vpop.eup %4565 }
 0x1fe   : > { %2786 = vmatpush.msrb.mxu1 %v5669_v4  ;;  %2379 = vmatmul.f32.gmra.mxu0 %v5090_v18  ;;  %v1557_v23 = vpop.f32.mrf.mxu3  ;;  %v3054_v4 = vadd.f32 %v3022_v55, %v6564_v61  ;;  %v4568_v16 = vpop.eup %4567  ;;  %v1599_v12 = vmul.f32 %v4566_v58, %v5545_v50  ;;  %v3015_v55 = vperm.slane %v5768_v36, 1 }
 0x1ff   : > { %2432 = vmatmul.f32.gmra.mxu1 %v4984_v54  ;;  %2524 = vmatmul.f32.gmra.mxu3 %v5061_v0  ;;  %4569 = vtanh.f32 %v1554_v43  ;;  %v5818_v48 = vpop.f32.mrf.mxu0  ;;  %v5829_v34 = vand.u32 4294901760, %v4568_v16 }
 0x200   : > { %v1473_v33 = vpop.f32.mrf.mxu1  ;;  %v1520_v38 = vpop.f32.mrf.mxu2  ;;  %4571 = vtanh.f32 %v3062_v53  ;;  %v3035_v58 = vmul.f32 %v3015_v55, %v4913_v9  ;;  %v3027_v52 = vmul.f32 %v3015_v55, %v4929_v19 }
 0x201   : > { %2480 = vmatmul.f32.gmra.mxu2 %v5052_v57  ;;  %v1474_v14 = vadd.f32 %v1473_v33, %v1430_v22  ;;  %4573 = vtanh.f32 %v3058_v26  ;;  %v5840_v43 = vsub.f32 %v4568_v16, %v5829_v34 }
 0x202   : > { %4575 = vtanh.f32 %v3054_v4 }
 0x203   : > { %v1521_v29 = vadd.f32 %v1520_v38, %v1474_v14  ;;  %v6501_v16 = vand.u32 4294901760, %v5840_v43 }
 0x205   : > { %v4570_v47 = vpop.eup %4569  ;;  %v1558_v31 = vadd.f32 %v1557_v23, %v1521_v29 }
 0x206   : > { %v4572_v8 = vpop.eup %4571  ;;  %v1603_v39 = vmul.f32 %v4570_v47, %v5547_v46  ;;  %2387 = vmatmul.f32.gmra.mxu0 %v6565_v3  ;;  %v5825_v41 = vpop.f32.mrf.mxu3 }
 0x207   : > { %2436 = vmatmul.f32.gmra.mxu1 %v5035_v40  ;;  %2530 = vmatmul.f32.gmra.mxu3 %v5093_v51  ;;  %4577 = vtanh.f32 %v1558_v31  ;;  %v1808_v32 = vpop.f32.mrf.mxu0  ;;  %v4574_v49 = vpop.eup %4573  ;;  %v5836_v53 = vand.u32 4294901760, %v4572_v8 }
 0x208   : > { %v1639_v1 = vadd.f32 %v1603_v39, %v1599_v12  ;;  %v5831_v25 = vpop.f32.mrf.mxu1  ;;  %v5833_v42 = vpop.f32.mrf.mxu2  ;;  %v5842_v23 = vand.u32 4294901760, %v4574_v49  ;;  %v1809_v4 = vadd.f32 %v1808_v32, %v5347_v56 }
 0x209   : > { %2485 = vmatmul.f32.gmra.mxu2 %v5076_v15  ;;  %v4576_v35 = vpop.eup %4575  ;;  %v5845_v22 = vsub.f32 %v4572_v8, %v5836_v53 }
 0x20a   : > { %v5847_v33 = vand.u32 4294901760, %v4576_v35  ;;  %v5856_v29 = vsub.f32 %v4574_v49, %v5842_v23  ;;  %v3031_v49 = vmul.f32 %v3015_v55, %v4926_v17  ;;  %v3023_v17 = vmul.f32 %v3015_v55, %v4939_v27 }
 0x20c   : > { %v5865_v39 = vsub.f32 %v4576_v35, %v5847_v33 }
 0x20d   : > { %v4578_v26 = vpop.eup %4577 }
 0x20e   : > { %v1607_v38 = vmul.f32 %v4578_v26, %v5575_v44  ;;  %2563 = vmatmul.f32.vlgmr.msra.gmra.mxu0 %v4934_v24  ;;  %v1957_v14 = vpop.f32.mrf.mxu3  ;;  %v3067_v26 = vadd.f32 %v3035_v58, %v4915_v10  ;;  %v6510_v35 = vand.u32 4294901760, %v5865_v39  ;;  %v3063_v10 = vadd.f32 %v3031_v49, %v4919_v13 }
 0x20f   : > { %2440 = vmatmul.f32.gmra.mxu1 %v5063_v7  ;;  %2706 = vmatmul.f32.vlgmr.msra.gmra.mxu3 %v4934_v24  ;;  %v3059_v49 = vadd.f32 %v3027_v52, %v6563_v6 }
 0x210   : > { %v5859_v47 = vadd.f32 %v1639_v1, %v1607_v38  ;;  %3115 = vmatpush.msra.mxu0 %v5829_v34  ;;  %3266 = vmatpush.msra.mxu3 %v5829_v34  ;;  %v1816_v31 = vpop.f32.mrf.mxu0  ;;  %v1915_v8 = vpop.f32.mrf.mxu2  ;;  %v3170_v38 = vsub.f32 %v5840_v43, %v6501_v16  ;;  %4579 = vtanh.f32 %v3067_v26 }
 0x211   : > { %2641 = vmatmul.f32.vlgmr.msra.gmra.mxu2 %v6549_v2  ;;  %v1873_v12 = vpop.f32.mrf.mxu1  ;;  %v1817_v9 = vadd.f32 %v1816_v31, %v5352_v11  ;;  %4581 = vtanh.f32 %v3063_v10 }
 0x212   : > { %3117 = vmatpush.msra.mxu0 %v5836_v53  ;;  %3222 = vmatpush.msra.mxu2 %v5840_v43  ;;  %v1874_v1 = vadd.f32 %v1873_v12, %v1809_v4  ;;  %v6566_v4 = vld [vmem:[#allocation19_spill] sm:$0xff]  ;;  %v6567_v12 = vand.u32 4294901760, %v5845_v22  ;;  %4583 = vtanh.f32 %v3059_v49 }
 0x213   : > { %3268 = vmatpush.msra.mxu3 %v5836_v53  ;;  %v1337_v58 = vadd.f32 %v5755_v45, %v6566_v4  ;;  %v3171_v45 = vand.u32 4294901760, %v3170_v38 }
 0x214   : > { %3119 = vmatpush.msra.mxu0 %v5842_v23  ;;  %3225 = vmatpush.msra.mxu2 %v5845_v22  ;;  %v1916_v32 = vadd.f32 %v1915_v8, %v1874_v1  ;;  %v3176_v16 = vsub.f32 %v5845_v22, %v6567_v12  ;;  %v6568_v8 = vand.u32 4294901760, %v5856_v29 }
 0x215   : > { %3270 = vmatpush.msra.mxu3 %v5842_v23 }
 0x216   : > { %3121 = vmatpush.msra.mxu0 %v5847_v33  ;;  %3228 = vmatpush.msra.mxu2 %v5856_v29  ;;  %v5892_v55 = vadd.f32 %v1957_v14, %v1916_v32  ;;  %v3182_v1 = vsub.f32 %v5856_v29, %v6568_v8  ;;  %v3055_v14 = vadd.f32 %v3023_v17, %v6564_v61  ;;  %v3177_v26 = vand.u32 4294901760, %v3176_v16 }
 0x217   : > { %3272 = vmatpush.msra.mxu3 %v5847_v33  ;;  %2567 = vmatmul.f32.gmra.mxu0 %v4984_v54  ;;  %v1963_v12 = vpop.f32.mrf.mxu3  ;;  %v1390_v32 = vadd.f32 %v5750_v30, %v1337_v58  ;;  %v3188_v8 = vsub.f32 %v5865_v39, %v6510_v35  ;;  %v4580_v30 = vpop.eup %4579 }
 0x218   : > { %2600 = vmatmul.f32.vlgmr.msra.gmra.mxu1 %v4934_v24  ;;  %2710 = vmatmul.f32.gmra.mxu3 %v4984_v54  ;;  %v1824_v31 = vpop.f32.mrf.mxu0  ;;  %v3183_v17 = vand.u32 4294901760, %v3182_v1  ;;  %4585 = vtanh.f32 %v3055_v14  ;;  %v4582_v10 = vpop.eup %4581 }
 0x219   : > { %3172 = vmatpush.msra.mxu1 %v3171_v45  ;;  %3231 = vmatpush.msra.mxu2 %v5865_v39  ;;  %v1877_v38 = vpop.f32.mrf.mxu1  ;;  %v1920_v27 = vpop.f32.mrf.mxu2  ;;  %v1435_v6 = vadd.f32 %v5818_v48, %v1390_v32  ;;  %v3189_v16 = vand.u32 4294901760, %v3188_v8  ;;  %v1825_v61 = vadd.f32 %v1824_v31, %v5382_v37  ;;  %v5915_v48 = vand.u32 4294901760, %v4580_v30 }
 0x21a   : > { %2649 = vmatmul.f32.gmra.mxu2 %v5056_v63  ;;  %v1878_v52 = vadd.f32 %v1877_v38, %v1817_v9  ;;  %v5921_v31 = vand.u32 4294901760, %v4582_v10 }
 0x21b   : > { %3178 = vmatpush.msra.mxu1 %v3177_v26  ;;  %v1480_v45 = vadd.f32 %v5831_v25, %v1435_v6  ;;  %v4584_v6 = vpop.eup %4583  ;;  %v5924_v32 = vsub.f32 %v4580_v30, %v5915_v48 }
 0x21c   : > { %v1921_v58 = vadd.f32 %v1920_v27, %v1878_v52  ;;  %v5926_v38 = vand.u32 4294901760, %v4584_v6 }
 0x21d   : > { %3184 = vmatpush.msra.mxu1 %v3183_v17  ;;  %v1525_v25 = vadd.f32 %v5833_v42, %v1480_v45  ;;  %v5933_v42 = vsub.f32 %v4582_v10, %v5921_v31 }
 0x21e   : > { %v5912_v35 = vadd.f32 %v1963_v12, %v1921_v58  ;;  %v4586_v14 = vpop.eup %4585 }
 0x21f   : > { %3190 = vmatpush.msra.mxu1 %v3189_v16  ;;  %2571 = vmatmul.f32.gmra.mxu0 %v5035_v40  ;;  %v1969_v9 = vpop.f32.mrf.mxu3  ;;  %v1562_v8 = vadd.f32 %v5825_v41, %v1525_v25  ;;  %v5935_v58 = vand.u32 4294901760, %v4586_v14  ;;  %v5942_v41 = vsub.f32 %v4584_v6, %v5926_v38 }
 0x220   : > { %2604 = vmatmul.f32.gmra.mxu1 %v4984_v54  ;;  %2714 = vmatmul.f32.gmra.mxu3 %v5035_v40  ;;  %v1832_v27 = vpop.f32.mrf.mxu0 }
 0x221   : > { %v1881_v1 = vpop.f32.mrf.mxu1  ;;  %v1925_v49 = vpop.f32.mrf.mxu2  ;;  %v1833_v52 = vadd.f32 %v1832_v27, %v6566_v4  ;;  %4587 = vtanh.f32 %v1562_v8  ;;  %v6511_v27 = vand.u32 4294901760, %v5933_v42  ;;  %v5947_v25 = vsub.f32 %v4586_v14, %v5935_v58 }
 0x222   : > { %2657 = vmatmul.f32.gmra.mxu2 %v5090_v18  ;;  %v1882_v12 = vadd.f32 %v1881_v1, %v1825_v61  ;;  %v6512_v61 = vand.u32 4294901760, %v5924_v32  ;;  %v6570_v4 = vand.u32 4294901760, %v5845_v22 }
 0x223   : > { %v6516_v8 = vand.u32 4294901760, %v5947_v25 }
 0x224   : > { %v1926_v26 = vadd.f32 %v1925_v49, %v1882_v12  ;;  %v3448_v1 = vsub.f32 %v5924_v32, %v6512_v61  ;;  %v6515_v12 = vand.u32 4294901760, %v5942_v41 }
 0x226   : > { %v5930_v17 = vadd.f32 %v1969_v9, %v1926_v26  ;;  %v3454_v26 = vsub.f32 %v5933_v42, %v6511_v27  ;;  %v3449_v14 = vand.u32 4294901760, %v3448_v1 }
 0x227   : > { %2575 = vmatmul.f32.gmra.mxu0 %v5063_v7  ;;  %v1975_v30 = vpop.f32.mrf.mxu3 }
 0x228   : > { %2608 = vmatmul.f32.gmra.mxu1 %v5035_v40  ;;  %2718 = vmatmul.f32.gmra.mxu3 %v5063_v7  ;;  %v2008_v45 = vpop.f32.mrf.mxu0  ;;  %v3455_v1 = vand.u32 4294901760, %v3454_v26 }
 0x229   : > { %v1885_v16 = vpop.f32.mrf.mxu1  ;;  %v1930_v9 = vpop.f32.mrf.mxu2 }
 0x22a   : > { %2665 = vmatmul.f32.gmra.mxu2 %v6565_v3  ;;  %v1886_v10 = vadd.f32 %v1885_v16, %v1833_v52  ;;  %v4588_v52 = vpop.eup %4587  ;;  %v3466_v3 = vsub.f32 %v5947_v25, %v6516_v8  ;;  %v6572_v8 = vand.u32 4294901760, %v5865_v39 }
 0x22b   : > { %v1611_v27 = vmul.f32 %v4588_v52, %v5616_v5 }
 0x22c   : > { %v1931_v49 = vadd.f32 %v1930_v9, %v1886_v10  ;;  %v6569_v9 = vand.u32 4294901760, %v5840_v43  ;;  %v3467_v52 = vand.u32 4294901760, %v3466_v3 }
 0x22d   : > { %v1641_v26 = vadd.f32 %v5859_v47, %v1611_v27 }
 0x22e   : > { %v5953_v6 = vadd.f32 %v1975_v30, %v1931_v49  ;;  %v3460_v30 = vsub.f32 %v5942_v41, %v6515_v12 }
 0x22f   : > { %2748 = vmatmul.f32.vlgmr.msrb.gmra.mxu0 %v6553_v60  ;;  %v5960_v16 = vpop.f32.mrf.mxu3 }
 0x230   : > { %2612 = vmatmul.f32.gmra.mxu1 %v5063_v7  ;;  %2878 = vmatmul.f32.vlgmr.msrb.gmra.mxu3 %v4934_v24  ;;  %v3461_v43 = vand.u32 4294901760, %v3460_v30 }
 0x231   : > { %3313 = vmatpush.msrb.mxu0 %v6569_v9  ;;  %3450 = vmatpush.msrb.mxu3 %v3449_v14  ;;  %v2012_v10 = vpop.f32.mrf.mxu0  ;;  %v5969_v49 = vpop.f32.mrf.mxu2  ;;  %v2009_v14 = vadd.f32 %v2008_v45, %v5892_v55  ;;  %v6571_v9 = vand.u32 4294901760, %v5856_v29  ;;  %v1633_v55 = vrot.slane %v5782_v21, 4 }
 0x232   : > { %2841 = vmatmul.f32.vlgmr.msrb.gmra.mxu2 %v4934_v24  ;;  %v2045_v61 = vpop.f32.mrf.mxu1  ;;  %v2013_v29 = vadd.f32 %v2012_v10, %v5912_v35 }
 0x233   : > { %3317 = vmatpush.msrb.mxu0 %v6570_v4  ;;  %3393 = vmatpush.msrb.mxu2 %v5915_v48  ;;  %v2046_v12 = vadd.f32 %v2045_v61, %v2009_v14  ;;  %v1642_v4 = vrot.slane %v1641_v26, 4  ;;  %v1634_v45 = vadd.f32 %v1633_v55, %v5782_v21 }
 0x234   : > { %3456 = vmatpush.msrb.mxu3 %v3455_v1 }
 0x235   : > { %3321 = vmatpush.msrb.mxu0 %v6571_v9  ;;  %3395 = vmatpush.msrb.mxu2 %v5921_v31  ;;  %4589 = vtanh.f32 %v2046_v12  ;;  %v1643_v35 = vadd.f32 %v1642_v4, %v1641_v26  ;;  %v1635_v21 = vrot.slane %v1634_v45, 2 }
 0x236   : > { %3462 = vmatpush.msrb.mxu3 %v3461_v43 }
 0x237   : > { %3325 = vmatpush.msrb.mxu0 %v6572_v8  ;;  %3397 = vmatpush.msrb.mxu2 %v5926_v38  ;;  %v1644_v8 = vrot.slane %v1643_v35, 2  ;;  %v1636_v9 = vadd.f32 %v1635_v21, %v1634_v45  ;;  %v2087_v45 = vadd.f32 %v5969_v49, %v5347_v56 }
 0x238   : > { %3468 = vmatpush.msrb.mxu3 %v3467_v52  ;;  %2753 = vmatmul.f32.gmra.mxu0 %v4995_v62  ;;  %v5988_v22 = vpop.f32.mrf.mxu3 }
 0x239   : > { %2790 = vmatmul.f32.vlgmr.msrb.gmra.mxu1 %v6558_v20  ;;  %2882 = vmatmul.f32.gmra.mxu3 %v4984_v54  ;;  %v2016_v47 = vpop.f32.mrf.mxu0 }
 0x23a   : > { %3356 = vmatpush.msrb.mxu1 %v5829_v34  ;;  %3399 = vmatpush.msrb.mxu2 %v5935_v58  ;;  %v2049_v3 = vpop.f32.mrf.mxu1  ;;  %v5995_v39 = vpop.f32.mrf.mxu2  ;;  %v2017_v12 = vadd.f32 %v2016_v47, %v5930_v17  ;;  %v1645_v17 = vadd.f32 %v1644_v8, %v1643_v35  ;;  %v2152_v8 = vadd.f32 %v5960_v16, %v2087_v45 }
 0x23b   : > { %2845 = vmatmul.f32.gmra.mxu2 %v4984_v54  ;;  %v2050_v61 = vadd.f32 %v2049_v3, %v2013_v29  ;;  %v4590_v27 = vpop.eup %4589 }
 0x23c   : > { %3358 = vmatpush.msrb.mxu1 %v5836_v53  ;;  %v2926_v1 = vmul.f32 %v4590_v27, %v5545_v50  ;;  %v1646_v47 = vrot.slane %v1645_v17, 1 }
 0x23d   : > { %4591 = vtanh.f32 %v2050_v61  ;;  %v1637_v61 = vrot.slane %v1636_v9, 1 }
 0x23e   : > { %3360 = vmatpush.msrb.mxu1 %v5842_v23 }
 0x240   : > { %3362 = vmatpush.msrb.mxu1 %v5847_v33  ;;  %2758 = vmatmul.f32.gmra.mxu0 %v5052_v57  ;;  %v6004_v34 = vpop.f32.mrf.mxu3 }
 0x241   : > { %2796 = vmatmul.f32.gmra.mxu1 %v5023_v28  ;;  %2886 = vmatmul.f32.gmra.mxu3 %v5035_v40  ;;  %v2020_v53 = vpop.f32.mrf.mxu0 }
 0x242   : > { %v2053_v30 = vpop.f32.mrf.mxu1  ;;  %v6009_v10 = vpop.f32.mrf.mxu2  ;;  %v2021_v52 = vadd.f32 %v2020_v53, %v5953_v6  ;;  %v1647_v6 = vadd.f32 %v1646_v47, %v1645_v17  ;;  %v1638_v53 = vadd.f32 %v1637_v61, %v1636_v9  ;;  %v2095_v17 = vadd.f32 %v5995_v39, %v5352_v11 }
 0x243   : > { %v4592_v23 = vpop.eup %4591  ;;  %2849 = vmatmul.f32.gmra.mxu2 %v5035_v40  ;;  %v2054_v33 = vadd.f32 %v2053_v30, %v2017_v12  ;;  %v6573_v9 = vand.u32 4294901760, %v5924_v32 }
 0x244   : > { %v2930_v43 = vmul.f32 %v4592_v23, %v5547_v46  ;;  %v1655_v23 = vadd.f32 %v5771_v59, %v1647_v6  ;;  %v6576_v6 = vld [vmem:[#allocation9_spill] sm:$0xff] }
 0x245   : > { %4593 = vtanh.f32 %v2054_v33 }
 0x246   : > { %v2942_v14 = vadd.f32 %v2930_v43, %v2926_v1  ;;  %v1654_v43 = vadd.f32 %v5771_v59, %v1638_v53  ;;  %v1662_v47 = vrot.slane %v1655_v23, 5 }
 0x248   : > { %2763 = vmatmul.f32.gmra.mxu0 %v5076_v15  ;;  %v6015_v26 = vpop.f32.mrf.mxu3  ;;  %v1661_v61 = vrot.slane %v1654_v43, 6 }
 0x249   : > { %2802 = vmatmul.f32.gmra.mxu1 %v5061_v0  ;;  %2890 = vmatmul.f32.gmra.mxu3 %v5063_v7  ;;  %v2193_v29 = vpop.f32.mrf.mxu0 }
 0x24a   : > { %v2057_v4 = vpop.f32.mrf.mxu1  ;;  %v6020_v3 = vpop.f32.mrf.mxu2  ;;  %v2194_v21 = vadd.f32 %v2193_v29, %v2152_v8  ;;  %v3016_v29 = vperm.slane %v5768_v36, 2  ;;  %v6577_v8 = vand.u32 4294901760, %v5947_v25 }
 0x24b   : > { %v4594_v55 = vpop.eup %4593  ;;  %2853 = vmatmul.f32.gmra.mxu2 %v5063_v7  ;;  %v2058_v35 = vadd.f32 %v2057_v4, %v2021_v52 }
 0x24c   : > { %v2934_v27 = vmul.f32 %v4594_v55, %v5575_v44  ;;  %v6574_v55 = vand.u32 4294901760, %v5933_v42 }
 0x24d   : > { %4595 = vtanh.f32 %v2058_v35  ;;  %v6575_v35 = vand.u32 4294901760, %v5942_v41 }
 0x24e   : > { %v2943_v12 = vadd.f32 %v2942_v14, %v2934_v27 }
 0x250   : > { %3127 = vmatmul.f32.vlgmr.msra.gmra.mxu0 %v6549_v2  ;;  %v2323_v30 = vpop.f32.mrf.mxu3 }
 0x251   : > { %2808 = vmatmul.f32.gmra.mxu1 %v5093_v51  ;;  %3276 = vmatmul.f32.vlgmr.msra.gmra.mxu3 %v6558_v20 }
 0x252   : > { %3500 = vmatpush.msra.mxu0 %v5924_v32  ;;  %3634 = vmatpush.msra.mxu3 %v5915_v48  ;;  %v2198_v49 = vpop.f32.mrf.mxu0  ;;  %v2286_v33 = vpop.f32.mrf.mxu2  ;;  %v2156_v32 = vadd.f32 %v5988_v22, %v2095_v17 }
 0x253   : > { %v4596_v1 = vpop.eup %4595  ;;  %3234 = vmatmul.f32.vlgmr.msra.gmra.mxu2 %v6553_v60  ;;  %v2235_v16 = vpop.f32.mrf.mxu1 }
 0x254   : > { %v2938_v14 = vmul.f32 %v4596_v1, %v5616_v5  ;;  %3503 = vmatpush.msra.mxu0 %v5933_v42  ;;  %3591 = vmatpush.msra.mxu2 %v6573_v9  ;;  %v2236_v52 = vadd.f32 %v2235_v16, %v2194_v21  ;;  %v3036_v42 = vmul.f32 %v3016_v29, %v6576_v6  ;;  %v6578_v21 = vld [vmem:[#allocation11_spill] sm:$0xff]  ;;  %v6579_v1 = vld [vmem:[#allocation20_spill] sm:$0xff] }
 0x255   : > { %3636 = vmatpush.msra.mxu3 %v5921_v31  ;;  %v2199_v53 = vadd.f32 %v2198_v49, %v2156_v32  ;;  %v2103_v16 = vadd.f32 %v6009_v10, %v5382_v37  ;;  %v3028_v10 = vmul.f32 %v3016_v29, %v4929_v19 }
 0x256   : > { %v6043_v4 = vadd.f32 %v2943_v12, %v2938_v14  ;;  %3506 = vmatpush.msra.mxu0 %v5942_v41  ;;  %3595 = vmatpush.msra.mxu2 %v6574_v55  ;;  %v2287_v39 = vadd.f32 %v2286_v33, %v2236_v52  ;;  %v1670_v12 = vlaneseq  ;;  %v1666_v41 = vsel %vm1665_vm2, %v1661_v61, %v1662_v47  ;;  %v6583_v52 = vld [vmem:[#allocation12_spill] sm:$0xff]  ;;  %v6584_v61 = vld [vmem:[#allocation14_spill] sm:$0xff] }
 0x257   : > { %3638 = vmatpush.msra.mxu3 %v5926_v38  ;;  %v3032_v33 = vmul.f32 %v3016_v29, %v6578_v21  ;;  %v1668_v49 = vsel %vm1667_vm3, %v6579_v1, %v1666_v41  ;;  %v3024_v47 = vmul.f32 %v3016_v29, %v6583_v52  ;;  %v2160_v55 = vadd.f32 %v6004_v34, %v2103_v16  ;;  %v6585_v34 = vld [vmem:[#allocation15_spill] sm:$0xff]  ;;  %v6587_v16 = vld [vmem:[#allocation18_spill] sm:$0xff] }
 0x258   : > { %3509 = vmatpush.msra.mxu0 %v5947_v25  ;;  %3599 = vmatpush.msra.mxu2 %v6575_v35  ;;  %v2324_v45 = vadd.f32 %v2323_v30, %v2287_v39  ;;  %vm6065_vm4 = vcmp.lt.s32.totalorder %v1670_v12, 512  ;;  %v6582_v25 = vld [vmem:[#allocation10_spill] sm:$0xff]  ;;  %v3060_v32 = vadd.f32 %v3028_v10, %v6584_v61 }
 0x259   : > { %3640 = vmatpush.msra.mxu3 %v5935_v58  ;;  %3135 = vmatmul.f32.gmra.mxu0 %v5056_v63  ;;  %v2327_v27 = vpop.f32.mrf.mxu3  ;;  %1674 = vst.msk [vmem:[%s6074_s29] sm:$0xf] %vm6065_vm4, %v1668_v49  ;;  %v3068_v17 = vadd.f32 %v3036_v42, %v6582_v25  ;;  %v3064_v9 = vadd.f32 %v3032_v33, %v4919_v13 }
 0x25a   : > { %3192 = vmatmul.f32.vlgmr.msra.gmra.mxu1 %v4934_v24  ;;  %3282 = vmatmul.f32.gmra.mxu3 %v5023_v28  ;;  %v2203_v22 = vpop.f32.mrf.mxu0  ;;  %4597 = vtanh.f32 %v2324_v45  ;;  %v3056_v45 = vadd.f32 %v3024_v47, %v6585_v34 }
 0x25b   : > { %3544 = vmatpush.msra.mxu1 %v5915_v48  ;;  %3603 = vmatpush.msra.mxu2 %v6577_v8  ;;  %v2241_v30 = vpop.f32.mrf.mxu1  ;;  %v2290_v23 = vpop.f32.mrf.mxu2  ;;  %4599 = vtanh.f32 %v3068_v17  ;;  %v2204_v35 = vadd.f32 %v2203_v22, %v2160_v55 }
 0x25c   : > { %3239 = vmatmul.f32.gmra.mxu2 %v4995_v62  ;;  %v2242_v48 = vadd.f32 %v2241_v30, %v2199_v53 }
 0x25d   : > { %3546 = vmatpush.msra.mxu1 %v5921_v31 }
 0x25e   : > { %v2291_v14 = vadd.f32 %v2290_v23, %v2242_v48 }
 0x25f   : > { %3548 = vmatpush.msra.mxu1 %v5926_v38 }
 0x260   : > { %v2328_v39 = vadd.f32 %v2327_v27, %v2291_v14  ;;  %v6586_v27 = vld [vmem:[#allocation19_spill] sm:$0xff]  ;;  %v4598_v53 = vpop.eup %4597 }
 0x261   : > { %3550 = vmatpush.msra.mxu1 %v5935_v58  ;;  %3143 = vmatmul.f32.gmra.mxu0 %v5090_v18  ;;  %v2331_v31 = vpop.f32.mrf.mxu3  ;;  %v2111_v58 = vadd.f32 %v6020_v3, %v6586_v27  ;;  %v4600_v41 = vpop.eup %4599  ;;  %v2927_v1 = vmul.f32 %v4598_v53, %v5545_v50 }
 0x262   : > { %3196 = vmatmul.f32.gmra.mxu1 %v4984_v54  ;;  %3288 = vmatmul.f32.gmra.mxu3 %v5061_v0  ;;  %4601 = vtanh.f32 %v2328_v39  ;;  %v2208_v38 = vpop.f32.mrf.mxu0  ;;  %v6101_v14 = vand.u32 4294901760, %v4600_v41 }
 0x263   : > { %v2247_v29 = vpop.f32.mrf.mxu1  ;;  %v2294_v42 = vpop.f32.mrf.mxu2  ;;  %4603 = vtanh.f32 %v3064_v9  ;;  %v2164_v30 = vadd.f32 %v6015_v26, %v2111_v58 }
 0x264   : > { %3244 = vmatmul.f32.gmra.mxu2 %v5052_v57  ;;  %v2248_v12 = vadd.f32 %v2247_v29, %v2204_v35  ;;  %4605 = vtanh.f32 %v3060_v32  ;;  %v3017_v32 = vperm.slane %v5768_v36, 3 }
 0x265   : > { %4607 = vtanh.f32 %v3056_v45  ;;  %v2209_v48 = vadd.f32 %v2208_v38, %v2164_v30  ;;  %v6108_v38 = vsub.f32 %v4600_v41, %v6101_v14 }
 0x266   : > { %v2295_v22 = vadd.f32 %v2294_v42, %v2248_v12 }
 0x267   : > { %v3725_v30 = vand.u32 4294901760, %v6108_v38 }
 0x268   : > { %v4602_v8 = vpop.eup %4601  ;;  %v2332_v23 = vadd.f32 %v2331_v31, %v2295_v22 }
 0x269   : > { %v4604_v33 = vpop.eup %4603  ;;  %v2931_v49 = vmul.f32 %v4602_v8, %v5547_v46  ;;  %3151 = vmatmul.f32.gmra.mxu0 %v6587_v16  ;;  %v2335_v3 = vpop.f32.mrf.mxu3  ;;  %v3037_v8 = vmul.f32 %v3017_v32, %v6576_v6 }
 0x26a   : > { %3200 = vmatmul.f32.gmra.mxu1 %v5035_v40  ;;  %3294 = vmatmul.f32.gmra.mxu3 %v5093_v51  ;;  %4609 = vtanh.f32 %v2332_v23  ;;  %v2364_v17 = vpop.f32.mrf.mxu0  ;;  %v4606_v9 = vpop.eup %4605  ;;  %v6104_v39 = vand.u32 4294901760, %v4604_v33 }
 0x26b   : > { %v2951_v26 = vadd.f32 %v2931_v49, %v2927_v1  ;;  %v2253_v10 = vpop.f32.mrf.mxu1  ;;  %v2298_v47 = vpop.f32.mrf.mxu2  ;;  %v6110_v29 = vand.u32 4294901760, %v4606_v9  ;;  %v2365_v22 = vadd.f32 %v2364_v17, %v5347_v56  ;;  %v3033_v49 = vmul.f32 %v3017_v32, %v6578_v21 }
 0x26c   : > { %3249 = vmatmul.f32.gmra.mxu2 %v5076_v15  ;;  %v2254_v55 = vadd.f32 %v2253_v10, %v2209_v48  ;;  %v4608_v31 = vpop.eup %4607  ;;  %v6113_v58 = vsub.f32 %v4604_v33, %v6104_v39  ;;  %v3726_v21 = vsub.f32 %v6108_v38, %v3725_v30 }
 0x26d   : > { %v6115_v12 = vand.u32 4294901760, %v4608_v31  ;;  %v6124_v41 = vsub.f32 %v4606_v9, %v6110_v29  ;;  %v3069_v9 = vadd.f32 %v3037_v8, %v6582_v25 }
 0x26e   : > { %v2299_v35 = vadd.f32 %v2298_v47, %v2254_v55  ;;  %v3731_v48 = vand.u32 4294901760, %v6113_v58  ;;  %v3065_v47 = vadd.f32 %v3033_v49, %v4919_v13 }
 0x270   : > { %v4610_v42 = vpop.eup %4609  ;;  %v2336_v45 = vadd.f32 %v2335_v3, %v2299_v35  ;;  %v6132_v3 = vsub.f32 %v4608_v31, %v6115_v12  ;;  %v3732_v25 = vsub.f32 %v6113_v58, %v3731_v48  ;;  %v3029_v35 = vmul.f32 %v3017_v32, %v4929_v19 }
 0x271   : > { %v2935_v53 = vmul.f32 %v4610_v42, %v5575_v44  ;;  %3327 = vmatmul.f32.vlgmr.msrb.gmra.mxu0 %v4934_v24  ;;  %v2513_v36 = vpop.f32.mrf.mxu3  ;;  %v3025_v42 = vmul.f32 %v3017_v32, %v6583_v52 }
 0x272   : > { %3204 = vmatmul.f32.gmra.mxu1 %v5063_v7  ;;  %3470 = vmatmul.f32.vlgmr.msrb.gmra.mxu3 %v4934_v24  ;;  %4611 = vtanh.f32 %v2336_v45  ;;  %v6517_v31 = vand.u32 4294901760, %v6132_v3  ;;  %v3061_v32 = vadd.f32 %v3029_v35, %v6584_v61 }
 0x273   : > { %v2952_v23 = vadd.f32 %v2951_v26, %v2935_v53  ;;  %3671 = vmatpush.msrb.mxu0 %v6101_v14  ;;  %3822 = vmatpush.msrb.mxu3 %v6101_v14  ;;  %v2372_v33 = vpop.f32.mrf.mxu0  ;;  %v2471_v1 = vpop.f32.mrf.mxu2  ;;  %v3737_v26 = vand.u32 4294901760, %v6124_v41  ;;  %4613 = vtanh.f32 %v3069_v9  ;;  %v3057_v61 = vadd.f32 %v3025_v42, %v6585_v34 }
 0x274   : > { %3405 = vmatmul.f32.vlgmr.msrb.gmra.mxu2 %v6549_v2  ;;  %v2429_v6 = vpop.f32.mrf.mxu1  ;;  %v2373_v53 = vadd.f32 %v2372_v33, %v5352_v11  ;;  %v3733_v33 = vand.u32 4294901760, %v3732_v25  ;;  %v3744_v49 = vsub.f32 %v6132_v3, %v6517_v31  ;;  %4615 = vtanh.f32 %v3065_v47 }
 0x275   : > { %3673 = vmatpush.msrb.mxu0 %v6104_v39  ;;  %3778 = vmatpush.msrb.mxu2 %v6108_v38  ;;  %v2430_v17 = vadd.f32 %v2429_v6, %v2365_v22  ;;  %v3727_v22 = vand.u32 4294901760, %v3726_v21  ;;  %v3738_v19 = vsub.f32 %v6124_v41, %v3737_v26  ;;  %4617 = vtanh.f32 %v3061_v32 }
 0x276   : > { %3824 = vmatpush.msrb.mxu3 %v6104_v39  ;;  %4619 = vtanh.f32 %v3057_v61 }
 0x277   : > { %3675 = vmatpush.msrb.mxu0 %v6110_v29  ;;  %3781 = vmatpush.msrb.mxu2 %v6113_v58  ;;  %v2472_v10 = vadd.f32 %v2471_v1, %v2430_v17  ;;  %v3739_v17 = vand.u32 4294901760, %v3738_v19 }
 0x278   : > { %v4612_v55 = vpop.eup %4611  ;;  %3826 = vmatpush.msrb.mxu3 %v6110_v29 }
 0x279   : > { %v2939_v45 = vmul.f32 %v4612_v55, %v5616_v5  ;;  %3677 = vmatpush.msrb.mxu0 %v6115_v12  ;;  %3784 = vmatpush.msrb.mxu2 %v6124_v41  ;;  %v6157_v13 = vadd.f32 %v2513_v36, %v2472_v10  ;;  %v4614_v9 = vpop.eup %4613  ;;  %v3745_v10 = vand.u32 4294901760, %v3744_v49 }
 0x27a   : > { %3828 = vmatpush.msrb.mxu3 %v6115_v12  ;;  %3331 = vmatmul.f32.gmra.mxu0 %v4984_v54  ;;  %v2519_v52 = vpop.f32.mrf.mxu3  ;;  %v4616_v35 = vpop.eup %4615  ;;  %v6179_v47 = vand.u32 4294901760, %v4614_v9 }
 0x27b   : > { %v6165_v8 = vadd.f32 %v2952_v23, %v2939_v45  ;;  %3364 = vmatmul.f32.vlgmr.msrb.gmra.mxu1 %v4934_v24  ;;  %3474 = vmatmul.f32.gmra.mxu3 %v4984_v54  ;;  %v2380_v36 = vpop.f32.mrf.mxu0  ;;  %v4618_v45 = vpop.eup %4617 }
 0x27c   : > { %3728 = vmatpush.msrb.mxu1 %v3727_v22  ;;  %3787 = vmatpush.msrb.mxu2 %v6132_v3  ;;  %v2433_v1 = vpop.f32.mrf.mxu1  ;;  %v2476_v6 = vpop.f32.mrf.mxu2  ;;  %v2381_v55 = vadd.f32 %v2380_v36, %v5382_v37  ;;  %v6187_v36 = vsub.f32 %v4614_v9, %v6179_v47 }
 0x27d   : > { %3413 = vmatmul.f32.gmra.mxu2 %v5056_v63  ;;  %v2434_v23 = vadd.f32 %v2433_v1, %v2373_v53  ;;  %v4620_v32 = vpop.eup %4619  ;;  %v6189_v1 = vand.u32 4294901760, %v4618_v45 }
 0x27e   : > { %3734 = vmatpush.msrb.mxu1 %v3733_v33 }
 0x27f   : > { %v2477_v21 = vadd.f32 %v2476_v6, %v2434_v23  ;;  %v6197_v23 = vand.u32 4294901760, %v4620_v32 }
 0x280   : > { %3740 = vmatpush.msrb.mxu1 %v3739_v17  ;;  %v4003_v17 = vand.u32 4294901760, %v6187_v36 }
 0x281   : > { %v6176_v25 = vadd.f32 %v2519_v52, %v2477_v21  ;;  %v6184_v52 = vand.u32 4294901760, %v4616_v35 }
 0x282   : > { %3746 = vmatpush.msrb.mxu1 %v3745_v10  ;;  %3335 = vmatmul.f32.gmra.mxu0 %v5035_v40  ;;  %v2525_v34 = vpop.f32.mrf.mxu3  ;;  %v6204_v10 = vsub.f32 %v4618_v45, %v6189_v1 }
 0x283   : > { %3368 = vmatmul.f32.gmra.mxu1 %v4984_v54  ;;  %3478 = vmatmul.f32.gmra.mxu3 %v5035_v40  ;;  %v2388_v42 = vpop.f32.mrf.mxu0  ;;  %v6195_v61 = vsub.f32 %v4616_v35, %v6184_v52 }
 0x284   : > { %v2437_v53 = vpop.f32.mrf.mxu1  ;;  %v2481_v22 = vpop.f32.mrf.mxu2  ;;  %v2389_v49 = vadd.f32 %v2388_v42, %v6586_v27 }
 0x285   : > { %3421 = vmatmul.f32.gmra.mxu2 %v5090_v18  ;;  %v2438_v19 = vadd.f32 %v2437_v53, %v2381_v55  ;;  %v6518_v42 = vand.u32 4294901760, %v6195_v61  ;;  %v6209_v53 = vsub.f32 %v4620_v32, %v6197_v23 }
 0x287   : > { %v2482_v33 = vadd.f32 %v2481_v22, %v2438_v19  ;;  %v4004_v22 = vsub.f32 %v6187_v36, %v4003_v17  ;;  %v4010_v45 = vsub.f32 %v6195_v61, %v6518_v42 }
 0x289   : > { %v6192_v6 = vadd.f32 %v2525_v34, %v2482_v33  ;;  %v6519_v33 = vand.u32 4294901760, %v6204_v10 }
 0x28a   : > { %3339 = vmatmul.f32.gmra.mxu0 %v5063_v7  ;;  %v2531_v21 = vpop.f32.mrf.mxu3 }
 0x28b   : > { %3372 = vmatmul.f32.gmra.mxu1 %v5035_v40  ;;  %3482 = vmatmul.f32.gmra.mxu3 %v5063_v7  ;;  %v2564_v9 = vpop.f32.mrf.mxu0 }
 0x28c   : > { %v2441_v55 = vpop.f32.mrf.mxu1  ;;  %v2486_v34 = vpop.f32.mrf.mxu2 }
 0x28d   : > { %3429 = vmatmul.f32.gmra.mxu2 %v6587_v16  ;;  %v2442_v35 = vadd.f32 %v2441_v55, %v2389_v49  ;;  %v6520_v49 = vand.u32 4294901760, %v6209_v53  ;;  %v4005_v55 = vand.u32 4294901760, %v4004_v22  ;;  %v4011_v22 = vand.u32 4294901760, %v4010_v45 }
 0x28f   : > { %v2487_v19 = vadd.f32 %v2486_v34, %v2442_v35  ;;  %v4022_v42 = vsub.f32 %v6209_v53, %v6520_v49  ;;  %v6588_v49 = vand.u32 4294901760, %v6132_v3 }
 0x291   : > { %v6215_v31 = vadd.f32 %v2531_v21, %v2487_v19  ;;  %v4016_v21 = vsub.f32 %v6204_v10, %v6519_v33  ;;  %v4023_v45 = vand.u32 4294901760, %v4022_v42 }
 0x292   : > { %3512 = vmatmul.f32.vlgmr.msra.gmra.mxu0 %v6553_v60  ;;  %v6222_v32 = vpop.f32.mrf.mxu3 }
 0x293   : > { %3376 = vmatmul.f32.gmra.mxu1 %v5063_v7  ;;  %3642 = vmatmul.f32.vlgmr.msra.gmra.mxu3 %v4934_v24  ;;  %v4017_v38 = vand.u32 4294901760, %v4016_v21 }
 0x294   : > { %3869 = vmatpush.msra.mxu0 %v3725_v30  ;;  %4006 = vmatpush.msra.mxu3 %v4005_v55  ;;  %v2568_v34 = vpop.f32.mrf.mxu0  ;;  %v6231_v35 = vpop.f32.mrf.mxu2  ;;  %v2565_v30 = vadd.f32 %v2564_v9, %v6157_v13  ;;  %v2954_v55 = vrot.slane %v6165_v8, 4 }
 0x295   : > { %3605 = vmatmul.f32.vlgmr.msra.gmra.mxu2 %v4934_v24  ;;  %v2601_v19 = vpop.f32.mrf.mxu1 }
 0x296   : > { %3873 = vmatpush.msra.mxu0 %v3731_v48  ;;  %3949 = vmatpush.msra.mxu2 %v6179_v47  ;;  %v2602_v33 = vadd.f32 %v2601_v19, %v2565_v30  ;;  %v2569_v48 = vadd.f32 %v2568_v34, %v6176_v25  ;;  %v2955_v13 = vadd.f32 %v2954_v55, %v6165_v8  ;;  %v2945_v25 = vrot.slane %v6043_v4, 4 }
 0x297   : > { %4012 = vmatpush.msra.mxu3 %v4011_v22 }
 0x298   : > { %3877 = vmatpush.msra.mxu0 %v3737_v26  ;;  %3951 = vmatpush.msra.mxu2 %v6184_v52  ;;  %4621 = vtanh.f32 %v2602_v33  ;;  %v2946_v21 = vadd.f32 %v2945_v25, %v6043_v4 }
 0x299   : > { %4018 = vmatpush.msra.mxu3 %v4017_v38 }
 0x29a   : > { %3881 = vmatpush.msra.mxu0 %v6588_v49  ;;  %3953 = vmatpush.msra.mxu2 %v6189_v1  ;;  %v2947_v55 = vrot.slane %v2946_v21, 2 }
 0x29b   : > { %4024 = vmatpush.msra.mxu3 %v4023_v45  ;;  %3517 = vmatmul.f32.gmra.mxu0 %v4995_v62  ;;  %v2711_v58 = vpop.f32.mrf.mxu3 }
 0x29c   : > { %3554 = vmatmul.f32.vlgmr.msra.gmra.mxu1 %v6558_v20  ;;  %3646 = vmatmul.f32.gmra.mxu3 %v4984_v54  ;;  %v2572_v41 = vpop.f32.mrf.mxu0 }
 0x29d   : > { %3912 = vmatpush.msra.mxu1 %v6101_v14  ;;  %3955 = vmatpush.msra.mxu2 %v6197_v23  ;;  %v2605_v26 = vpop.f32.mrf.mxu1  ;;  %v2650_v3 = vpop.f32.mrf.mxu2  ;;  %v2956_v14 = vrot.slane %v2955_v13, 2  ;;  %v2573_v34 = vadd.f32 %v2572_v41, %v6192_v6 }
 0x29e   : > { %3609 = vmatmul.f32.gmra.mxu2 %v4984_v54  ;;  %v2606_v9 = vadd.f32 %v2605_v26, %v2569_v48  ;;  %v2651_v42 = vadd.f32 %v2650_v3, %v5352_v11  ;;  %v4622_v33 = vpop.eup %4621  ;;  %v2948_v26 = vadd.f32 %v2947_v55, %v2946_v21 }
 0x29f   : > { %3914 = vmatpush.msra.mxu1 %v6104_v39  ;;  %v2928_v45 = vmul.f32 %v4622_v33, %v5545_v50  ;;  %v2643_v33 = vadd.f32 %v6231_v35, %v5347_v56 }
 0x2a0   : > { %4623 = vtanh.f32 %v2606_v9  ;;  %v6259_v49 = vadd.f32 %v2711_v58, %v2651_v42 }
 0x2a1   : > { %3916 = vmatpush.msra.mxu1 %v6110_v29  ;;  %v2957_v29 = vadd.f32 %v2956_v14, %v2955_v13 }
 0x2a3   : > { %3918 = vmatpush.msra.mxu1 %v6115_v12  ;;  %3522 = vmatmul.f32.gmra.mxu0 %v5052_v57  ;;  %v2715_v8 = vpop.f32.mrf.mxu3  ;;  %v2958_v48 = vrot.slane %v2957_v29, 1 }
 0x2a4   : > { %3560 = vmatmul.f32.gmra.mxu1 %v5023_v28  ;;  %3650 = vmatmul.f32.gmra.mxu3 %v5035_v40  ;;  %v2576_v39 = vpop.f32.mrf.mxu0 }
 0x2a5   : > { %v2609_v22 = vpop.f32.mrf.mxu1  ;;  %v2658_v19 = vpop.f32.mrf.mxu2  ;;  %v2577_v3 = vadd.f32 %v2576_v39, %v6215_v31  ;;  %v2959_v14 = vadd.f32 %v2958_v48, %v2957_v29 }
 0x2a6   : > { %v4624_v38 = vpop.eup %4623  ;;  %3613 = vmatmul.f32.gmra.mxu2 %v5035_v40  ;;  %v2610_v12 = vadd.f32 %v2609_v22, %v2573_v34  ;;  %v2659_v30 = vadd.f32 %v2658_v19, %v5382_v37  ;;  %v2949_v34 = vrot.slane %v2948_v26, 1  ;;  %v2708_v22 = vadd.f32 %v6222_v32, %v2643_v33 }
 0x2a7   : > { %v2932_v4 = vmul.f32 %v4624_v38, %v5547_v46  ;;  %v2979_v39 = vadd.f32 %v2959_v14, %v5771_v59 }
 0x2a8   : > { %4625 = vtanh.f32 %v2610_v12  ;;  %v6272_v6 = vadd.f32 %v2715_v8, %v2659_v30  ;;  %v2950_v38 = vadd.f32 %v2949_v34, %v2948_v26  ;;  %v6589_v26 = vand.u32 4294901760, %v6195_v61 }
 0x2a9   : > { %v2960_v58 = vadd.f32 %v2932_v4, %v2928_v45  ;;  %v2986_v45 = vrot.slane %v2979_v39, 7 }
 0x2ab   : > { %3527 = vmatmul.f32.gmra.mxu0 %v5076_v15  ;;  %v6275_v41 = vpop.f32.mrf.mxu3 }
 0x2ac   : > { %3566 = vmatmul.f32.gmra.mxu1 %v5061_v0  ;;  %3654 = vmatmul.f32.gmra.mxu3 %v5063_v7  ;;  %v2749_v13 = vpop.f32.mrf.mxu0 }
 0x2ad   : > { %v2613_v9 = vpop.f32.mrf.mxu1  ;;  %v6280_v42 = vpop.f32.mrf.mxu2  ;;  %v2750_v29 = vadd.f32 %v2749_v13, %v2708_v22 }
 0x2ae   : > { %v4626_v25 = vpop.eup %4625  ;;  %3617 = vmatmul.f32.gmra.mxu2 %v5063_v7  ;;  %v2614_v8 = vadd.f32 %v2613_v9, %v2577_v3 }
 0x2af   : > { %v2936_v21 = vmul.f32 %v4626_v25, %v5575_v44 }
 0x2b0   : > { %4627 = vtanh.f32 %v2614_v8 }
 0x2b1   : > { %v2961_v31 = vadd.f32 %v2960_v58, %v2936_v21  ;;  %v2978_v58 = vadd.f32 %v2950_v38, %v5771_v59 }
 0x2b3   : > { %3683 = vmatmul.f32.vlgmr.msrb.gmra.mxu0 %v6549_v2  ;;  %v2879_v19 = vpop.f32.mrf.mxu3  ;;  %v6307_v3 = vsel %vm1663_vm1, %v2978_v58, %v2986_v45 }
 0x2b4   : > { %3572 = vmatmul.f32.gmra.mxu1 %v5093_v51  ;;  %3832 = vmatmul.f32.vlgmr.msrb.gmra.mxu3 %v6558_v20 }
 0x2b5   : > { %4056 = vmatpush.msrb.mxu0 %v6187_v36  ;;  %4190 = vmatpush.msrb.mxu3 %v6179_v47  ;;  %v2754_v35 = vpop.f32.mrf.mxu0  ;;  %v2842_v12 = vpop.f32.mrf.mxu2  ;;  %v6590_v36 = vand.u32 4294901760, %v6204_v10 }
 0x2b6   : > { %v4628_v30 = vpop.eup %4627  ;;  %3790 = vmatmul.f32.vlgmr.msrb.gmra.mxu2 %v6553_v60  ;;  %v2791_v32 = vpop.f32.mrf.mxu1  ;;  %v2755_v9 = vadd.f32 %v2754_v35, %v6259_v49 }
 0x2b7   : > { %v2940_v4 = vmul.f32 %v4628_v30, %v5616_v5  ;;  %4059 = vmatpush.msrb.mxu0 %v6195_v61  ;;  %4147 = vmatpush.msrb.mxu2 %v4003_v17  ;;  %v2792_v55 = vadd.f32 %v2791_v32, %v2750_v29  ;;  %v6591_v61 = vand.u32 4294901760, %v6209_v53 }
 0x2b8   : > { %4192 = vmatpush.msrb.mxu3 %v6184_v52 }
 0x2b9   : > { %v6300_v48 = vadd.f32 %v2961_v31, %v2940_v4  ;;  %4062 = vmatpush.msrb.mxu0 %v6204_v10  ;;  %4151 = vmatpush.msrb.mxu2 %v6589_v26  ;;  %v2843_v17 = vadd.f32 %v2842_v12, %v2792_v55  ;;  %v2667_v26 = vadd.f32 %v6280_v42, %v6586_v27 }
 0x2ba   : > { %4194 = vmatpush.msrb.mxu3 %v6189_v1 }
 0x2bb   : > { %4065 = vmatpush.msrb.mxu0 %v6209_v53  ;;  %4155 = vmatpush.msrb.mxu2 %v6590_v36  ;;  %v2880_v8 = vadd.f32 %v2879_v19, %v2843_v17 }
 0x2bc   : > { %4196 = vmatpush.msrb.mxu3 %v6197_v23  ;;  %3691 = vmatmul.f32.gmra.mxu0 %v5056_v63  ;;  %v2883_v13 = vpop.f32.mrf.mxu3 }
 0x2bd   : > { %3748 = vmatmul.f32.vlgmr.msrb.gmra.mxu1 %v4934_v24  ;;  %4159 = vmatpush.msrb.mxu2 %v6591_v61  ;;  %v2759_v25 = vpop.f32.mrf.mxu0  ;;  %4629 = vtanh.f32 %v2880_v8 }
 0x2be   : > { %4100 = vmatpush.msrb.mxu1 %v6179_v47  ;;  %3795 = vmatmul.f32.gmra.mxu2 %v4995_v62  ;;  %v2797_v10 = vpop.f32.mrf.mxu1  ;;  %v2846_v14 = vpop.f32.mrf.mxu2  ;;  %v2760_v53 = vadd.f32 %v2759_v25, %v6272_v6  ;;  %v2720_v25 = vadd.f32 %v6275_v41, %v2667_v26 }
 0x2bf   : > { %v2798_v33 = vadd.f32 %v2797_v10, %v2755_v9  ;;  %3838 = vmatmul.f32.gmra.mxu3 %v5023_v28 }
 0x2c0   : > { %4102 = vmatpush.msrb.mxu1 %v6184_v52 }
 0x2c1   : > { %v2847_v21 = vadd.f32 %v2846_v14, %v2798_v33 }
 0x2c2   : > { %4104 = vmatpush.msrb.mxu1 %v6189_v1 }
 0x2c3   : > { %v2884_v49 = vadd.f32 %v2883_v13, %v2847_v21  ;;  %v4630_v1 = vpop.eup %4629 }
 0x2c4   : > { %4106 = vmatpush.msrb.mxu1 %v6197_v23  ;;  %3699 = vmatmul.f32.gmra.mxu0 %v5090_v18  ;;  %v2887_v47 = vpop.f32.mrf.mxu3  ;;  %v2929_v38 = vmul.f32 %v4630_v1, %v5545_v50 }
 0x2c5   : > { %3752 = vmatmul.f32.gmra.mxu1 %v4984_v54  ;;  %4631 = vtanh.f32 %v2884_v49  ;;  %v2764_v34 = vpop.f32.mrf.mxu0 }
 0x2c6   : > { %3800 = vmatmul.f32.gmra.mxu2 %v5052_v57  ;;  %v2803_v31 = vpop.f32.mrf.mxu1  ;;  %v2850_v52 = vpop.f32.mrf.mxu2  ;;  %v2765_v14 = vadd.f32 %v2764_v34, %v2720_v25 }
 0x2c7   : > { %v2804_v39 = vadd.f32 %v2803_v31, %v2760_v53  ;;  %3844 = vmatmul.f32.gmra.mxu3 %v5061_v0 }
 0x2c9   : > { %v2851_v22 = vadd.f32 %v2850_v52, %v2804_v39 }
 0x2cb   : > { %v4632_v19 = vpop.eup %4631  ;;  %v2888_v23 = vadd.f32 %v2887_v47, %v2851_v22 }
 0x2cc   : > { %v2933_v29 = vmul.f32 %v4632_v19, %v5547_v46  ;;  %3707 = vmatmul.f32.gmra.mxu0 %v6587_v16  ;;  %v2891_v6 = vpop.f32.mrf.mxu3 }
 0x2cd   : > { %3756 = vmatmul.f32.gmra.mxu1 %v5035_v40  ;;  %4633 = vtanh.f32 %v2888_v23  ;;  %v3128_v35 = vpop.f32.mrf.mxu0 }
 0x2ce   : > { %v2969_v12 = vadd.f32 %v2933_v29, %v2929_v38  ;;  %3805 = vmatmul.f32.gmra.mxu2 %v5076_v15  ;;  %v2809_v30 = vpop.f32.mrf.mxu1  ;;  %v2854_v45 = vpop.f32.mrf.mxu2  ;;  %v3129_v55 = vadd.f32 %v3128_v35, %v5347_v56 }
 0x2cf   : > { %3850 = vmatmul.f32.gmra.mxu3 %v5093_v51  ;;  %v2810_v33 = vadd.f32 %v2809_v30, %v2765_v14 }
 0x2d1   : > { %v2855_v41 = vadd.f32 %v2854_v45, %v2810_v33 }
 0x2d3   : > { %v4634_v32 = vpop.eup %4633  ;;  %v2892_v39 = vadd.f32 %v2891_v6, %v2855_v41 }
 0x2d4   : > { %v2937_v4 = vmul.f32 %v4634_v32, %v5575_v44  ;;  %3883 = vmatmul.f32.vlgmr.msra.gmra.mxu0 %v4934_v24  ;;  %v3277_v58 = vpop.f32.mrf.mxu3 }
 0x2d5   : > { %3760 = vmatmul.f32.gmra.mxu1 %v5063_v7  ;;  %4635 = vtanh.f32 %v2892_v39 }
 0x2d6   : > { %v2970_v36 = vadd.f32 %v2969_v12, %v2937_v4  ;;  %3961 = vmatmul.f32.vlgmr.msra.gmra.mxu2 %v6549_v2  ;;  %v3136_v17 = vpop.f32.mrf.mxu0  ;;  %v3235_v13 = vpop.f32.mrf.mxu2 }
 0x2d7   : > { %v3193_v9 = vpop.f32.mrf.mxu1  ;;  %4026 = vmatmul.f32.vlgmr.msra.gmra.mxu3 %v4934_v24  ;;  %v3137_v8 = vadd.f32 %v3136_v17, %v5352_v11 }
 0x2d8   : > { %v3194_v61 = vadd.f32 %v3193_v9, %v3129_v55 }
 0x2da   : > { %v3236_v10 = vadd.f32 %v3235_v13, %v3194_v61 }
 0x2dc   : > { %3887 = vmatmul.f32.gmra.mxu0 %v4984_v54  ;;  %v3278_v42 = vadd.f32 %v3277_v58, %v3236_v10 }
 0x2dd   : > { %3920 = vmatmul.f32.vlgmr.msra.gmra.mxu1 %v4934_v24  ;;  %v3283_v21 = vpop.f32.mrf.mxu3 }
 0x2de   : > { %3969 = vmatmul.f32.gmra.mxu2 %v5056_v63  ;;  %v3144_v2 = vpop.f32.mrf.mxu0 }
 0x2df   : > { %v3197_v49 = vpop.f32.mrf.mxu1  ;;  %4030 = vmatmul.f32.gmra.mxu3 %v4984_v54  ;;  %v3240_v47 = vpop.f32.mrf.mxu2  ;;  %v3145_v34 = vadd.f32 %v3144_v2, %v5382_v37 }
 0x2e0   : > { %v3198_v53 = vadd.f32 %v3197_v49, %v3137_v8 }
 0x2e2   : > { %v3241_v31 = vadd.f32 %v3240_v47, %v3198_v53 }
 0x2e4   : > { %3891 = vmatmul.f32.gmra.mxu0 %v5035_v40  ;;  %v3284_v52 = vadd.f32 %v3283_v21, %v3241_v31 }
 0x2e5   : > { %3924 = vmatmul.f32.gmra.mxu1 %v4984_v54  ;;  %v3289_v1 = vpop.f32.mrf.mxu3 }
 0x2e6   : > { %3977 = vmatmul.f32.gmra.mxu2 %v5090_v18  ;;  %v3152_v63 = vpop.f32.mrf.mxu0  ;;  %v4636_v18 = vpop.eup %4635 }
 0x2e7   : > { %v3201_v22 = vpop.f32.mrf.mxu1  ;;  %4034 = vmatmul.f32.gmra.mxu3 %v5035_v40  ;;  %v3245_v19 = vpop.f32.mrf.mxu2  ;;  %v3153_v29 = vadd.f32 %v3152_v63, %v6586_v27  ;;  %v2941_v55 = vmul.f32 %v4636_v18, %v5616_v5 }
 0x2e8   : > { %v3202_v23 = vadd.f32 %v3201_v22, %v3145_v34 }
 0x2e9   : > { %v2971_v13 = vadd.f32 %v2970_v36, %v2941_v55 }
 0x2ea   : > { %v3246_v38 = vadd.f32 %v3245_v19, %v3202_v23 }
 0x2eb   : > { %v2972_v8 = vrot.slane %v2971_v13, 4 }
 0x2ec   : > { %3895 = vmatmul.f32.gmra.mxu0 %v5063_v7  ;;  %v3290_v35 = vadd.f32 %v3289_v1, %v3246_v38 }
 0x2ed   : > { %3928 = vmatmul.f32.gmra.mxu1 %v5035_v40  ;;  %v3295_v6 = vpop.f32.mrf.mxu3  ;;  %v2973_v36 = vadd.f32 %v2972_v8, %v2971_v13 }
 0x2ee   : > { %3985 = vmatmul.f32.gmra.mxu2 %v6587_v16  ;;  %v3328_v12 = vpop.f32.mrf.mxu0 }
 0x2ef   : > { %v3205_v30 = vpop.f32.mrf.mxu1  ;;  %v3329_v45 = vadd.f32 %v3328_v12, %v3278_v42  ;;  %4038 = vmatmul.f32.gmra.mxu3 %v5063_v7  ;;  %v3250_v32 = vpop.f32.mrf.mxu2  ;;  %v2974_v31 = vrot.slane %v2973_v36, 2 }
 0x2f0   : > { %v3206_v4 = vadd.f32 %v3205_v30, %v3153_v29 }
 0x2f1   : > { %v2975_v34 = vadd.f32 %v2974_v31, %v2973_v36 }
 0x2f2   : > { %v3251_v58 = vadd.f32 %v3250_v32, %v3206_v4 }
 0x2f3   : > { %v2976_v29 = vrot.slane %v2975_v34, 1 }
 0x2f4   : > { %4068 = vmatmul.f32.vlgmr.msrb.gmra.mxu0 %v6553_v60  ;;  %v3296_v26 = vadd.f32 %v3295_v6, %v3251_v58  ;;  %v2963_v60 = vrot.slane %v6300_v48, 4 }
 0x2f5   : > { %3932 = vmatmul.f32.gmra.mxu1 %v5063_v7  ;;  %v3471_v17 = vpop.f32.mrf.mxu3 }
 0x2f6   : > { %4161 = vmatmul.f32.vlgmr.msrb.gmra.mxu2 %v4934_v24 }
 0x2f7   : > { %v3332_v16 = vpop.f32.mrf.mxu0  ;;  %4198 = vmatmul.f32.vlgmr.msrb.gmra.mxu3 %v4934_v24  ;;  %v3406_v9 = vpop.f32.mrf.mxu2  ;;  %v2964_v24 = vadd.f32 %v2963_v60, %v6300_v48 }
 0x2f8   : > { %v3333_v61 = vadd.f32 %v3332_v16, %v3284_v52  ;;  %v3365_v25 = vpop.f32.mrf.mxu1  ;;  %v3407_v10 = vadd.f32 %v3406_v9, %v5347_v56 }
 0x2f9   : > { %v3366_v14 = vadd.f32 %v3365_v25, %v3329_v45 }
 0x2fa   : > { %v3472_v42 = vadd.f32 %v3471_v17, %v3407_v10 }
 0x2fb   : > { %4637 = vtanh.f32 %v3366_v14 }
 0x2fc   : > { %4073 = vmatmul.f32.gmra.mxu0 %v4995_v62 }
 0x2fd   : > { %4110 = vmatmul.f32.vlgmr.msrb.gmra.mxu1 %v6558_v20  ;;  %v2965_v20 = vrot.slane %v2964_v24, 2 }
 0x2fe   : > { %4165 = vmatmul.f32.gmra.mxu2 %v4984_v54  ;;  %v3475_v33 = vpop.f32.mrf.mxu3 }
 0x2ff   : > { %v3336_v21 = vpop.f32.mrf.mxu0  ;;  %4202 = vmatmul.f32.gmra.mxu3 %v4984_v54  ;;  %v2966_v39 = vadd.f32 %v2965_v20, %v2964_v24 }
 0x300   : > { %v3337_v2 = vadd.f32 %v3336_v21, %v3290_v35  ;;  %v3369_v49 = vpop.f32.mrf.mxu1  ;;  %v3414_v47 = vpop.f32.mrf.mxu2 }
 0x301   : > { %v3370_v53 = vadd.f32 %v3369_v49, %v3333_v61  ;;  %v3415_v41 = vadd.f32 %v3414_v47, %v5352_v11  ;;  %v4638_v48 = vpop.eup %4637  ;;  %v2967_v6 = vrot.slane %v2966_v39, 1 }
 0x303   : > { %4639 = vtanh.f32 %v3370_v53  ;;  %v3476_v62 = vadd.f32 %v3475_v33, %v3415_v41  ;;  %v2968_v45 = vadd.f32 %v2967_v6, %v2966_v39 }
 0x304   : > { %4078 = vmatmul.f32.gmra.mxu0 %v5052_v57  ;;  %v4246_v57 = vmul.f32 %v4638_v48, %v5545_v50 }
 0x305   : > { %4116 = vmatmul.f32.gmra.mxu1 %v5023_v28  ;;  %v2980_v16 = vadd.f32 %v2968_v45, %v5771_v59 }
 0x306   : > { %4169 = vmatmul.f32.gmra.mxu2 %v5035_v40  ;;  %v3479_v54 = vpop.f32.mrf.mxu3 }
 0x307   : > { %v3340_v52 = vpop.f32.mrf.mxu0  ;;  %4206 = vmatmul.f32.gmra.mxu3 %v5035_v40  ;;  %v2977_v40 = vadd.f32 %v2976_v29, %v2975_v34  ;;  %v2987_v25 = vrot.slane %v2980_v16, 6 }
 0x308   : > { %v3341_v1 = vadd.f32 %v3340_v52, %v3296_v26  ;;  %v3373_v63 = vpop.f32.mrf.mxu1  ;;  %v3422_v22 = vpop.f32.mrf.mxu2 }
 0x309   : > { %v4640_v19 = vpop.eup %4639  ;;  %v3374_v23 = vadd.f32 %v3373_v63, %v3337_v2  ;;  %v3423_v38 = vadd.f32 %v3422_v22, %v5382_v37  ;;  %v2981_v13 = vadd.f32 %v2977_v40, %v5771_v59 }
 0x30a   : > { %v4250_v28 = vmul.f32 %v4640_v19, %v5547_v46 }
 0x30b   : > { %4641 = vtanh.f32 %v3374_v23  ;;  %v3480_v35 = vadd.f32 %v3479_v54, %v3423_v38 }
 0x30c   : > { %v4262_v12 = vadd.f32 %v4250_v28, %v4246_v57  ;;  %4083 = vmatmul.f32.gmra.mxu0 %v5076_v15 }
 0x30d   : > { %4122 = vmatmul.f32.gmra.mxu1 %v5061_v0 }
 0x30e   : > { %4173 = vmatmul.f32.gmra.mxu2 %v5063_v7  ;;  %v3483_v18 = vpop.f32.mrf.mxu3 }
 0x30f   : > { %v3513_v30 = vpop.f32.mrf.mxu0  ;;  %4210 = vmatmul.f32.gmra.mxu3 %v5063_v7  ;;  %v2988_v7 = vrot.slane %v2981_v13, 5 }
 0x310   : > { %v3377_v32 = vpop.f32.mrf.mxu1  ;;  %v3514_v4 = vadd.f32 %v3513_v30, %v3472_v42  ;;  %v3430_v55 = vpop.f32.mrf.mxu2 }
 0x311   : > { %v4642_v58 = vpop.eup %4641  ;;  %v3378_v26 = vadd.f32 %v3377_v32, %v3341_v1  ;;  %v3431_v17 = vadd.f32 %v3430_v55, %v6586_v27  ;;  %v2990_v21 = vsel %vm1665_vm2, %v2987_v25, %v2988_v7 }
 0x312   : > { %v4254_v15 = vmul.f32 %v4642_v58, %v5575_v44  ;;  %v2991_v24 = vsel %vm1667_vm3, %v6307_v3, %v2990_v21 }
 0x313   : > { %4643 = vtanh.f32 %v3378_v26  ;;  %v3484_v0 = vadd.f32 %v3483_v18, %v3431_v17  ;;  %4406 = vst.msk [vmem:[%s6074_s29 + $0x4] sm:$0xf] %vm6065_vm4, %v2991_v24 }
 0x314   : > { %v4263_v9 = vadd.f32 %v4262_v12, %v4254_v15 }
 0x315   : > { %4128 = vmatmul.f32.gmra.mxu1 %v5093_v51 }
 0x316   : > { %v3643_v61 = vpop.f32.mrf.mxu3 }
 0x318   : > { %v3518_v10 = vpop.f32.mrf.mxu0  ;;  %v3606_v14 = vpop.f32.mrf.mxu2 }
 0x319   : > { %v4644_v8 = vpop.eup %4643  ;;  %v3519_v42 = vadd.f32 %v3518_v10, %v3476_v62  ;;  %v3555_v60 = vpop.f32.mrf.mxu1 }
 0x31a   : > { %v4258_v36 = vmul.f32 %v4644_v8, %v5616_v5  ;;  %v3556_v33 = vadd.f32 %v3555_v60, %v3514_v4 }
 0x31c   : > { %v6392_v2 = vadd.f32 %v4263_v9, %v4258_v36  ;;  %v3607_v49 = vadd.f32 %v3606_v14, %v3556_v33 }
 0x31e   : > { %v3644_v51 = vadd.f32 %v3643_v61, %v3607_v49 }
 0x31f   : > { %v3647_v47 = vpop.f32.mrf.mxu3 }
 0x320   : > { %v3523_v53 = vpop.f32.mrf.mxu0  ;;  %4645 = vtanh.f32 %v3644_v51 }
 0x321   : > { %v3524_v41 = vadd.f32 %v3523_v53, %v3480_v35  ;;  %v3561_v31 = vpop.f32.mrf.mxu1  ;;  %v3610_v62 = vpop.f32.mrf.mxu2 }
 0x322   : > { %v3562_v20 = vadd.f32 %v3561_v31, %v3519_v42 }
 0x324   : > { %v3611_v34 = vadd.f32 %v3610_v62, %v3562_v20 }
 0x326   : > { %v3648_v54 = vadd.f32 %v3647_v47, %v3611_v34  ;;  %v4646_v22 = vpop.eup %4645 }
 0x327   : > { %v3651_v48 = vpop.f32.mrf.mxu3  ;;  %v4247_v29 = vmul.f32 %v4646_v22, %v5545_v50 }
 0x328   : > { %4647 = vtanh.f32 %v3648_v54  ;;  %v3528_v52 = vpop.f32.mrf.mxu0 }
 0x329   : > { %v3529_v3 = vadd.f32 %v3528_v52, %v3484_v0  ;;  %v3567_v39 = vpop.f32.mrf.mxu1  ;;  %v3614_v1 = vpop.f32.mrf.mxu2 }
 0x32a   : > { %v3568_v63 = vadd.f32 %v3567_v39, %v3524_v41 }
 0x32c   : > { %v3615_v19 = vadd.f32 %v3614_v1, %v3568_v63 }
 0x32e   : > { %v4648_v23 = vpop.eup %4647  ;;  %v3652_v38 = vadd.f32 %v3651_v48, %v3615_v19 }
 0x32f   : > { %v4251_v57 = vmul.f32 %v4648_v23, %v5547_v46  ;;  %v3655_v28 = vpop.f32.mrf.mxu3 }
 0x330   : > { %4649 = vtanh.f32 %v3652_v38  ;;  %v3684_v35 = vpop.f32.mrf.mxu0  ;;  %v4265_v38 = vrot.slane %v6392_v2, 4 }
 0x331   : > { %v4271_v6 = vadd.f32 %v4251_v57, %v4247_v29  ;;  %v3573_v12 = vpop.f32.mrf.mxu1  ;;  %v3618_v40 = vpop.f32.mrf.mxu2  ;;  %v3685_v55 = vadd.f32 %v3684_v35, %v5347_v56 }
 0x332   : > { %v3574_v18 = vadd.f32 %v3573_v12, %v3529_v3 }
 0x334   : > { %v3619_v30 = vadd.f32 %v3618_v40, %v3574_v18  ;;  %v4266_v18 = vadd.f32 %v4265_v38, %v6392_v2 }
 0x336   : > { %v4650_v45 = vpop.eup %4649  ;;  %v3656_v32 = vadd.f32 %v3655_v28, %v3619_v30 }
 0x337   : > { %v4255_v4 = vmul.f32 %v4650_v45, %v5575_v44  ;;  %v3833_v58 = vpop.f32.mrf.mxu3  ;;  %v4267_v45 = vrot.slane %v4266_v18, 2 }
 0x338   : > { %4651 = vtanh.f32 %v3656_v32 }
 0x339   : > { %v4272_v26 = vadd.f32 %v4271_v6, %v4255_v4  ;;  %v3692_v17 = vpop.f32.mrf.mxu0  ;;  %v3791_v13 = vpop.f32.mrf.mxu2 }
 0x33a   : > { %v3749_v15 = vpop.f32.mrf.mxu1  ;;  %v3693_v61 = vadd.f32 %v3692_v17, %v5352_v11 }
 0x33b   : > { %v3750_v0 = vadd.f32 %v3749_v15, %v3685_v55 }
 0x33d   : > { %v3792_v16 = vadd.f32 %v3791_v13, %v3750_v0 }
 0x33e   : > { %v4652_v9 = vpop.eup %4651 }
 0x33f   : > { %v4259_v7 = vmul.f32 %v4652_v9, %v5616_v5  ;;  %v3834_v25 = vadd.f32 %v3833_v58, %v3792_v16  ;;  %v4268_v16 = vadd.f32 %v4267_v45, %v4266_v18 }
 0x341   : > { %v4273_v10 = vadd.f32 %v4272_v26, %v4259_v7  ;;  %v3700_v14 = vpop.f32.mrf.mxu0  ;;  %v3796_v8 = vpop.f32.mrf.mxu2 }
 0x342   : > { %v3753_v42 = vpop.f32.mrf.mxu1  ;;  %v3839_v60 = vpop.f32.mrf.mxu3  ;;  %v3701_v21 = vadd.f32 %v3700_v14, %v5382_v37 }
 0x343   : > { %v3754_v36 = vadd.f32 %v3753_v42, %v3693_v61  ;;  %v4274_v39 = vrot.slane %v4273_v10, 4 }
 0x345   : > { %v3797_v33 = vadd.f32 %v3796_v8, %v3754_v36  ;;  %v4275_v19 = vadd.f32 %v4274_v39, %v4273_v10 }
 0x347   : > { %v3840_v24 = vadd.f32 %v3839_v60, %v3797_v33  ;;  %v4276_v35 = vrot.slane %v4275_v19, 2 }
 0x349   : > { %v3708_v49 = vpop.f32.mrf.mxu0  ;;  %v3801_v51 = vpop.f32.mrf.mxu2  ;;  %v4277_v30 = vadd.f32 %v4276_v35, %v4275_v19 }
 0x34a   : > { %v3757_v47 = vpop.f32.mrf.mxu1  ;;  %v3845_v53 = vpop.f32.mrf.mxu3  ;;  %v3709_v10 = vadd.f32 %v3708_v49, %v6586_v27 }
 0x34b   : > { %v3758_v41 = vadd.f32 %v3757_v47, %v3701_v21  ;;  %v4278_v26 = vrot.slane %v4277_v30, 1 }
 0x34d   : > { %v3802_v31 = vadd.f32 %v3801_v51, %v3758_v41  ;;  %v4279_v61 = vadd.f32 %v4278_v26, %v4277_v30 }
 0x34f   : > { %v3846_v62 = vadd.f32 %v3845_v53, %v3802_v31  ;;  %v4299_v42 = vadd.f32 %v4279_v61, %v5771_v59 }
 0x351   : > { %v3884_v20 = vpop.f32.mrf.mxu0  ;;  %v3806_v34 = vpop.f32.mrf.mxu2  ;;  %v4306_v47 = vrot.slane %v4299_v42, 7 }
 0x352   : > { %v3761_v54 = vpop.f32.mrf.mxu1  ;;  %v3851_v48 = vpop.f32.mrf.mxu3  ;;  %v3885_v22 = vadd.f32 %v3884_v20, %v3834_v25  ;;  %v4269_v25 = vrot.slane %v4268_v16, 1 }
 0x353   : > { %v3762_v51 = vadd.f32 %v3761_v54, %v3709_v10 }
 0x354   : > { %v4270_v21 = vadd.f32 %v4269_v25, %v4268_v16 }
 0x355   : > { %v3807_v31 = vadd.f32 %v3806_v34, %v3762_v51 }
 0x356   : > { %v4298_v41 = vadd.f32 %v4270_v21, %v5771_v59 }
 0x358   : > { %v6413_v39 = vsel %vm1663_vm1, %v4298_v41, %v4306_v47 }
 0x359   : > { %v3888_v52 = vpop.f32.mrf.mxu0  ;;  %v3962_v3 = vpop.f32.mrf.mxu2 }
 0x35a   : > { %v3921_v1 = vpop.f32.mrf.mxu1  ;;  %v4027_v63 = vpop.f32.mrf.mxu3  ;;  %v3889_v29 = vadd.f32 %v3888_v52, %v3840_v24  ;;  %v3963_v19 = vadd.f32 %v3962_v3, %v5347_v56 }
 0x35b   : > { %v3922_v23 = vadd.f32 %v3921_v1, %v3885_v22  ;;  %v3852_v1 = vadd.f32 %v3851_v48, %v3807_v31 }
 0x35d   : > { %4653 = vtanh.f32 %v3922_v23 }
 0x361   : > { %v3892_v57 = vpop.f32.mrf.mxu0  ;;  %v3970_v28 = vpop.f32.mrf.mxu2 }
 0x362   : > { %v3925_v6 = vpop.f32.mrf.mxu1  ;;  %v4031_v12 = vpop.f32.mrf.mxu3  ;;  %v3893_v4 = vadd.f32 %v3892_v57, %v3846_v62  ;;  %v3971_v22 = vadd.f32 %v3970_v28, %v5352_v11  ;;  %v4028_v57 = vadd.f32 %v4027_v63, %v3963_v19 }
 0x363   : > { %v3926_v40 = vadd.f32 %v3925_v6, %v3889_v29  ;;  %v4654_v32 = vpop.eup %4653 }
 0x364   : > { %v4248_v9 = vmul.f32 %v4654_v32, %v5545_v50  ;;  %v4032_v38 = vadd.f32 %v4031_v12, %v3971_v22 }
 0x365   : > { %4655 = vtanh.f32 %v3926_v40 }
 0x369   : > { %v3896_v55 = vpop.f32.mrf.mxu0  ;;  %v3978_v58 = vpop.f32.mrf.mxu2 }
 0x36a   : > { %v3929_v17 = vpop.f32.mrf.mxu1  ;;  %v4035_v13 = vpop.f32.mrf.mxu3  ;;  %v3897_v23 = vadd.f32 %v3896_v55, %v3852_v1  ;;  %v3979_v34 = vadd.f32 %v3978_v58, %v5382_v37 }
 0x36b   : > { %v4656_v15 = vpop.eup %4655  ;;  %v3930_v0 = vadd.f32 %v3929_v17, %v3893_v4 }
 0x36c   : > { %v4252_v7 = vmul.f32 %v4656_v15, %v5547_v46  ;;  %v4036_v48 = vadd.f32 %v4035_v13, %v3979_v34 }
 0x36d   : > { %4657 = vtanh.f32 %v3930_v0 }
 0x36e   : > { %v4280_v2 = vadd.f32 %v4252_v7, %v4248_v9 }
 0x371   : > { %v4069_v14 = vpop.f32.mrf.mxu0  ;;  %v3986_v8 = vpop.f32.mrf.mxu2 }
 0x372   : > { %v3933_v60 = vpop.f32.mrf.mxu1  ;;  %v4039_v36 = vpop.f32.mrf.mxu3  ;;  %v4070_v18 = vadd.f32 %v4069_v14, %v4028_v57  ;;  %v3987_v63 = vadd.f32 %v3986_v8, %v6586_v27 }
 0x373   : > { %v4658_v33 = vpop.eup %4657  ;;  %v3934_v54 = vadd.f32 %v3933_v60, %v3897_v23 }
 0x374   : > { %v4256_v24 = vmul.f32 %v4658_v33, %v5575_v44  ;;  %v4040_v16 = vadd.f32 %v4039_v36, %v3987_v63 }
 0x375   : > { %4659 = vtanh.f32 %v3934_v54 }
 0x376   : > { %v4281_v53 = vadd.f32 %v4280_v2, %v4256_v24 }
 0x379   : > { %v4074_v62 = vpop.f32.mrf.mxu0  ;;  %v4162_v20 = vpop.f32.mrf.mxu2 }
 0x37a   : > { %v4111_v52 = vpop.f32.mrf.mxu1  ;;  %v4199_v49 = vpop.f32.mrf.mxu3  ;;  %v4075_v40 = vadd.f32 %v4074_v62, %v4032_v38 }
 0x37b   : > { %v4112_v32 = vadd.f32 %v4111_v52, %v4070_v18  ;;  %v4660_v55 = vpop.eup %4659 }
 0x37c   : > { %v4260_v37 = vmul.f32 %v4660_v55, %v5616_v5 }
 0x37d   : > { %v4163_v56 = vadd.f32 %v4162_v20, %v4112_v32 }
 0x37e   : > { %v4282_v7 = vadd.f32 %v4281_v53, %v4260_v37 }
 0x37f   : > { %v4200_v58 = vadd.f32 %v4199_v49, %v4163_v56 }
 0x380   : > { %v4283_v27 = vrot.slane %v4282_v7, 4 }
 0x381   : > { %v4166_v29 = vpop.f32.mrf.mxu2  ;;  %v4079_v30 = vpop.f32.mrf.mxu0 }
 0x382   : > { %v4117_v35 = vpop.f32.mrf.mxu1  ;;  %v4203_v6 = vpop.f32.mrf.mxu3  ;;  %v4080_v4 = vadd.f32 %v4079_v30, %v4036_v48  ;;  %v4284_v21 = vadd.f32 %v4283_v27, %v4282_v7 }
 0x383   : > { %v4118_v45 = vadd.f32 %v4117_v35, %v4075_v40 }
 0x384   : > { %v4285_v47 = vrot.slane %v4284_v21, 2 }
 0x385   : > { %v4167_v11 = vadd.f32 %v4166_v29, %v4118_v45 }
 0x386   : > { %v4286_v20 = vadd.f32 %v4285_v47, %v4284_v21 }
 0x387   : > { %v4204_v17 = vadd.f32 %v4203_v6, %v4167_v11 }
 0x388   : > { %v4287_v1 = vrot.slane %v4286_v20, 1 }
 0x389   : > { %v4170_v28 = vpop.f32.mrf.mxu2  ;;  %v4084_v0 = vpop.f32.mrf.mxu0  ;;  %4661 = vtanh.f32 %v4204_v17 }
 0x38a   : > { %v4123_v3 = vpop.f32.mrf.mxu1  ;;  %v4207_v12 = vpop.f32.mrf.mxu3  ;;  %v4085_v13 = vadd.f32 %v4084_v0, %v4040_v16  ;;  %4663 = vtanh.f32 %v4200_v58  ;;  %v4288_v23 = vadd.f32 %v4287_v1, %v4286_v20 }
 0x38b   : > { %v4124_v26 = vadd.f32 %v4123_v3, %v4080_v4 }
 0x38d   : > { %v4171_v15 = vadd.f32 %v4170_v28, %v4124_v26 }
 0x38f   : > { %v4208_v9 = vadd.f32 %v4207_v12, %v4171_v15  ;;  %v4662_v8 = vpop.eup %4661 }
 0x390   : > { %v4664_v60 = vpop.eup %4663  ;;  %v4253_v36 = vmul.f32 %v4662_v8, %v5547_v46 }
 0x391   : > { %v4174_v2 = vpop.f32.mrf.mxu2  ;;  %4665 = vtanh.f32 %v4208_v9  ;;  %v4249_v24 = vmul.f32 %v4664_v60, %v5545_v50 }
 0x392   : > { %v4129_v61 = vpop.f32.mrf.mxu1  ;;  %v4211_v10 = vpop.f32.mrf.mxu3 }
 0x393   : > { %v4130_v25 = vadd.f32 %v4129_v61, %v4085_v13  ;;  %v4289_v53 = vadd.f32 %v4253_v36, %v4249_v24 }
 0x395   : > { %v4175_v14 = vadd.f32 %v4174_v2, %v4130_v25 }
 0x397   : > { %v4212_v42 = vadd.f32 %v4211_v10, %v4175_v14  ;;  %v4666_v33 = vpop.eup %4665 }
 0x398   : > { %v4257_v51 = vmul.f32 %v4666_v33, %v5575_v44  ;;  %v4300_v44 = vadd.f32 %v4288_v23, %v5771_v59 }
 0x399   : > { %4667 = vtanh.f32 %v4212_v42 }
 0x39a   : > { %v4290_v31 = vadd.f32 %v4289_v53, %v4257_v51  ;;  %v4307_v54 = vrot.slane %v4300_v44, 6 }
 0x39f   : > { %v4668_v41 = vpop.eup %4667 }
 0x3a0   : > { %v4261_v62 = vmul.f32 %v4668_v41, %v5616_v5 }
 0x3a2   : > { %v4291_v52 = vadd.f32 %v4290_v31, %v4261_v62 }
 0x3a4   : > { %v4292_v49 = vrot.slane %v4291_v52, 4 }
 0x3a6   : > { %v4293_v22 = vadd.f32 %v4292_v49, %v4291_v52 }
 0x3a8   : > { %v4294_v19 = vrot.slane %v4293_v22, 2 }
 0x3aa   : > { %v4295_v46 = vadd.f32 %v4294_v19, %v4293_v22 }
 0x3ac   : > { %v4296_v50 = vrot.slane %v4295_v46, 1 }
 0x3ae   : > { %v4297_v38 = vadd.f32 %v4296_v50, %v4295_v46 }
 0x3b0   : > { %v4301_v5 = vadd.f32 %v4297_v38, %v5771_v59 }
 0x3b2   : > { %v4308_v29 = vrot.slane %v4301_v5, 5 }
 0x3b4   : > { %v4310_v57 = vsel %vm1665_vm2, %v4307_v54, %v4308_v29 }
 0x3b5   : > { %v4311_v35 = vsel %vm1667_vm3, %v6413_v39, %v4310_v57 }
 0x3b6   : > { %4408 = vst.msk [vmem:[%s6074_s29 + $0x8] sm:$0xf] %vm6065_vm4, %v4311_v35 }
 0x3b7   : > { %4726 = shalt.err (!%p4723_p7)
}
 0x3b8   : > { %4415 = dma.vmem_to_hbm [thread:$0]  (%p4838_p11), %s4329_s22, 192, %s4331_s7, %s4316_s16  }
 0x3b9 PF: > { %s4342_s25 = sand.u32 1, %s4753_s12   ;;  %p4422_p8 = pnand %p4403_p9, %p4842_p12 }
 0x3ba   : > { %s4343_s26 = scalar_lea.sflag [#allocation5], %s4342_s25 }
 0x3bb   : > { %p4423_p10 = pneg %p4422_p8 }
 0x3bd   : > { %4748 = dma.done.wait (%p4423_p10), %s4343_s26, 192  }
 0x3be   : > { %4750 = vsyncadd (%p4423_p10), %s4343_s26, 4294967104  ;;  %p16_p0 = scmp.ge.s32.totalorder %s4817_s18, 4   ;;  %s6592_s12 = smov %s4757_s13 }
 0x3bf   : > { %s6593_s13 = smov %s4761_s14  ;;  %s6594_s14 = smov %s4829_s21 }
 0x3c0   : > { %s6595_s15 = smov %s4817_s18  ;;  %18 = sbr.rel (!%p16_p0) target bundleno = 5 (0x5), region = 84 }
 0x3c5   :  { %4349 = vsyncpa [#allocation4], 1 }
 0x3c6   :  { %4351 = vsyncpa [#allocation4 + $0x1], 1 }
 0x3c7   :  { %4352 = vsyncpa [#allocation5], 1 }
 0x3c8   :  { %4354 = vsyncpa [#allocation5 + $0x1], 1 }

</bundles_post_ra>
